<compile_context>
chip_gen: v7x
topology: tpu7x:2x2x1
jax: 0.10.0
libtpu: 0.0.40
codegen_flags: <defaults>
</compile_context>

<pallas_src>
import functools

import numpy as np
import jax
import jax.numpy as jnp
from jax import lax
from jax.experimental import pallas as pl
from jax.experimental.pallas import tpu as pltpu

BN_EPS = 1e-5


# ---------------------------------------------------------------------------
# Fused Pallas kernel (one batch item per grid step)
# ---------------------------------------------------------------------------

def _body_head_kernel(x_flat_ref, x_chw_ref, x_ph_ref,
                      w1t_ref, sh1_ref, w2f_ref, sh2_ref,
                      auw_ref, wft_ref, bg_ref, mask_ref,
                      warp_ref, edge_ref,
                      cat_ref,
                      *, C, H, W, H1, W1, H2, W2, PAD):
    P = H * W
    f32 = jnp.float32

    # ---- flat, halo-padded concat slab: rows [0,C) = x, rows [C,2C) = upsampled d2 ----
    # PAD = 128 -> all big slab writes are lane-aligned full-width stores.  Halos are
    # zeroed every step (2 single-vreg stores) so 0*garbage can never inject NaNs.
    cat_ref[:, 0:PAD] = jnp.zeros((2 * C, PAD), f32)
    cat_ref[:, PAD + P:PAD + P + PAD] = jnp.zeros((2 * C, PAD), f32)
    cat_ref[0:C, PAD:PAD + P] = x_flat_ref[0]                            # (C, P) aligned

    # ---- down conv 1: depthwise 3x3 stride-2 + folded BN + ReLU (9 VPU FMAs) ----------
    # x_ph holds the four stride-2 phases of x; each tap is a contiguous static slice.
    acc1 = jnp.zeros((C, H1, W1), f32)
    for ki in range(3):
        for kj in range(3):
            a, b = ki % 2, kj % 2
            qi, qj = ki // 2, kj // 2
            base = (a * 2 + b) * C
            tap = x_ph_ref[0, base:base + C, qi:qi + H1, qj:qj + W1]     # (C, H1, W1)
            acc1 = acc1 + tap * w1t_ref[ki * 3 + kj]                     # (C,1,1) bcast
    d1 = jnp.maximum(acc1 + sh1_ref[...], 0.0)                           # (C, H1, W1)

    # ---- down conv 2 + bilinear upsample (align_corners=True), fused in registers -----
    # For each of the H2*W2 = 9 output positions: contiguous (C,3,3) patch, per-channel
    # reduce + folded BN + ReLU -> (C,1) value, then one lane-dense (C,P) FMA against the
    # precomputed separable upsample basis row.  d2 never touches VMEM.
    w2f = w2f_ref[...]                                                   # (C, 3, 3)
    sh2 = sh2_ref[...]                                                   # (C, 1)
    up = jnp.zeros((C, P), f32)
    for i in range(H2):
        for j in range(W2):
            patch = d1[:, 2 * i:2 * i + 3, 2 * j:2 * j + 3]              # (C, 3, 3)
            s = jnp.sum(patch * w2f, axis=2)                             # (C, 3)
            s = jnp.sum(s, axis=1, keepdims=True)                        # (C, 1)
            d2_ij = jnp.maximum(s + sh2, 0.0)                            # (C, 1)
            up = up + d2_ij * auw_ref[i * W2 + j:i * W2 + j + 1, :]      # (C, P) FMA
    cat_ref[C:2 * C, PAD:PAD + P] = up                                   # one aligned store

    # ---- 3x3 flow conv (pad=1, no bias): ONE batched MXU matmul over all 9 taps -------
    windows = []
    for ki in range(3):
        for kj in range(3):
            d = (ki - 1) * W + (kj - 1)
            win = cat_ref[:, PAD + d:PAD + d + P]                        # (2C, P)
            windows.append(win * mask_ref[ki * 3 + kj])                  # zero padding taps
    slab = jnp.concatenate(windows, axis=0)                              # (9*2C, P)
    flow = jnp.dot(wft_ref[...], slab,                                   # (2, P)
                   preferred_element_type=f32,
                   precision=lax.Precision.HIGHEST)                      # feeds floor/compare

    # ---- grid_sample (bilinear, zeros padding, align_corners=False), separable --------
    gx = bg_ref[0:1, :] + flow[0:1, :] * (1.0 / W)
    gy = bg_ref[1:2, :] + flow[1:2, :] * (1.0 / H)
    ix = (gx + 1.0) * (0.5 * W) - 0.5
    iy = (gy + 1.0) * (0.5 * H) - 0.5

    def axis_weights(coord, n):
        # (n, P) per-axis interpolation matrix: weights of the two neighbours of `coord`
        # for every output pixel, with out-of-range neighbours zeroed (zeros padding).
        c0f = jnp.floor(coord)
        t = coord - c0f
        c0 = c0f.astype(jnp.int32)
        c1 = c0 + 1
        w0 = jnp.where((c0 >= 0) & (c0 <= n - 1), 1.0 - t, 0.0)
        w1 = jnp.where((c1 >= 0) & (c1 <= n - 1), t, 0.0)
        c0c = jnp.clip(c0, 0, n - 1)
        c1c = jnp.clip(c1, 0, n - 1)
        iota = lax.broadcasted_iota(jnp.int32, (n, P), 0)
        return (jnp.where(iota == c0c, w0, 0.0)
                + jnp.where(iota == c1c, w1, 0.0))

    cxt = axis_weights(ix, W)                                            # (W, P)
    ryt = axis_weights(iy, H)                                            # (H, P)

    # column gather for all rows/channels in one lane-dense matmul, then one batched
    # row mix + sublane reduction and two full-block output stores.
    inner = jnp.dot(x_chw_ref[0], cxt, preferred_element_type=f32)       # (C*H, P)
    warp = jnp.sum(inner.reshape(C, H, P) * ryt[None, :, :], axis=1)     # (C, P)

    warp_ref[0] = warp
    edge_ref[0] = x_flat_ref[0] - warp


# ---------------------------------------------------------------------------
# Setup glue (index bookkeeping / constant construction)
# ---------------------------------------------------------------------------

def _conv_out(n):
    return (n - 3) // 2 + 1


def _axis_interp_matrix(out_n, in_n):
    a = np.zeros((out_n, in_n), np.float32)
    if in_n == 1 or out_n == 1:
        a[:, 0] = 1.0
        return a
    for i in range(out_n):
        src = i * (in_n - 1) / (out_n - 1)
        i0 = min(int(np.floor(src)), in_n - 1)
        i1 = min(i0 + 1, in_n - 1)
        t = src - i0
        a[i, i0] += 1.0 - t
        a[i, i1] += t
    return a


def _make_upsample_basis(h, w, h2, w2):
    # auw[(i,j), y*W + x] = ah[y, i] * aw[x, j]  -> separable bilinear (align_corners=True)
    ah = _axis_interp_matrix(h, h2)                                  # (h, h2)
    aw = _axis_interp_matrix(w, w2)                                  # (w, w2)
    basis = np.einsum('yi,xj->ijyx', ah, aw).reshape(h2 * w2, h * w)
    return jnp.asarray(basis.astype(np.float32))


def _make_base_grid(h, w):
    ys = np.linspace(-1.0, 1.0, h, dtype=np.float32)
    xs = np.linspace(-1.0, 1.0, w, dtype=np.float32)
    gx = np.tile(xs[None, :], (h, 1))
    gy = np.tile(ys[:, None], (1, w))
    return jnp.asarray(np.stack([gx.reshape(-1), gy.reshape(-1)], axis=1))   # (P, 2)


def _make_tap_masks(h, w):
    ys, xs = np.meshgrid(np.arange(h), np.arange(w), indexing='ij')
    m = np.zeros((9, 1, h * w), np.float32)
    for ki in range(3):
        for kj in range(3):
            valid = ((ys + ki - 1 >= 0) & (ys + ki - 1 <= h - 1) &
                     (xs + kj - 1 >= 0) & (xs + kj - 1 <= w - 1))
            m[ki * 3 + kj, 0] = valid.reshape(-1).astype(np.float32)
    return m


def init_raw_params(key, c):
    ks = jax.random.split(key, 9)
    return {
        'w_dw1': jax.random.normal(ks[0], (c, 1, 3, 3), jnp.float32) * 0.3,
        'b_dw1': jax.random.normal(ks[1], (c,), jnp.float32) * 0.1,
        'bn1_g': 1.0 + 0.1 * jax.random.normal(ks[2], (c,), jnp.float32),
        'bn1_b': 0.1 * jax.random.normal(ks[3], (c,), jnp.float32),
        'w_dw2': jax.random.normal(ks[4], (c, 1, 3, 3), jnp.float32) * 0.3,
        'b_dw2': jax.random.normal(ks[5], (c,), jnp.float32) * 0.1,
        'bn2_g': 1.0 + 0.1 * jax.random.normal(ks[6], (c,), jnp.float32),
        'bn2_b': 0.1 * jax.random.normal(ks[7], (c,), jnp.float32),
        'w_flow': jax.random.normal(ks[8], (2, 2 * c, 3, 3), jnp.float32) * 0.3,
        'bn1_mean': jnp.zeros((c,), jnp.float32),
        'bn1_var': jnp.ones((c,), jnp.float32),
        'bn2_mean': jnp.zeros((c,), jnp.float32),
        'bn2_var': jnp.ones((c,), jnp.float32),
    }


def body_head_forward(x_nchw, raw):
    """Pallas implementation of BodyHead.forward; input/outputs are NCHW float32."""
    n, c, h, w = x_nchw.shape
    assert h % 2 == 0 and w % 2 == 0, "spatial dims must be even"
    h1, w1 = _conv_out(h), _conv_out(w)
    h2, w2 = _conv_out(h1), _conv_out(w1)
    p = h * w
    pad = 128                                 # lane-aligned halo for the flat cat slab
    assert pad >= w + 1

    x = x_nchw.astype(jnp.float32)
    x_flat = x.reshape(n, c, p)                       # free reshape (lane-dense view)
    x_chw2d = x.reshape(n, c * h, w)                  # free reshape (rows = c*H + h)
    x_ph = (x.reshape(n, c, h // 2, 2, w // 2, 2)     # stride-2 phase separation
              .transpose(0, 3, 5, 1, 2, 4)
              .reshape(n, 4 * c, h // 2, w // 2))

    def bn_fold(bias, gamma, beta, mean, var):
        scale = gamma / jnp.sqrt(var + BN_EPS)
        shift = beta + scale * (bias - mean)
        return scale, shift

    sc1, sh1v = bn_fold(raw['b_dw1'], raw['bn1_g'], raw['bn1_b'],
                        raw['bn1_mean'], raw['bn1_var'])
    sc2, sh2v = bn_fold(raw['b_dw2'], raw['bn2_g'], raw['bn2_b'],
                        raw['bn2_mean'], raw['bn2_var'])
    # depthwise weights with the BN scale folded in
    w1t = (jnp.transpose(raw['w_dw1'][:, 0], (1, 2, 0)).reshape(9, c)
           * sc1[None, :]).reshape(9, c, 1, 1)
    sh1 = sh1v.reshape(c, 1, 1)
    w2f = raw['w_dw2'][:, 0] * sc2[:, None, None]                    # (c, 3, 3)
    sh2 = sh2v.reshape(c, 1)

    auw = _make_upsample_basis(h, w, h2, w2)                         # (h2*w2, p)
    # flow weights flattened tap-major: columns [t*2c:(t+1)*2c] = w_flow[:, :, ki, kj]
    wft = (jnp.transpose(raw['w_flow'], (2, 3, 0, 1))                # (3, 3, 2, 2c)
              .reshape(9, 2, 2 * c)
              .transpose(1, 0, 2)
              .reshape(2, 9 * 2 * c))                                # (2, 9*2c)
    bg = _make_base_grid(h, w).T                                     # (2, p): rows gx, gy
    masks = jnp.asarray(_make_tap_masks(h, w))                       # (9, 1, p)

    kernel = functools.partial(_body_head_kernel, C=c, H=h, W=w,
                               H1=h1, W1=w1, H2=h2, W2=w2, PAD=pad)

    warp_flat, edge_flat = pl.pallas_call(
        kernel,
        out_shape=(jax.ShapeDtypeStruct((n, c, p), jnp.float32),
                   jax.ShapeDtypeStruct((n, c, p), jnp.float32)),
        grid=(n,),
        in_specs=[
            pl.BlockSpec((1, c, p), lambda i: (i, 0, 0)),                       # x_flat
            pl.BlockSpec((1, c * h, w), lambda i: (i, 0, 0)),                   # x_chw2d
            pl.BlockSpec((1, 4 * c, h // 2, w // 2), lambda i: (i, 0, 0, 0)),   # x_ph
            pl.BlockSpec((9, c, 1, 1), lambda i: (0, 0, 0, 0)),                 # w1t
            pl.BlockSpec((c, 1, 1), lambda i: (0, 0, 0)),                       # sh1
            pl.BlockSpec((c, 3, 3), lambda i: (0, 0, 0)),                       # w2f
            pl.BlockSpec((c, 1), lambda i: (0, 0)),                             # sh2
            pl.BlockSpec((h2 * w2, p), lambda i: (0, 0)),                       # auw basis
            pl.BlockSpec((2, 9 * 2 * c), lambda i: (0, 0)),                     # wft flat
            pl.BlockSpec((2, p), lambda i: (0, 0)),                             # base grid
            pl.BlockSpec((9, 1, p), lambda i: (0, 0, 0)),                       # tap masks
        ],
        out_specs=(pl.BlockSpec((1, c, p), lambda i: (i, 0, 0)),
                   pl.BlockSpec((1, c, p), lambda i: (i, 0, 0))),
        scratch_shapes=[
            pltpu.VMEM((2 * c, p + 2 * pad), jnp.float32),   # flat [x | up] + 128-lane halo
        ],
        compiler_params=pltpu.CompilerParams(dimension_semantics=("parallel",)),
    )(x_flat, x_chw2d, x_ph, w1t, sh1, w2f, sh2, auw, wft, bg, masks)

    return (warp_flat.reshape(n, c, h, w),        # seg_flow_warp (NCHW)
            edge_flat.reshape(n, c, h, w))        # seg_edge      (NCHW)


# ---------------------------------------------------------------------------
# Pure-JAX reference (NCHW, mirrors the PyTorch forward) for a sanity check
# ---------------------------------------------------------------------------

def _interp_coords(out_n, in_n):
    src = jnp.arange(out_n, dtype=jnp.float32) * (in_n - 1) / (out_n - 1)
    i0 = jnp.clip(jnp.floor(src), 0, in_n - 1).astype(jnp.int32)
    i1 = jnp.clip(i0 + 1, 0, in_n - 1)
    t = src - i0.astype(jnp.float32)
    return t, i0, i1


def _bilinear_upsample_ac(x, H, W):
    n, c, h, w = x.shape
    ty, y0, y1 = _interp_coords(H, h)
    tx, x0, x1 = _interp_coords(W, w)
    top = x[:, :, y0, :]
    bot = x[:, :, y1, :]
    rows = top * (1.0 - ty)[None, None, :, None] + bot * ty[None, None, :, None]
    left = rows[:, :, :, x0]
    right = rows[:, :, :, x1]
    return left * (1.0 - tx)[None, None, None, :] + right * tx[None, None, None, :]


def _grid_sample_ref(x, flow, h, w):
    n, c, _, _ = x.shape
    base = _make_base_grid(h, w).reshape(h, w, 2)
    gx = base[None, :, :, 0] + flow[:, 0] / w
    gy = base[None, :, :, 1] + flow[:, 1] / h
    ix = (gx + 1.0) * (0.5 * w) - 0.5
    iy = (gy + 1.0) * (0.5 * h) - 0.5
    ix0 = jnp.floor(ix)
    iy0 = jnp.floor(iy)
    out = jnp.zeros((n, c, h, w), jnp.float32)
    bidx = jnp.arange(n)[:, None, None, None]
    cidx = jnp.arange(c)[None, :, None, None]
    for dx in (0, 1):
        for dy in (0, 1):
            cx = ix0 + dx
            cy = iy0 + dy
            wgt = (1.0 - jnp.abs(ix - cx)) * (1.0 - jnp.abs(iy - cy))
            valid = (cx >= 0) & (cx <= w - 1) & (cy >= 0) & (cy <= h - 1)
            wgt = jnp.where(valid, wgt, 0.0)
            cxi = jnp.clip(cx, 0, w - 1).astype(jnp.int32)
            cyi = jnp.clip(cy, 0, h - 1).astype(jnp.int32)
            gathered = x[bidx, cidx, cyi[:, None, :, :], cxi[:, None, :, :]]
            out = out + wgt[:, None, :, :] * gathered
    return out


def reference_forward(x_nchw, raw):
    n, c, h, w = x_nchw.shape

    def down(x, wt, b, gamma, beta, mean, var):
        y = lax.conv_general_dilated(
            x, wt, window_strides=(2, 2), padding='VALID',
            dimension_numbers=('NCHW', 'OIHW', 'NCHW'),
            feature_group_count=c, precision=lax.Precision.HIGHEST)
        y = y + b[None, :, None, None]
        y = gamma[None, :, None, None] * (y - mean[None, :, None, None]) \
            / jnp.sqrt(var + BN_EPS)[None, :, None, None] + beta[None, :, None, None]
        return jnp.maximum(y, 0.0)

    d = down(x_nchw, raw['w_dw1'], raw['b_dw1'], raw['bn1_g'], raw['bn1_b'],
             raw['bn1_mean'], raw['bn1_var'])
    d = down(d, raw['w_dw2'], raw['b_dw2'], raw['bn2_g'], raw['bn2_b'],
             raw['bn2_mean'], raw['bn2_var'])
    up = _bilinear_upsample_ac(d, h, w)
    cat = jnp.concatenate([x_nchw, up], axis=1)
    flow = lax.conv_general_dilated(
        cat, raw['w_flow'], window_strides=(1, 1), padding=((1, 1), (1, 1)),
        dimension_numbers=('NCHW', 'OIHW', 'NCHW'),
        precision=lax.Precision.HIGHEST)
    warp = _grid_sample_ref(x_nchw, flow, h, w)
    return warp, x_nchw - warp


# ---------------------------------------------------------------------------

if __name__ == "__main__":
    key = jax.random.PRNGKey(0)
    N, C, H, W = 2, 4, 16, 16        # proj_dim = 8 -> inplane = proj_dim // 2 = 4
    kx, kp = jax.random.split(key)
    x = jax.random.normal(kx, (N, C, H, W), jnp.float32)
    raw = init_raw_params(kp, C)

    warp, edge = body_head_forward(x, raw)
    jax.block_until_ready((warp, edge))

    ref_warp, ref_edge = reference_forward(x, raw)
    np.testing.assert_allclose(np.asarray(warp), np.asarray(ref_warp), rtol=2e-2, atol=2e-2)
    np.testing.assert_allclose(np.asarray(edge), np.asarray(ref_edge), rtol=2e-2, atol=2e-2)

    print("KERNEL_OK")
</pallas_src>

<mosaic_0001>
module attributes {stable_mosaic.version = 11 : i64} {
  func.func @_body_head_kernel(%arg0: i32, %arg1: memref<1x4x256xf32, #tpu.memory_space<vmem>>, %arg2: memref<1x64x16xf32, #tpu.memory_space<vmem>>, %arg3: memref<1x16x8x8xf32, #tpu.memory_space<vmem>>, %arg4: memref<9x4x1x1xf32, #tpu.memory_space<vmem>>, %arg5: memref<4x1x1xf32, #tpu.memory_space<vmem>>, %arg6: memref<4x3x3xf32, #tpu.memory_space<vmem>>, %arg7: memref<4x1xf32, #tpu.memory_space<vmem>>, %arg8: memref<9x256xf32, #tpu.memory_space<vmem>>, %arg9: memref<2x72xf32, #tpu.memory_space<vmem>>, %arg10: memref<2x256xf32, #tpu.memory_space<vmem>>, %arg11: memref<9x1x256xf32, #tpu.memory_space<vmem>>, %arg12: memref<1x4x256xf32, #tpu.memory_space<vmem>>, %arg13: memref<1x4x256xf32, #tpu.memory_space<vmem>>, %arg14: memref<8x512xf32, #tpu.memory_space<vmem>>) attributes {dimension_semantics = [#tpu.dimension_semantics<parallel>], iteration_bounds = array<i64: 2>, scalar_prefetch = 0 : i64, scratch_operands = 1 : i64, tpu.core_type = #tpu.core_type<tc>, window_params = [{transform_indices = @transform_0, window_bounds = array<i64: 1, 4, 256>}, {transform_indices = @transform_1, window_bounds = array<i64: 1, 64, 16>}, {transform_indices = @transform_2, window_bounds = array<i64: 1, 16, 8, 8>}, {pipeline_mode = #tpu.pipeline_mode<synchronous>, transform_indices = @transform_3, window_bounds = array<i64: 9, 4, 1, 1>}, {pipeline_mode = #tpu.pipeline_mode<synchronous>, transform_indices = @transform_4, window_bounds = array<i64: 4, 1, 1>}, {pipeline_mode = #tpu.pipeline_mode<synchronous>, transform_indices = @transform_5, window_bounds = array<i64: 4, 3, 3>}, {pipeline_mode = #tpu.pipeline_mode<synchronous>, transform_indices = @transform_6, window_bounds = array<i64: 4, 1>}, {pipeline_mode = #tpu.pipeline_mode<synchronous>, transform_indices = @transform_7, window_bounds = array<i64: 9, 256>}, {pipeline_mode = #tpu.pipeline_mode<synchronous>, transform_indices = @transform_8, window_bounds = array<i64: 2, 72>}, {pipeline_mode = #tpu.pipeline_mode<synchronous>, transform_indices = @transform_9, window_bounds = array<i64: 2, 256>}, {pipeline_mode = #tpu.pipeline_mode<synchronous>, transform_indices = @transform_10, window_bounds = array<i64: 9, 1, 256>}, {transform_indices = @transform_11, window_bounds = array<i64: 1, 4, 256>}, {transform_indices = @transform_12, window_bounds = array<i64: 1, 4, 256>}]} {
    %cst = arith.constant 0.000000e+00 : f32
    %0 = vector.broadcast %cst : f32 to vector<8x128xf32>
    %c0 = arith.constant 0 : index
    %c0_0 = arith.constant 0 : index
    %1 = vector.load %arg14[%c0, %c0_0] : memref<8x512xf32, #tpu.memory_space<vmem>>, vector<8x128xf32>
    tpu.vector_store %arg14[%c0, %c0_0], %0 {strides = array<i32>} : memref<8x512xf32, #tpu.memory_space<vmem>>, vector<8x128xf32>,
    %cst_1 = arith.constant 0.000000e+00 : f32
    %2 = vector.broadcast %cst_1 : f32 to vector<8x128xf32>
    %c0_2 = arith.constant 0 : index
    %c384 = arith.constant 384 : index
    %3 = vector.load %arg14[%c0_2, %c384] : memref<8x512xf32, #tpu.memory_space<vmem>>, vector<8x128xf32>
    tpu.vector_store %arg14[%c0_2, %c384], %2 {strides = array<i32>} : memref<8x512xf32, #tpu.memory_space<vmem>>, vector<8x128xf32>,
    %c0_3 = arith.constant 0 : index
    %c0_4 = arith.constant 0 : index
    %c0_5 = arith.constant 0 : index
    %4 = vector.load %arg1[%c0_3, %c0_4, %c0_5] : memref<1x4x256xf32, #tpu.memory_space<vmem>>, vector<1x4x256xf32>
    %5 = vector.shape_cast %4 : vector<1x4x256xf32> to vector<4x256xf32>
    %c0_6 = arith.constant 0 : index
    %c128 = arith.constant 128 : index
    %6 = vector.load %arg14[%c0_6, %c128] : memref<8x512xf32, #tpu.memory_space<vmem>>, vector<4x256xf32>
    tpu.vector_store %arg14[%c0_6, %c128], %5 {strides = array<i32>} : memref<8x512xf32, #tpu.memory_space<vmem>>, vector<4x256xf32>,
    %cst_7 = arith.constant 0.000000e+00 : f32
    %7 = vector.broadcast %cst_7 : f32 to vector<4x7x7xf32>
    %c0_8 = arith.constant 0 : index
    %c0_9 = arith.constant 0 : index
    %c0_10 = arith.constant 0 : index
    %c0_11 = arith.constant 0 : index
    %8 = vector.load %arg3[%c0_8, %c0_9, %c0_10, %c0_11] : memref<1x16x8x8xf32, #tpu.memory_space<vmem>>, vector<1x4x7x7xf32>
    %9 = vector.shape_cast %8 : vector<1x4x7x7xf32> to vector<4x7x7xf32>
    %c0_12 = arith.constant 0 : index
    %c0_13 = arith.constant 0 : index
    %c0_14 = arith.constant 0 : index
    %c0_15 = arith.constant 0 : index
    %10 = vector.load %arg4[%c0_12, %c0_13, %c0_14, %c0_15] : memref<9x4x1x1xf32, #tpu.memory_space<vmem>>, vector<1x4x1x1xf32>
    %11 = vector.shape_cast %10 : vector<1x4x1x1xf32> to vector<4x1x1xf32>
    %12 = vector.broadcast %11 : vector<4x1x1xf32> to vector<4x7x7xf32>
    %13 = arith.mulf %9, %12 : vector<4x7x7xf32>
    %14 = arith.addf %7, %13 : vector<4x7x7xf32>
    %c0_16 = arith.constant 0 : index
    %c4 = arith.constant 4 : index
    %c0_17 = arith.constant 0 : index
    %c0_18 = arith.constant 0 : index
    %15 = vector.load %arg3[%c0_16, %c4, %c0_17, %c0_18] : memref<1x16x8x8xf32, #tpu.memory_space<vmem>>, vector<1x4x7x7xf32>
    %16 = vector.shape_cast %15 : vector<1x4x7x7xf32> to vector<4x7x7xf32>
    %c1 = arith.constant 1 : index
    %c0_19 = arith.constant 0 : index
    %c0_20 = arith.constant 0 : index
    %c0_21 = arith.constant 0 : index
    %17 = vector.load %arg4[%c1, %c0_19, %c0_20, %c0_21] : memref<9x4x1x1xf32, #tpu.memory_space<vmem>>, vector<1x4x1x1xf32>
    %18 = vector.shape_cast %17 : vector<1x4x1x1xf32> to vector<4x1x1xf32>
    %19 = vector.broadcast %18 : vector<4x1x1xf32> to vector<4x7x7xf32>
    %20 = arith.mulf %16, %19 : vector<4x7x7xf32>
    %21 = arith.addf %14, %20 : vector<4x7x7xf32>
    %c0_22 = arith.constant 0 : index
    %c0_23 = arith.constant 0 : index
    %c0_24 = arith.constant 0 : index
    %c1_25 = arith.constant 1 : index
    %22 = vector.load %arg3[%c0_22, %c0_23, %c0_24, %c1_25] : memref<1x16x8x8xf32, #tpu.memory_space<vmem>>, vector<1x4x7x7xf32>
    %23 = vector.shape_cast %22 : vector<1x4x7x7xf32> to vector<4x7x7xf32>
    %c2 = arith.constant 2 : index
    %c0_26 = arith.constant 0 : index
    %c0_27 = arith.constant 0 : index
    %c0_28 = arith.constant 0 : index
    %24 = vector.load %arg4[%c2, %c0_26, %c0_27, %c0_28] : memref<9x4x1x1xf32, #tpu.memory_space<vmem>>, vector<1x4x1x1xf32>
    %25 = vector.shape_cast %24 : vector<1x4x1x1xf32> to vector<4x1x1xf32>
    %26 = vector.broadcast %25 : vector<4x1x1xf32> to vector<4x7x7xf32>
    %27 = arith.mulf %23, %26 : vector<4x7x7xf32>
    %28 = arith.addf %21, %27 : vector<4x7x7xf32>
    %c0_29 = arith.constant 0 : index
    %c8 = arith.constant 8 : index
    %c0_30 = arith.constant 0 : index
    %c0_31 = arith.constant 0 : index
    %29 = vector.load %arg3[%c0_29, %c8, %c0_30, %c0_31] : memref<1x16x8x8xf32, #tpu.memory_space<vmem>>, vector<1x4x7x7xf32>
    %30 = vector.shape_cast %29 : vector<1x4x7x7xf32> to vector<4x7x7xf32>
    %c3 = arith.constant 3 : index
    %c0_32 = arith.constant 0 : index
    %c0_33 = arith.constant 0 : index
    %c0_34 = arith.constant 0 : index
    %31 = vector.load %arg4[%c3, %c0_32, %c0_33, %c0_34] : memref<9x4x1x1xf32, #tpu.memory_space<vmem>>, vector<1x4x1x1xf32>
    %32 = vector.shape_cast %31 : vector<1x4x1x1xf32> to vector<4x1x1xf32>
    %33 = vector.broadcast %32 : vector<4x1x1xf32> to vector<4x7x7xf32>
    %34 = arith.mulf %30, %33 : vector<4x7x7xf32>
    %35 = arith.addf %28, %34 : vector<4x7x7xf32>
    %c0_35 = arith.constant 0 : index
    %c12 = arith.constant 12 : index
    %c0_36 = arith.constant 0 : index
    %c0_37 = arith.constant 0 : index
    %36 = vector.load %arg3[%c0_35, %c12, %c0_36, %c0_37] : memref<1x16x8x8xf32, #tpu.memory_space<vmem>>, vector<1x4x7x7xf32>
    %37 = vector.shape_cast %36 : vector<1x4x7x7xf32> to vector<4x7x7xf32>
    %c4_38 = arith.constant 4 : index
    %c0_39 = arith.constant 0 : index
    %c0_40 = arith.constant 0 : index
    %c0_41 = arith.constant 0 : index
    %38 = vector.load %arg4[%c4_38, %c0_39, %c0_40, %c0_41] : memref<9x4x1x1xf32, #tpu.memory_space<vmem>>, vector<1x4x1x1xf32>
    %39 = vector.shape_cast %38 : vector<1x4x1x1xf32> to vector<4x1x1xf32>
    %40 = vector.broadcast %39 : vector<4x1x1xf32> to vector<4x7x7xf32>
    %41 = arith.mulf %37, %40 : vector<4x7x7xf32>
    %42 = arith.addf %35, %41 : vector<4x7x7xf32>
    %c0_42 = arith.constant 0 : index
    %c8_43 = arith.constant 8 : index
    %c0_44 = arith.constant 0 : index
    %c1_45 = arith.constant 1 : index
    %43 = vector.load %arg3[%c0_42, %c8_43, %c0_44, %c1_45] : memref<1x16x8x8xf32, #tpu.memory_space<vmem>>, vector<1x4x7x7xf32>
    %44 = vector.shape_cast %43 : vector<1x4x7x7xf32> to vector<4x7x7xf32>
    %c5 = arith.constant 5 : index
    %c0_46 = arith.constant 0 : index
    %c0_47 = arith.constant 0 : index
    %c0_48 = arith.constant 0 : index
    %45 = vector.load %arg4[%c5, %c0_46, %c0_47, %c0_48] : memref<9x4x1x1xf32, #tpu.memory_space<vmem>>, vector<1x4x1x1xf32>
    %46 = vector.shape_cast %45 : vector<1x4x1x1xf32> to vector<4x1x1xf32>
    %47 = vector.broadcast %46 : vector<4x1x1xf32> to vector<4x7x7xf32>
    %48 = arith.mulf %44, %47 : vector<4x7x7xf32>
    %49 = arith.addf %42, %48 : vector<4x7x7xf32>
    %c0_49 = arith.constant 0 : index
    %c0_50 = arith.constant 0 : index
    %c1_51 = arith.constant 1 : index
    %c0_52 = arith.constant 0 : index
    %50 = vector.load %arg3[%c0_49, %c0_50, %c1_51, %c0_52] : memref<1x16x8x8xf32, #tpu.memory_space<vmem>>, vector<1x4x7x7xf32>
    %51 = vector.shape_cast %50 : vector<1x4x7x7xf32> to vector<4x7x7xf32>
    %c6 = arith.constant 6 : index
    %c0_53 = arith.constant 0 : index
    %c0_54 = arith.constant 0 : index
    %c0_55 = arith.constant 0 : index
    %52 = vector.load %arg4[%c6, %c0_53, %c0_54, %c0_55] : memref<9x4x1x1xf32, #tpu.memory_space<vmem>>, vector<1x4x1x1xf32>
    %53 = vector.shape_cast %52 : vector<1x4x1x1xf32> to vector<4x1x1xf32>
    %54 = vector.broadcast %53 : vector<4x1x1xf32> to vector<4x7x7xf32>
    %55 = arith.mulf %51, %54 : vector<4x7x7xf32>
    %56 = arith.addf %49, %55 : vector<4x7x7xf32>
    %c0_56 = arith.constant 0 : index
    %c4_57 = arith.constant 4 : index
    %c1_58 = arith.constant 1 : index
    %c0_59 = arith.constant 0 : index
    %57 = vector.load %arg3[%c0_56, %c4_57, %c1_58, %c0_59] : memref<1x16x8x8xf32, #tpu.memory_space<vmem>>, vector<1x4x7x7xf32>
    %58 = vector.shape_cast %57 : vector<1x4x7x7xf32> to vector<4x7x7xf32>
    %c7 = arith.constant 7 : index
    %c0_60 = arith.constant 0 : index
    %c0_61 = arith.constant 0 : index
    %c0_62 = arith.constant 0 : index
    %59 = vector.load %arg4[%c7, %c0_60, %c0_61, %c0_62] : memref<9x4x1x1xf32, #tpu.memory_space<vmem>>, vector<1x4x1x1xf32>
    %60 = vector.shape_cast %59 : vector<1x4x1x1xf32> to vector<4x1x1xf32>
    %61 = vector.broadcast %60 : vector<4x1x1xf32> to vector<4x7x7xf32>
    %62 = arith.mulf %58, %61 : vector<4x7x7xf32>
    %63 = arith.addf %56, %62 : vector<4x7x7xf32>
    %c0_63 = arith.constant 0 : index
    %c0_64 = arith.constant 0 : index
    %c1_65 = arith.constant 1 : index
    %c1_66 = arith.constant 1 : index
    %64 = vector.load %arg3[%c0_63, %c0_64, %c1_65, %c1_66] : memref<1x16x8x8xf32, #tpu.memory_space<vmem>>, vector<1x4x7x7xf32>
    %65 = vector.shape_cast %64 : vector<1x4x7x7xf32> to vector<4x7x7xf32>
    %c8_67 = arith.constant 8 : index
    %c0_68 = arith.constant 0 : index
    %c0_69 = arith.constant 0 : index
    %c0_70 = arith.constant 0 : index
    %66 = vector.load %arg4[%c8_67, %c0_68, %c0_69, %c0_70] : memref<9x4x1x1xf32, #tpu.memory_space<vmem>>, vector<1x4x1x1xf32>
    %67 = vector.shape_cast %66 : vector<1x4x1x1xf32> to vector<4x1x1xf32>
    %68 = vector.broadcast %67 : vector<4x1x1xf32> to vector<4x7x7xf32>
    %69 = arith.mulf %65, %68 : vector<4x7x7xf32>
    %70 = arith.addf %63, %69 : vector<4x7x7xf32>
    %c0_71 = arith.constant 0 : index
    %c0_72 = arith.constant 0 : index
    %c0_73 = arith.constant 0 : index
    %71 = vector.load %arg5[%c0_71, %c0_72, %c0_73] : memref<4x1x1xf32, #tpu.memory_space<vmem>>, vector<4x1x1xf32>
    %72 = vector.broadcast %71 : vector<4x1x1xf32> to vector<4x7x7xf32>
    %73 = arith.addf %70, %72 : vector<4x7x7xf32>
    %cst_74 = arith.constant 0.000000e+00 : f32
    %74 = vector.broadcast %cst_74 : f32 to vector<4x7x7xf32>
    %75 = arith.maximumf %73, %74 : vector<4x7x7xf32>
    %c0_75 = arith.constant 0 : index
    %c0_76 = arith.constant 0 : index
    %c0_77 = arith.constant 0 : index
    %76 = vector.load %arg6[%c0_75, %c0_76, %c0_77] : memref<4x3x3xf32, #tpu.memory_space<vmem>>, vector<4x3x3xf32>
    %c0_78 = arith.constant 0 : index
    %c0_79 = arith.constant 0 : index
    %77 = vector.load %arg7[%c0_78, %c0_79] : memref<4x1xf32, #tpu.memory_space<vmem>>, vector<4x1xf32>
    %cst_80 = arith.constant 0.000000e+00 : f32
    %78 = vector.broadcast %cst_80 : f32 to vector<4x256xf32>
    %79 = vector.extract_strided_slice %75 {offsets = [0, 0, 0], sizes = [4, 3, 3], strides = [1, 1, 1]} : vector<4x7x7xf32> to vector<4x3x3xf32>
    %80 = arith.mulf %79, %76 : vector<4x3x3xf32>
    %cst_81 = arith.constant dense<0.000000e+00> : vector<4x3xf32>
    %81 = vector.multi_reduction <add>, %80, %cst_81 [2] : vector<4x3x3xf32> to vector<4x3xf32>
    %cst_82 = arith.constant dense<0.000000e+00> : vector<4xf32>
    %82 = vector.multi_reduction <add>, %81, %cst_82 [1] : vector<4x3xf32> to vector<4xf32>
    %83 = vector.shape_cast %82 : vector<4xf32> to vector<4x1xf32>
    %84 = arith.addf %83, %77 : vector<4x1xf32>
    %cst_83 = arith.constant 0.000000e+00 : f32
    %85 = vector.broadcast %cst_83 : f32 to vector<4x1xf32>
    %86 = arith.maximumf %84, %85 : vector<4x1xf32>
    %c0_84 = arith.constant 0 : index
    %c0_85 = arith.constant 0 : index
    %87 = vector.load %arg8[%c0_84, %c0_85] : memref<9x256xf32, #tpu.memory_space<vmem>>, vector<1x256xf32>
    %88 = vector.broadcast %86 : vector<4x1xf32> to vector<4x256xf32>
    %89 = vector.broadcast %87 : vector<1x256xf32> to vector<4x256xf32>
    %90 = arith.mulf %88, %89 : vector<4x256xf32>
    %91 = arith.addf %78, %90 : vector<4x256xf32>
    %92 = vector.extract_strided_slice %75 {offsets = [0, 0, 2], sizes = [4, 3, 3], strides = [1, 1, 1]} : vector<4x7x7xf32> to vector<4x3x3xf32>
    %93 = arith.mulf %92, %76 : vector<4x3x3xf32>
    %cst_86 = arith.constant dense<0.000000e+00> : vector<4x3xf32>
    %94 = vector.multi_reduction <add>, %93, %cst_86 [2] : vector<4x3x3xf32> to vector<4x3xf32>
    %cst_87 = arith.constant dense<0.000000e+00> : vector<4xf32>
    %95 = vector.multi_reduction <add>, %94, %cst_87 [1] : vector<4x3xf32> to vector<4xf32>
    %96 = vector.shape_cast %95 : vector<4xf32> to vector<4x1xf32>
    %97 = arith.addf %96, %77 : vector<4x1xf32>
    %cst_88 = arith.constant 0.000000e+00 : f32
    %98 = vector.broadcast %cst_88 : f32 to vector<4x1xf32>
    %99 = arith.maximumf %97, %98 : vector<4x1xf32>
    %c1_89 = arith.constant 1 : index
    %c0_90 = arith.constant 0 : index
    %100 = vector.load %arg8[%c1_89, %c0_90] : memref<9x256xf32, #tpu.memory_space<vmem>>, vector<1x256xf32>
    %101 = vector.broadcast %99 : vector<4x1xf32> to vector<4x256xf32>
    %102 = vector.broadcast %100 : vector<1x256xf32> to vector<4x256xf32>
    %103 = arith.mulf %101, %102 : vector<4x256xf32>
    %104 = arith.addf %91, %103 : vector<4x256xf32>
    %105 = vector.extract_strided_slice %75 {offsets = [0, 0, 4], sizes = [4, 3, 3], strides = [1, 1, 1]} : vector<4x7x7xf32> to vector<4x3x3xf32>
    %106 = arith.mulf %105, %76 : vector<4x3x3xf32>
    %cst_91 = arith.constant dense<0.000000e+00> : vector<4x3xf32>
    %107 = vector.multi_reduction <add>, %106, %cst_91 [2] : vector<4x3x3xf32> to vector<4x3xf32>
    %cst_92 = arith.constant dense<0.000000e+00> : vector<4xf32>
    %108 = vector.multi_reduction <add>, %107, %cst_92 [1] : vector<4x3xf32> to vector<4xf32>
    %109 = vector.shape_cast %108 : vector<4xf32> to vector<4x1xf32>
    %110 = arith.addf %109, %77 : vector<4x1xf32>
    %cst_93 = arith.constant 0.000000e+00 : f32
    %111 = vector.broadcast %cst_93 : f32 to vector<4x1xf32>
    %112 = arith.maximumf %110, %111 : vector<4x1xf32>
    %c2_94 = arith.constant 2 : index
    %c0_95 = arith.constant 0 : index
    %113 = vector.load %arg8[%c2_94, %c0_95] : memref<9x256xf32, #tpu.memory_space<vmem>>, vector<1x256xf32>
    %114 = vector.broadcast %112 : vector<4x1xf32> to vector<4x256xf32>
    %115 = vector.broadcast %113 : vector<1x256xf32> to vector<4x256xf32>
    %116 = arith.mulf %114, %115 : vector<4x256xf32>
    %117 = arith.addf %104, %116 : vector<4x256xf32>
    %118 = vector.extract_strided_slice %75 {offsets = [0, 2, 0], sizes = [4, 3, 3], strides = [1, 1, 1]} : vector<4x7x7xf32> to vector<4x3x3xf32>
    %119 = arith.mulf %118, %76 : vector<4x3x3xf32>
    %cst_96 = arith.constant dense<0.000000e+00> : vector<4x3xf32>
    %120 = vector.multi_reduction <add>, %119, %cst_96 [2] : vector<4x3x3xf32> to vector<4x3xf32>
    %cst_97 = arith.constant dense<0.000000e+00> : vector<4xf32>
    %121 = vector.multi_reduction <add>, %120, %cst_97 [1] : vector<4x3xf32> to vector<4xf32>
    %122 = vector.shape_cast %121 : vector<4xf32> to vector<4x1xf32>
    %123 = arith.addf %122, %77 : vector<4x1xf32>
    %cst_98 = arith.constant 0.000000e+00 : f32
    %124 = vector.broadcast %cst_98 : f32 to vector<4x1xf32>
    %125 = arith.maximumf %123, %124 : vector<4x1xf32>
    %c3_99 = arith.constant 3 : index
    %c0_100 = arith.constant 0 : index
    %126 = vector.load %arg8[%c3_99, %c0_100] : memref<9x256xf32, #tpu.memory_space<vmem>>, vector<1x256xf32>
    %127 = vector.broadcast %125 : vector<4x1xf32> to vector<4x256xf32>
    %128 = vector.broadcast %126 : vector<1x256xf32> to vector<4x256xf32>
    %129 = arith.mulf %127, %128 : vector<4x256xf32>
    %130 = arith.addf %117, %129 : vector<4x256xf32>
    %131 = vector.extract_strided_slice %75 {offsets = [0, 2, 2], sizes = [4, 3, 3], strides = [1, 1, 1]} : vector<4x7x7xf32> to vector<4x3x3xf32>
    %132 = arith.mulf %131, %76 : vector<4x3x3xf32>
    %cst_101 = arith.constant dense<0.000000e+00> : vector<4x3xf32>
    %133 = vector.multi_reduction <add>, %132, %cst_101 [2] : vector<4x3x3xf32> to vector<4x3xf32>
    %cst_102 = arith.constant dense<0.000000e+00> : vector<4xf32>
    %134 = vector.multi_reduction <add>, %133, %cst_102 [1] : vector<4x3xf32> to vector<4xf32>
    %135 = vector.shape_cast %134 : vector<4xf32> to vector<4x1xf32>
    %136 = arith.addf %135, %77 : vector<4x1xf32>
    %cst_103 = arith.constant 0.000000e+00 : f32
    %137 = vector.broadcast %cst_103 : f32 to vector<4x1xf32>
    %138 = arith.maximumf %136, %137 : vector<4x1xf32>
    %c4_104 = arith.constant 4 : index
    %c0_105 = arith.constant 0 : index
    %139 = vector.load %arg8[%c4_104, %c0_105] : memref<9x256xf32, #tpu.memory_space<vmem>>, vector<1x256xf32>
    %140 = vector.broadcast %138 : vector<4x1xf32> to vector<4x256xf32>
    %141 = vector.broadcast %139 : vector<1x256xf32> to vector<4x256xf32>
    %142 = arith.mulf %140, %141 : vector<4x256xf32>
    %143 = arith.addf %130, %142 : vector<4x256xf32>
    %144 = vector.extract_strided_slice %75 {offsets = [0, 2, 4], sizes = [4, 3, 3], strides = [1, 1, 1]} : vector<4x7x7xf32> to vector<4x3x3xf32>
    %145 = arith.mulf %144, %76 : vector<4x3x3xf32>
    %cst_106 = arith.constant dense<0.000000e+00> : vector<4x3xf32>
    %146 = vector.multi_reduction <add>, %145, %cst_106 [2] : vector<4x3x3xf32> to vector<4x3xf32>
    %cst_107 = arith.constant dense<0.000000e+00> : vector<4xf32>
    %147 = vector.multi_reduction <add>, %146, %cst_107 [1] : vector<4x3xf32> to vector<4xf32>
    %148 = vector.shape_cast %147 : vector<4xf32> to vector<4x1xf32>
    %149 = arith.addf %148, %77 : vector<4x1xf32>
    %cst_108 = arith.constant 0.000000e+00 : f32
    %150 = vector.broadcast %cst_108 : f32 to vector<4x1xf32>
    %151 = arith.maximumf %149, %150 : vector<4x1xf32>
    %c5_109 = arith.constant 5 : index
    %c0_110 = arith.constant 0 : index
    %152 = vector.load %arg8[%c5_109, %c0_110] : memref<9x256xf32, #tpu.memory_space<vmem>>, vector<1x256xf32>
    %153 = vector.broadcast %151 : vector<4x1xf32> to vector<4x256xf32>
    %154 = vector.broadcast %152 : vector<1x256xf32> to vector<4x256xf32>
    %155 = arith.mulf %153, %154 : vector<4x256xf32>
    %156 = arith.addf %143, %155 : vector<4x256xf32>
    %157 = vector.extract_strided_slice %75 {offsets = [0, 4, 0], sizes = [4, 3, 3], strides = [1, 1, 1]} : vector<4x7x7xf32> to vector<4x3x3xf32>
    %158 = arith.mulf %157, %76 : vector<4x3x3xf32>
    %cst_111 = arith.constant dense<0.000000e+00> : vector<4x3xf32>
    %159 = vector.multi_reduction <add>, %158, %cst_111 [2] : vector<4x3x3xf32> to vector<4x3xf32>
    %cst_112 = arith.constant dense<0.000000e+00> : vector<4xf32>
    %160 = vector.multi_reduction <add>, %159, %cst_112 [1] : vector<4x3xf32> to vector<4xf32>
    %161 = vector.shape_cast %160 : vector<4xf32> to vector<4x1xf32>
    %162 = arith.addf %161, %77 : vector<4x1xf32>
    %cst_113 = arith.constant 0.000000e+00 : f32
    %163 = vector.broadcast %cst_113 : f32 to vector<4x1xf32>
    %164 = arith.maximumf %162, %163 : vector<4x1xf32>
    %c6_114 = arith.constant 6 : index
    %c0_115 = arith.constant 0 : index
    %165 = vector.load %arg8[%c6_114, %c0_115] : memref<9x256xf32, #tpu.memory_space<vmem>>, vector<1x256xf32>
    %166 = vector.broadcast %164 : vector<4x1xf32> to vector<4x256xf32>
    %167 = vector.broadcast %165 : vector<1x256xf32> to vector<4x256xf32>
    %168 = arith.mulf %166, %167 : vector<4x256xf32>
    %169 = arith.addf %156, %168 : vector<4x256xf32>
    %170 = vector.extract_strided_slice %75 {offsets = [0, 4, 2], sizes = [4, 3, 3], strides = [1, 1, 1]} : vector<4x7x7xf32> to vector<4x3x3xf32>
    %171 = arith.mulf %170, %76 : vector<4x3x3xf32>
    %cst_116 = arith.constant dense<0.000000e+00> : vector<4x3xf32>
    %172 = vector.multi_reduction <add>, %171, %cst_116 [2] : vector<4x3x3xf32> to vector<4x3xf32>
    %cst_117 = arith.constant dense<0.000000e+00> : vector<4xf32>
    %173 = vector.multi_reduction <add>, %172, %cst_117 [1] : vector<4x3xf32> to vector<4xf32>
    %174 = vector.shape_cast %173 : vector<4xf32> to vector<4x1xf32>
    %175 = arith.addf %174, %77 : vector<4x1xf32>
    %cst_118 = arith.constant 0.000000e+00 : f32
    %176 = vector.broadcast %cst_118 : f32 to vector<4x1xf32>
    %177 = arith.maximumf %175, %176 : vector<4x1xf32>
    %c7_119 = arith.constant 7 : index
    %c0_120 = arith.constant 0 : index
    %178 = vector.load %arg8[%c7_119, %c0_120] : memref<9x256xf32, #tpu.memory_space<vmem>>, vector<1x256xf32>
    %179 = vector.broadcast %177 : vector<4x1xf32> to vector<4x256xf32>
    %180 = vector.broadcast %178 : vector<1x256xf32> to vector<4x256xf32>
    %181 = arith.mulf %179, %180 : vector<4x256xf32>
    %182 = arith.addf %169, %181 : vector<4x256xf32>
    %183 = vector.extract_strided_slice %75 {offsets = [0, 4, 4], sizes = [4, 3, 3], strides = [1, 1, 1]} : vector<4x7x7xf32> to vector<4x3x3xf32>
    %184 = arith.mulf %183, %76 : vector<4x3x3xf32>
    %cst_121 = arith.constant dense<0.000000e+00> : vector<4x3xf32>
    %185 = vector.multi_reduction <add>, %184, %cst_121 [2] : vector<4x3x3xf32> to vector<4x3xf32>
    %cst_122 = arith.constant dense<0.000000e+00> : vector<4xf32>
    %186 = vector.multi_reduction <add>, %185, %cst_122 [1] : vector<4x3xf32> to vector<4xf32>
    %187 = vector.shape_cast %186 : vector<4xf32> to vector<4x1xf32>
    %188 = arith.addf %187, %77 : vector<4x1xf32>
    %cst_123 = arith.constant 0.000000e+00 : f32
    %189 = vector.broadcast %cst_123 : f32 to vector<4x1xf32>
    %190 = arith.maximumf %188, %189 : vector<4x1xf32>
    %c8_124 = arith.constant 8 : index
    %c0_125 = arith.constant 0 : index
    %191 = vector.load %arg8[%c8_124, %c0_125] : memref<9x256xf32, #tpu.memory_space<vmem>>, vector<1x256xf32>
    %192 = vector.broadcast %190 : vector<4x1xf32> to vector<4x256xf32>
    %193 = vector.broadcast %191 : vector<1x256xf32> to vector<4x256xf32>
    %194 = arith.mulf %192, %193 : vector<4x256xf32>
    %195 = arith.addf %182, %194 : vector<4x256xf32>
    %c4_126 = arith.constant 4 : index
    %c128_127 = arith.constant 128 : index
    %196 = vector.load %arg14[%c4_126, %c128_127] : memref<8x512xf32, #tpu.memory_space<vmem>>, vector<4x256xf32>
    tpu.vector_store %arg14[%c4_126, %c128_127], %195 {strides = array<i32>} : memref<8x512xf32, #tpu.memory_space<vmem>>, vector<4x256xf32>,
    %c0_128 = arith.constant 0 : index
    %c111 = arith.constant 111 : index
    %197 = vector.load %arg14[%c0_128, %c111] : memref<8x512xf32, #tpu.memory_space<vmem>>, vector<8x256xf32>
    %c0_129 = arith.constant 0 : index
    %c0_130 = arith.constant 0 : index
    %c0_131 = arith.constant 0 : index
    %198 = vector.load %arg11[%c0_129, %c0_130, %c0_131] : memref<9x1x256xf32, #tpu.memory_space<vmem>>, vector<1x1x256xf32>
    %199 = vector.shape_cast %198 : vector<1x1x256xf32> to vector<1x256xf32>
    %200 = vector.broadcast %199 : vector<1x256xf32> to vector<8x256xf32>
    %201 = arith.mulf %197, %200 : vector<8x256xf32>
    %c0_132 = arith.constant 0 : index
    %c112 = arith.constant 112 : index
    %202 = vector.load %arg14[%c0_132, %c112] : memref<8x512xf32, #tpu.memory_space<vmem>>, vector<8x256xf32>
    %c1_133 = arith.constant 1 : index
    %c0_134 = arith.constant 0 : index
    %c0_135 = arith.constant 0 : index
    %203 = vector.load %arg11[%c1_133, %c0_134, %c0_135] : memref<9x1x256xf32, #tpu.memory_space<vmem>>, vector<1x1x256xf32>
    %204 = vector.shape_cast %203 : vector<1x1x256xf32> to vector<1x256xf32>
    %205 = vector.broadcast %204 : vector<1x256xf32> to vector<8x256xf32>
    %206 = arith.mulf %202, %205 : vector<8x256xf32>
    %c0_136 = arith.constant 0 : index
    %c113 = arith.constant 113 : index
    %207 = vector.load %arg14[%c0_136, %c113] : memref<8x512xf32, #tpu.memory_space<vmem>>, vector<8x256xf32>
    %c2_137 = arith.constant 2 : index
    %c0_138 = arith.constant 0 : index
    %c0_139 = arith.constant 0 : index
    %208 = vector.load %arg11[%c2_137, %c0_138, %c0_139] : memref<9x1x256xf32, #tpu.memory_space<vmem>>, vector<1x1x256xf32>
    %209 = vector.shape_cast %208 : vector<1x1x256xf32> to vector<1x256xf32>
    %210 = vector.broadcast %209 : vector<1x256xf32> to vector<8x256xf32>
    %211 = arith.mulf %207, %210 : vector<8x256xf32>
    %c0_140 = arith.constant 0 : index
    %c127 = arith.constant 127 : index
    %212 = vector.load %arg14[%c0_140, %c127] : memref<8x512xf32, #tpu.memory_space<vmem>>, vector<8x256xf32>
    %c3_141 = arith.constant 3 : index
    %c0_142 = arith.constant 0 : index
    %c0_143 = arith.constant 0 : index
    %213 = vector.load %arg11[%c3_141, %c0_142, %c0_143] : memref<9x1x256xf32, #tpu.memory_space<vmem>>, vector<1x1x256xf32>
    %214 = vector.shape_cast %213 : vector<1x1x256xf32> to vector<1x256xf32>
    %215 = vector.broadcast %214 : vector<1x256xf32> to vector<8x256xf32>
    %216 = arith.mulf %212, %215 : vector<8x256xf32>
    %c0_144 = arith.constant 0 : index
    %c128_145 = arith.constant 128 : index
    %217 = vector.load %arg14[%c0_144, %c128_145] : memref<8x512xf32, #tpu.memory_space<vmem>>, vector<8x256xf32>
    %c4_146 = arith.constant 4 : index
    %c0_147 = arith.constant 0 : index
    %c0_148 = arith.constant 0 : index
    %218 = vector.load %arg11[%c4_146, %c0_147, %c0_148] : memref<9x1x256xf32, #tpu.memory_space<vmem>>, vector<1x1x256xf32>
    %219 = vector.shape_cast %218 : vector<1x1x256xf32> to vector<1x256xf32>
    %220 = vector.broadcast %219 : vector<1x256xf32> to vector<8x256xf32>
    %221 = arith.mulf %217, %220 : vector<8x256xf32>
    %c0_149 = arith.constant 0 : index
    %c129 = arith.constant 129 : index
    %222 = vector.load %arg14[%c0_149, %c129] : memref<8x512xf32, #tpu.memory_space<vmem>>, vector<8x256xf32>
    %c5_150 = arith.constant 5 : index
    %c0_151 = arith.constant 0 : index
    %c0_152 = arith.constant 0 : index
    %223 = vector.load %arg11[%c5_150, %c0_151, %c0_152] : memref<9x1x256xf32, #tpu.memory_space<vmem>>, vector<1x1x256xf32>
    %224 = vector.shape_cast %223 : vector<1x1x256xf32> to vector<1x256xf32>
    %225 = vector.broadcast %224 : vector<1x256xf32> to vector<8x256xf32>
    %226 = arith.mulf %222, %225 : vector<8x256xf32>
    %c0_153 = arith.constant 0 : index
    %c143 = arith.constant 143 : index
    %227 = vector.load %arg14[%c0_153, %c143] : memref<8x512xf32, #tpu.memory_space<vmem>>, vector<8x256xf32>
    %c6_154 = arith.constant 6 : index
    %c0_155 = arith.constant 0 : index
    %c0_156 = arith.constant 0 : index
    %228 = vector.load %arg11[%c6_154, %c0_155, %c0_156] : memref<9x1x256xf32, #tpu.memory_space<vmem>>, vector<1x1x256xf32>
    %229 = vector.shape_cast %228 : vector<1x1x256xf32> to vector<1x256xf32>
    %230 = vector.broadcast %229 : vector<1x256xf32> to vector<8x256xf32>
    %231 = arith.mulf %227, %230 : vector<8x256xf32>
    %c0_157 = arith.constant 0 : index
    %c144 = arith.constant 144 : index
    %232 = vector.load %arg14[%c0_157, %c144] : memref<8x512xf32, #tpu.memory_space<vmem>>, vector<8x256xf32>
    %c7_158 = arith.constant 7 : index
    %c0_159 = arith.constant 0 : index
    %c0_160 = arith.constant 0 : index
    %233 = vector.load %arg11[%c7_158, %c0_159, %c0_160] : memref<9x1x256xf32, #tpu.memory_space<vmem>>, vector<1x1x256xf32>
    %234 = vector.shape_cast %233 : vector<1x1x256xf32> to vector<1x256xf32>
    %235 = vector.broadcast %234 : vector<1x256xf32> to vector<8x256xf32>
    %236 = arith.mulf %232, %235 : vector<8x256xf32>
    %c0_161 = arith.constant 0 : index
    %c145 = arith.constant 145 : index
    %237 = vector.load %arg14[%c0_161, %c145] : memref<8x512xf32, #tpu.memory_space<vmem>>, vector<8x256xf32>
    %c8_162 = arith.constant 8 : index
    %c0_163 = arith.constant 0 : index
    %c0_164 = arith.constant 0 : index
    %238 = vector.load %arg11[%c8_162, %c0_163, %c0_164] : memref<9x1x256xf32, #tpu.memory_space<vmem>>, vector<1x1x256xf32>
    %239 = vector.shape_cast %238 : vector<1x1x256xf32> to vector<1x256xf32>
    %240 = vector.broadcast %239 : vector<1x256xf32> to vector<8x256xf32>
    %241 = arith.mulf %237, %240 : vector<8x256xf32>
    %242 = tpu.concatenate %201, %206, %211, %216, %221, %226, %231, %236, %241 in 0 : vector<8x256xf32>, vector<8x256xf32>, vector<8x256xf32>, vector<8x256xf32>, vector<8x256xf32>, vector<8x256xf32>, vector<8x256xf32>, vector<8x256xf32>, vector<8x256xf32> -> vector<72x256xf32>
    %c0_165 = arith.constant 0 : index
    %c0_166 = arith.constant 0 : index
    %243 = vector.load %arg9[%c0_165, %c0_166] : memref<2x72xf32, #tpu.memory_space<vmem>>, vector<2x72xf32>
    %cst_167 = arith.constant dense<0.000000e+00> : vector<2x256xf32>
    %244 = tpu.matmul %243, %242, %cst_167 {dimension_numbers = #tpu.dot_dimension_numbers<[1], [0], [0], [1], [0, 0, 1, 1], [], []>, precision = #tpu.contract_precision<fp32>} : vector<2x72xf32>, vector<72x256xf32>, vector<2x256xf32> -> vector<2x256xf32>
    %c0_168 = arith.constant 0 : index
    %c0_169 = arith.constant 0 : index
    %245 = vector.load %arg10[%c0_168, %c0_169] : memref<2x256xf32, #tpu.memory_space<vmem>>, vector<1x256xf32>
    %246 = vector.extract_strided_slice %244 {offsets = [0, 0], sizes = [1, 256], strides = [1, 1]} : vector<2x256xf32> to vector<1x256xf32>
    %cst_170 = arith.constant 6.250000e-02 : f32
    %247 = vector.broadcast %cst_170 : f32 to vector<1x256xf32>
    %248 = arith.mulf %246, %247 : vector<1x256xf32>
    %249 = arith.addf %245, %248 : vector<1x256xf32>
    %c1_171 = arith.constant 1 : index
    %c0_172 = arith.constant 0 : index
    %250 = vector.load %arg10[%c1_171, %c0_172] : memref<2x256xf32, #tpu.memory_space<vmem>>, vector<1x256xf32>
    %251 = vector.extract_strided_slice %244 {offsets = [1, 0], sizes = [1, 256], strides = [1, 1]} : vector<2x256xf32> to vector<1x256xf32>
    %cst_173 = arith.constant 6.250000e-02 : f32
    %252 = vector.broadcast %cst_173 : f32 to vector<1x256xf32>
    %253 = arith.mulf %251, %252 : vector<1x256xf32>
    %254 = arith.addf %250, %253 : vector<1x256xf32>
    %cst_174 = arith.constant 1.000000e+00 : f32
    %255 = vector.broadcast %cst_174 : f32 to vector<1x256xf32>
    %256 = arith.addf %249, %255 : vector<1x256xf32>
    %cst_175 = arith.constant 8.000000e+00 : f32
    %257 = vector.broadcast %cst_175 : f32 to vector<1x256xf32>
    %258 = arith.mulf %256, %257 : vector<1x256xf32>
    %cst_176 = arith.constant 5.000000e-01 : f32
    %259 = vector.broadcast %cst_176 : f32 to vector<1x256xf32>
    %260 = arith.subf %258, %259 : vector<1x256xf32>
    %cst_177 = arith.constant 1.000000e+00 : f32
    %261 = vector.broadcast %cst_177 : f32 to vector<1x256xf32>
    %262 = arith.addf %254, %261 : vector<1x256xf32>
    %cst_178 = arith.constant 8.000000e+00 : f32
    %263 = vector.broadcast %cst_178 : f32 to vector<1x256xf32>
    %264 = arith.mulf %262, %263 : vector<1x256xf32>
    %cst_179 = arith.constant 5.000000e-01 : f32
    %265 = vector.broadcast %cst_179 : f32 to vector<1x256xf32>
    %266 = arith.subf %264, %265 : vector<1x256xf32>
    %267 = math.floor %260 : vector<1x256xf32>
    %268 = arith.subf %260, %267 : vector<1x256xf32>
    %269 = arith.fptosi %267 : vector<1x256xf32> to vector<1x256xi32>
    %c1_i32 = arith.constant 1 : i32
    %270 = vector.broadcast %c1_i32 : i32 to vector<1x256xi32>
    %271 = arith.addi %269, %270 : vector<1x256xi32>
    %c0_i32 = arith.constant 0 : i32
    %272 = vector.broadcast %c0_i32 : i32 to vector<1x256xi32>
    %273 = arith.cmpi sge, %269, %272 : vector<1x256xi32>
    %c15_i32 = arith.constant 15 : i32
    %274 = vector.broadcast %c15_i32 : i32 to vector<1x256xi32>
    %275 = arith.cmpi sle, %269, %274 : vector<1x256xi32>
    %276 = arith.andi %273, %275 : vector<1x256xi1>
    %cst_180 = arith.constant 1.000000e+00 : f32
    %277 = vector.broadcast %cst_180 : f32 to vector<1x256xf32>
    %278 = arith.subf %277, %268 : vector<1x256xf32>
    %cst_181 = arith.constant 0.000000e+00 : f32
    %279 = vector.broadcast %cst_181 : f32 to vector<1x256xf32>
    %280 = arith.select %276, %278, %279 : vector<1x256xi1>, vector<1x256xf32>
    %c0_i32_182 = arith.constant 0 : i32
    %281 = vector.broadcast %c0_i32_182 : i32 to vector<1x256xi32>
    %282 = arith.cmpi sge, %271, %281 : vector<1x256xi32>
    %c15_i32_183 = arith.constant 15 : i32
    %283 = vector.broadcast %c15_i32_183 : i32 to vector<1x256xi32>
    %284 = arith.cmpi sle, %271, %283 : vector<1x256xi32>
    %285 = arith.andi %282, %284 : vector<1x256xi1>
    %cst_184 = arith.constant 0.000000e+00 : f32
    %286 = vector.broadcast %cst_184 : f32 to vector<1x256xf32>
    %287 = arith.select %285, %268, %286 : vector<1x256xi1>, vector<1x256xf32>
    %c0_i32_185 = arith.constant 0 : i32
    %c15_i32_186 = arith.constant 15 : i32
    %288 = vector.broadcast %c0_i32_185 : i32 to vector<1x256xi32>
    %289 = arith.maxsi %288, %269 : vector<1x256xi32>
    %290 = vector.broadcast %c15_i32_186 : i32 to vector<1x256xi32>
    %291 = arith.minsi %290, %289 : vector<1x256xi32>
    %c0_i32_187 = arith.constant 0 : i32
    %c15_i32_188 = arith.constant 15 : i32
    %292 = vector.broadcast %c0_i32_187 : i32 to vector<1x256xi32>
    %293 = arith.maxsi %292, %271 : vector<1x256xi32>
    %294 = vector.broadcast %c15_i32_188 : i32 to vector<1x256xi32>
    %295 = arith.minsi %294, %293 : vector<1x256xi32>
    %296 = tpu.iota {dimensions = array<i32: 0>} : vector<16x256xi32>
    %297 = vector.broadcast %291 : vector<1x256xi32> to vector<16x256xi32>
    %298 = arith.cmpi eq, %296, %297 : vector<16x256xi32>
    %cst_189 = arith.constant 0.000000e+00 : f32
    %299 = vector.shape_cast %280 : vector<1x256xf32> to vector<1x256xf32>
    %300 = vector.broadcast %299 : vector<1x256xf32> to vector<16x256xf32>
    %301 = vector.broadcast %cst_189 : f32 to vector<16x256xf32>
    %302 = arith.select %298, %300, %301 : vector<16x256xi1>, vector<16x256xf32>
    %303 = vector.broadcast %295 : vector<1x256xi32> to vector<16x256xi32>
    %304 = arith.cmpi eq, %296, %303 : vector<16x256xi32>
    %cst_190 = arith.constant 0.000000e+00 : f32
    %305 = vector.shape_cast %287 : vector<1x256xf32> to vector<1x256xf32>
    %306 = vector.broadcast %305 : vector<1x256xf32> to vector<16x256xf32>
    %307 = vector.broadcast %cst_190 : f32 to vector<16x256xf32>
    %308 = arith.select %304, %306, %307 : vector<16x256xi1>, vector<16x256xf32>
    %309 = arith.addf %302, %308 : vector<16x256xf32>
    %310 = math.floor %266 : vector<1x256xf32>
    %311 = arith.subf %266, %310 : vector<1x256xf32>
    %312 = arith.fptosi %310 : vector<1x256xf32> to vector<1x256xi32>
    %c1_i32_191 = arith.constant 1 : i32
    %313 = vector.broadcast %c1_i32_191 : i32 to vector<1x256xi32>
    %314 = arith.addi %312, %313 : vector<1x256xi32>
    %c0_i32_192 = arith.constant 0 : i32
    %315 = vector.broadcast %c0_i32_192 : i32 to vector<1x256xi32>
    %316 = arith.cmpi sge, %312, %315 : vector<1x256xi32>
    %c15_i32_193 = arith.constant 15 : i32
    %317 = vector.broadcast %c15_i32_193 : i32 to vector<1x256xi32>
    %318 = arith.cmpi sle, %312, %317 : vector<1x256xi32>
    %319 = arith.andi %316, %318 : vector<1x256xi1>
    %cst_194 = arith.constant 1.000000e+00 : f32
    %320 = vector.broadcast %cst_194 : f32 to vector<1x256xf32>
    %321 = arith.subf %320, %311 : vector<1x256xf32>
    %cst_195 = arith.constant 0.000000e+00 : f32
    %322 = vector.broadcast %cst_195 : f32 to vector<1x256xf32>
    %323 = arith.select %319, %321, %322 : vector<1x256xi1>, vector<1x256xf32>
    %c0_i32_196 = arith.constant 0 : i32
    %324 = vector.broadcast %c0_i32_196 : i32 to vector<1x256xi32>
    %325 = arith.cmpi sge, %314, %324 : vector<1x256xi32>
    %c15_i32_197 = arith.constant 15 : i32
    %326 = vector.broadcast %c15_i32_197 : i32 to vector<1x256xi32>
    %327 = arith.cmpi sle, %314, %326 : vector<1x256xi32>
    %328 = arith.andi %325, %327 : vector<1x256xi1>
    %cst_198 = arith.constant 0.000000e+00 : f32
    %329 = vector.broadcast %cst_198 : f32 to vector<1x256xf32>
    %330 = arith.select %328, %311, %329 : vector<1x256xi1>, vector<1x256xf32>
    %c0_i32_199 = arith.constant 0 : i32
    %c15_i32_200 = arith.constant 15 : i32
    %331 = vector.broadcast %c0_i32_199 : i32 to vector<1x256xi32>
    %332 = arith.maxsi %331, %312 : vector<1x256xi32>
    %333 = vector.broadcast %c15_i32_200 : i32 to vector<1x256xi32>
    %334 = arith.minsi %333, %332 : vector<1x256xi32>
    %c0_i32_201 = arith.constant 0 : i32
    %c15_i32_202 = arith.constant 15 : i32
    %335 = vector.broadcast %c0_i32_201 : i32 to vector<1x256xi32>
    %336 = arith.maxsi %335, %314 : vector<1x256xi32>
    %337 = vector.broadcast %c15_i32_202 : i32 to vector<1x256xi32>
    %338 = arith.minsi %337, %336 : vector<1x256xi32>
    %339 = tpu.iota {dimensions = array<i32: 0>} : vector<16x256xi32>
    %340 = vector.broadcast %334 : vector<1x256xi32> to vector<16x256xi32>
    %341 = arith.cmpi eq, %339, %340 : vector<16x256xi32>
    %cst_203 = arith.constant 0.000000e+00 : f32
    %342 = vector.shape_cast %323 : vector<1x256xf32> to vector<1x256xf32>
    %343 = vector.broadcast %342 : vector<1x256xf32> to vector<16x256xf32>
    %344 = vector.broadcast %cst_203 : f32 to vector<16x256xf32>
    %345 = arith.select %341, %343, %344 : vector<16x256xi1>, vector<16x256xf32>
    %346 = vector.broadcast %338 : vector<1x256xi32> to vector<16x256xi32>
    %347 = arith.cmpi eq, %339, %346 : vector<16x256xi32>
    %cst_204 = arith.constant 0.000000e+00 : f32
    %348 = vector.shape_cast %330 : vector<1x256xf32> to vector<1x256xf32>
    %349 = vector.broadcast %348 : vector<1x256xf32> to vector<16x256xf32>
    %350 = vector.broadcast %cst_204 : f32 to vector<16x256xf32>
    %351 = arith.select %347, %349, %350 : vector<16x256xi1>, vector<16x256xf32>
    %352 = arith.addf %345, %351 : vector<16x256xf32>
    %c0_205 = arith.constant 0 : index
    %c0_206 = arith.constant 0 : index
    %c0_207 = arith.constant 0 : index
    %353 = vector.load %arg2[%c0_205, %c0_206, %c0_207] : memref<1x64x16xf32, #tpu.memory_space<vmem>>, vector<1x64x16xf32>
    %354 = vector.shape_cast %353 : vector<1x64x16xf32> to vector<64x16xf32>
    %cst_208 = arith.constant dense<0.000000e+00> : vector<64x256xf32>
    %355 = tpu.matmul %354, %309, %cst_208 {dimension_numbers = #tpu.dot_dimension_numbers<[1], [0], [0], [1], [0, 0, 1, 1], [], []>} : vector<64x16xf32>, vector<16x256xf32>, vector<64x256xf32> -> vector<64x256xf32>
    %356 = vector.shape_cast %355 : vector<64x256xf32> to vector<4x16x256xf32>
    %357 = vector.shape_cast %352 : vector<16x256xf32> to vector<1x16x256xf32>
    %358 = vector.broadcast %357 : vector<1x16x256xf32> to vector<4x16x256xf32>
    %359 = arith.mulf %356, %358 : vector<4x16x256xf32>
    %cst_209 = arith.constant dense<0.000000e+00> : vector<4x256xf32>
    %360 = vector.multi_reduction <add>, %359, %cst_209 [1] : vector<4x16x256xf32> to vector<4x256xf32>
    %c0_210 = arith.constant 0 : index
    %c0_211 = arith.constant 0 : index
    %c0_212 = arith.constant 0 : index
    %361 = vector.load %arg12[%c0_210, %c0_211, %c0_212] : memref<1x4x256xf32, #tpu.memory_space<vmem>>, vector<1x4x256xf32>
    %362 = vector.shape_cast %361 : vector<1x4x256xf32> to vector<4x256xf32>
    %363 = vector.shape_cast %360 : vector<4x256xf32> to vector<1x4x256xf32>
    tpu.vector_store %arg12[%c0_210, %c0_211, %c0_212], %363 {strides = array<i32>} : memref<1x4x256xf32, #tpu.memory_space<vmem>>, vector<1x4x256xf32>,
    %c0_213 = arith.constant 0 : index
    %c0_214 = arith.constant 0 : index
    %c0_215 = arith.constant 0 : index
    %364 = vector.load %arg1[%c0_213, %c0_214, %c0_215] : memref<1x4x256xf32, #tpu.memory_space<vmem>>, vector<1x4x256xf32>
    %365 = vector.shape_cast %364 : vector<1x4x256xf32> to vector<4x256xf32>
    %366 = arith.subf %365, %360 : vector<4x256xf32>
    %c0_216 = arith.constant 0 : index
    %c0_217 = arith.constant 0 : index
    %c0_218 = arith.constant 0 : index
    %367 = vector.load %arg13[%c0_216, %c0_217, %c0_218] : memref<1x4x256xf32, #tpu.memory_space<vmem>>, vector<1x4x256xf32>
    %368 = vector.shape_cast %367 : vector<1x4x256xf32> to vector<4x256xf32>
    %369 = vector.shape_cast %366 : vector<4x256xf32> to vector<1x4x256xf32>
    tpu.vector_store %arg13[%c0_216, %c0_217, %c0_218], %369 {strides = array<i32>} : memref<1x4x256xf32, #tpu.memory_space<vmem>>, vector<1x4x256xf32>,
    return
  }
  func.func @transform_0(%arg0: i32) -> (i32, i32, i32) {
    %c0_i32 = arith.constant 0 : i32
    %c0_i32_0 = arith.constant 0 : i32
    %c0_i32_1 = arith.constant 0 : i32
    return %arg0, %c0_i32, %c0_i32_0 : i32, i32, i32
  }
  func.func @transform_1(%arg0: i32) -> (i32, i32, i32) {
    %c0_i32 = arith.constant 0 : i32
    %c0_i32_0 = arith.constant 0 : i32
    %c0_i32_1 = arith.constant 0 : i32
    return %arg0, %c0_i32, %c0_i32_0 : i32, i32, i32
  }
  func.func @transform_2(%arg0: i32) -> (i32, i32, i32, i32) {
    %c0_i32 = arith.constant 0 : i32
    %c0_i32_0 = arith.constant 0 : i32
    %c0_i32_1 = arith.constant 0 : i32
    %c0_i32_2 = arith.constant 0 : i32
    return %arg0, %c0_i32, %c0_i32_0, %c0_i32_1 : i32, i32, i32, i32
  }
  func.func @transform_3(%arg0: i32) -> (i32, i32, i32, i32) {
    %c0_i32 = arith.constant 0 : i32
    %c0_i32_0 = arith.constant 0 : i32
    %c0_i32_1 = arith.constant 0 : i32
    %c0_i32_2 = arith.constant 0 : i32
    %c0_i32_3 = arith.constant 0 : i32
    return %c0_i32, %c0_i32_0, %c0_i32_1, %c0_i32_2 : i32, i32, i32, i32
  }
  func.func @transform_4(%arg0: i32) -> (i32, i32, i32) {
    %c0_i32 = arith.constant 0 : i32
    %c0_i32_0 = arith.constant 0 : i32
    %c0_i32_1 = arith.constant 0 : i32
    %c0_i32_2 = arith.constant 0 : i32
    return %c0_i32, %c0_i32_0, %c0_i32_1 : i32, i32, i32
  }
  func.func @transform_5(%arg0: i32) -> (i32, i32, i32) {
    %c0_i32 = arith.constant 0 : i32
    %c0_i32_0 = arith.constant 0 : i32
    %c0_i32_1 = arith.constant 0 : i32
    %c0_i32_2 = arith.constant 0 : i32
    return %c0_i32, %c0_i32_0, %c0_i32_1 : i32, i32, i32
  }
  func.func @transform_6(%arg0: i32) -> (i32, i32) {
    %c0_i32 = arith.constant 0 : i32
    %c0_i32_0 = arith.constant 0 : i32
    %c0_i32_1 = arith.constant 0 : i32
    return %c0_i32, %c0_i32_0 : i32, i32
  }
  func.func @transform_7(%arg0: i32) -> (i32, i32) {
    %c0_i32 = arith.constant 0 : i32
    %c0_i32_0 = arith.constant 0 : i32
    %c0_i32_1 = arith.constant 0 : i32
    return %c0_i32, %c0_i32_0 : i32, i32
  }
  func.func @transform_8(%arg0: i32) -> (i32, i32) {
    %c0_i32 = arith.constant 0 : i32
    %c0_i32_0 = arith.constant 0 : i32
    %c0_i32_1 = arith.constant 0 : i32
    return %c0_i32, %c0_i32_0 : i32, i32
  }
  func.func @transform_9(%arg0: i32) -> (i32, i32) {
    %c0_i32 = arith.constant 0 : i32
    %c0_i32_0 = arith.constant 0 : i32
    %c0_i32_1 = arith.constant 0 : i32
    return %c0_i32, %c0_i32_0 : i32, i32
  }
  func.func @transform_10(%arg0: i32) -> (i32, i32, i32) {
    %c0_i32 = arith.constant 0 : i32
    %c0_i32_0 = arith.constant 0 : i32
    %c0_i32_1 = arith.constant 0 : i32
    %c0_i32_2 = arith.constant 0 : i32
    return %c0_i32, %c0_i32_0, %c0_i32_1 : i32, i32, i32
  }
  func.func @transform_11(%arg0: i32) -> (i32, i32, i32) {
    %c0_i32 = arith.constant 0 : i32
    %c0_i32_0 = arith.constant 0 : i32
    %c0_i32_1 = arith.constant 0 : i32
    return %arg0, %c0_i32, %c0_i32_0 : i32, i32, i32
  }
  func.func @transform_12(%arg0: i32) -> (i32, i32, i32) {
    %c0_i32 = arith.constant 0 : i32
    %c0_i32_0 = arith.constant 0 : i32
    %c0_i32_1 = arith.constant 0 : i32
    return %arg0, %c0_i32, %c0_i32_0 : i32, i32, i32
  }
}

</mosaic_0001>

<bundles_post_ra>
// kernel: tpu_custom_call.1
= control target key start
LH: loop header
LB: loop body
LE: loop exit
PB: predicated region body
PF: predicated region fallthrough
CT: control target
= control target key end

     0   :  { %s5271_s0 = inlined_call_operand.vmem [shape: f32[2,4,256], index: 0, kind: input, shape index: {}]   ;;  %s5272_s1 = inlined_call_operand.vmem [shape: f32[2,64,16], index: 1, kind: input, shape index: {}]   ;;  %s5273_s2 = inlined_call_operand.vmem [shape: f32[2,16,8,8], index: 2, kind: input, shape index: {}]   ;;  %s5274_s3 = inlined_call_operand.vmem [shape: f32[9,4,1,1], index: 3, kind: input, shape index: {}]   ;;  %s5275_s4 = inlined_call_operand.vmem [shape: f32[4,1,1], index: 4, kind: input, shape index: {}]   ;;  %s5276_s5 = inlined_call_operand.vmem [shape: f32[4,3,3], index: 5, kind: input, shape index: {}]   ;;  %s5277_s6 = inlined_call_operand.vmem [shape: f32[4,1], index: 6, kind: input, shape index: {}]   ;;  %s5278_s7 = inlined_call_operand.vmem [shape: f32[9,256], index: 7, kind: input, shape index: {}]   ;;  %s5279_s8 = inlined_call_operand.vmem [shape: f32[2,72], index: 8, kind: input, shape index: {}]   ;;  %s5280_s9 = inlined_call_operand.vmem [shape: f32[2,256], index: 9, kind: input, shape index: {}]   ;;  %s5281_s10 = inlined_call_operand.vmem [shape: f32[9,1,256], index: 10, kind: input, shape index: {}]   ;;  %s5282_s11 = inlined_call_operand.hbm [shape: f32[2,4,256], index: 11, kind: output, shape index: {0}]   ;;  %s5283_s12 = inlined_call_operand.hbm [shape: f32[2,4,256], index: 12, kind: output, shape index: {1}]  }
   0x1   :  { %5303 = sst [smem:[#allocation23_spill]] %s5271_s0 }
   0x2   :  { %5304 = sst [smem:[#allocation24_spill]] %s5272_s1 }
   0x3   :  { %5305 = sst [smem:[#allocation25_spill]] %s5273_s2 }
   0x4   :  { %5306 = sst [smem:[#allocation26_spill]] %s5274_s3 }
   0x5   :  { %18 = vsyncpa [#allocation4], 0 }
   0x6   :  { %20 = vsyncpa [#allocation4 + $0x1], 0 }
   0x7   :  { %21 = vsyncpa [#allocation6], 0 }
   0x8   :  { %23 = vsyncpa [#allocation6 + $0x1], 0  ;;  %s4011_s21 = smov 0   ;;  %s4013_s22 = smov 0  }
   0x9   :  { %s4015_s23 = smov 0   ;;  %s4017_s24 = smov 0  }
   0xa LB: > { %s4032_s25 = sadd.s32 4294967295, %s3923_s24   ;;  %s3508_s26 = sadd.s32 4294967294, %s3923_s24   ;;  %s3923_s24 = sphi %s4017_s24, %s5352_s24   ;;  %s3919_s23 = sphi %s4015_s23, %s5351_s23   ;;  %s3915_s22 = sphi %s4013_s22, %s5350_s22   ;;  %s3911_s21 = sphi %s4011_s21, %s5349_s21  }
   0xb   : > { %s4036_s27 = sadd.s32 1, %s3923_s24   ;;  %s282_s28 = sadd.s32 1, %s3919_s23 }
   0xc   : > { %s279_s29 = ssub.s32 %s3923_s24, %s4036_s27  ;;  %p292_p0 = scmp.ne.s32.totalorder %s3919_s23, %s3915_s22 }
   0xd   : > { %p280_p1 = scmp.eq.s32.totalorder %s279_s29, 0  ;;  %p293_p2 = scmp.eq.s32.totalorder %s4032_s25, 1 }
   0xe   : > { %p298_p3 = scmp.ne.s32.totalorder %s3915_s22, %s3911_s21  ;;  %p299_p4 = scmp.eq.s32.totalorder %s3508_s26, 1 }
   0xf   : > { %s4047_s30 = scalar_select %p280_p1, %s3919_s23, %s282_s28  }
  0x10   : > { %p4049_p5 = por %p293_p2, %p292_p0  ;;  %p4053_p6 = por %p299_p4, %p298_p3 }
  0x11   : > { %5307 = sst [smem:[#allocation9_spill]] %s4047_s30  ;;  %p3511_p7 = scmp.ge.s32.totalorder %s3923_s24, 1 }
  0x12   : > { %p391_p8 = scmp.lt.s32.totalorder %s3923_s24, 3 }
  0x14   : > { %p392_p9 = pnand %p3511_p7, %p391_p8 }
  0x16   : > { %395 = sbr.rel (%p392_p9) target bundleno = 1830 (0x726), region = 64 }
  0x1d   : > { %s5310_s3 = sld [smem:[#allocation26_spill]]  ;;  %v3925_v2 = vmov 0   ;;  %v3604_v35 = vld [vmem:[%s5275_s4] ss:$0 sm:$0xff]  ;;  %v3607_v37 = vld [vmem:[%s5275_s4 + $0x3] ss:$0 sm:$0xff] }
  0x1e   : > { %3826 = vset.pattern.permute.xlu1 %v3925_v2  ;;  %3825 = vset.pattern.permute.xlu0 %v3925_v2  ;;  %v3605_v39 = vld [vmem:[%s5275_s4 + $0x1] ss:$0 sm:$0xff]  ;;  %v4179_v40 = vld [vmem:[%s5276_s5 + $0x4] sm:$0x7]  ;;  %s3926_s16 = smov 2   ;;  %s3927_s28 = smov 4  }
  0x1f   : > { %5311 = vst [vmem:[#allocation10_spill] sm:$0xff] %v4179_v40  ;;  %v3606_v41 = vld [vmem:[%s5275_s4 + $0x2] ss:$0 sm:$0xff]  ;;  %v4189_v42 = vld [vmem:[%s5276_s5 + $0xc] sm:$0x7]  ;;  %v4212_v45 = vrot.slane %v4179_v40, 6 }
  0x20   : > { %5312 = vst [vmem:[#allocation11_spill] sm:$0xff] %v4189_v42  ;;  %v4196_v43 = vld [vmem:[%s5276_s5] sm:$0x7]  ;;  %v4205_v44 = vld [vmem:[%s5276_s5 + $0x8] sm:$0x7]  ;;  %v4219_v46 = vrot.slane %v4189_v42, 6 }
  0x21   : > { %5313 = vst [vmem:[#allocation12_spill] sm:$0xff] %v4196_v43  ;;  %5314 = vst [vmem:[#allocation13_spill] sm:$0xff] %v4205_v44  ;;  %v4224_v47 = vrot.slane %v4196_v43, 6  ;;  %v4231_v48 = vrot.slane %v4205_v44, 6  ;;  %p448_p10 = scmp.lt.s32.totalorder %s4032_s25, 1  ;;  %s5319_s2 = sld [smem:[#allocation25_spill]] }
  0x22   : > { %5315 = vst [vmem:[#allocation14_spill] sm:$0xff] %v4212_v45  ;;  %5316 = vst [vmem:[#allocation15_spill] sm:$0xff] %v4219_v46  ;;  %s3928_s26 = smov 127   ;;  %vm1043_vm0 = vcmask 18432   ;;  %vm1318_vm1 = vcmask 20482   ;;  %vm1585_vm2 = vcmask 22532  }
  0x23   : > { %v3542_v0 = vld [vmem:[%s5310_s3 + $0xa] ss:$0 sm:$0xff]  ;;  %v3540_v1 = vld [vmem:[%s5310_s3 + $0x8] ss:$0 sm:$0xff]  ;;  %v3543_v3 = vld [vmem:[%s5310_s3 + $0xb] ss:$0 sm:$0xff] }
  0x24   : > { %611 = vperm.xlu1 %3826, %v3542_v0   ;;  %603 = vperm.xlu0 %3825, %v3540_v1   ;;  %v3541_v4 = vld [vmem:[%s5310_s3 + $0x9] ss:$0 sm:$0xff]  ;;  %v3573_v5 = vld [vmem:[%s5310_s3 + $0x15] ss:$0 sm:$0xff]  ;;  %v3572_v6 = vld [vmem:[%s5310_s3 + $0x14] ss:$0 sm:$0xff] }
  0x25   : > { %v3575_v7 = vld [vmem:[%s5310_s3 + $0x17] ss:$0 sm:$0xff]  ;;  %v3574_v8 = vld [vmem:[%s5310_s3 + $0x16] ss:$0 sm:$0xff]  ;;  %v3601_v9 = vld [vmem:[%s5310_s3 + $0x21] ss:$0 sm:$0xff] }
  0x26   : > { %v3600_v10 = vld [vmem:[%s5310_s3 + $0x20] ss:$0 sm:$0xff]  ;;  %v3603_v11 = vld [vmem:[%s5310_s3 + $0x23] ss:$0 sm:$0xff]  ;;  %v3602_v12 = vld [vmem:[%s5310_s3 + $0x22] ss:$0 sm:$0xff] }
  0x27   : > { %v3521_v13 = vld [vmem:[%s5310_s3 + $0x1] ss:$0 sm:$0xff]  ;;  %v3520_v14 = vld [vmem:[%s5310_s3] ss:$0 sm:$0xff]  ;;  %v3533_v15 = vld [vmem:[%s5310_s3 + $0x5] ss:$0 sm:$0xff] }
  0x28   : > { %615 = vperm.xlu1 %3826, %v3543_v3   ;;  %607 = vperm.xlu0 %3825, %v3541_v4   ;;  %v3532_v16 = vld [vmem:[%s5310_s3 + $0x4] ss:$0 sm:$0xff]  ;;  %v3534_v17 = vld [vmem:[%s5310_s3 + $0x6] ss:$0 sm:$0xff]  ;;  %v3522_v18 = vld [vmem:[%s5310_s3 + $0x2] ss:$0 sm:$0xff] }
  0x29   : > { %v3535_v19 = vld [vmem:[%s5310_s3 + $0x7] ss:$0 sm:$0xff]  ;;  %v3523_v20 = vld [vmem:[%s5310_s3 + $0x3] ss:$0 sm:$0xff]  ;;  %v3553_v21 = vld [vmem:[%s5310_s3 + $0xd] ss:$0 sm:$0xff] }
  0x2a   : > { %v3552_v22 = vld [vmem:[%s5310_s3 + $0xc] ss:$0 sm:$0xff]  ;;  %v3555_v23 = vld [vmem:[%s5310_s3 + $0xf] ss:$0 sm:$0xff]  ;;  %v3554_v24 = vld [vmem:[%s5310_s3 + $0xe] ss:$0 sm:$0xff] }
  0x2b   : > { %v3565_v25 = vld [vmem:[%s5310_s3 + $0x11] ss:$0 sm:$0xff]  ;;  %v3564_v26 = vld [vmem:[%s5310_s3 + $0x10] ss:$0 sm:$0xff]  ;;  %v3567_v27 = vld [vmem:[%s5310_s3 + $0x13] ss:$0 sm:$0xff] }
  0x2c   : > { %780 = vperm.xlu1 %3826, %v3573_v5   ;;  %776 = vperm.xlu0 %3825, %v3572_v6   ;;  %v3566_v28 = vld [vmem:[%s5310_s3 + $0x12] ss:$0 sm:$0xff]  ;;  %v3581_v29 = vld [vmem:[%s5310_s3 + $0x19] ss:$0 sm:$0xff]  ;;  %v3580_v30 = vld [vmem:[%s5310_s3 + $0x18] ss:$0 sm:$0xff] }
  0x2d   : > { %v3592_v31 = vld [vmem:[%s5310_s3 + $0x1c] ss:$0 sm:$0xff]  ;;  %v3582_v32 = vld [vmem:[%s5310_s3 + $0x1a] ss:$0 sm:$0xff]  ;;  %v3595_v33 = vld [vmem:[%s5310_s3 + $0x1f] ss:$0 sm:$0xff] }
  0x2e   : > { %v3583_v34 = vld [vmem:[%s5310_s3 + $0x1b] ss:$0 sm:$0xff]  ;;  %v3593_v36 = vld [vmem:[%s5310_s3 + $0x1d] ss:$0 sm:$0xff]  ;;  %v3594_v38 = vld [vmem:[%s5310_s3 + $0x1e] ss:$0 sm:$0xff] }
  0x2f   : > { %5317 = vst [vmem:[#allocation16_spill] sm:$0xff] %v4224_v47  ;;  %5318 = vst [vmem:[#allocation17_spill] sm:$0xff] %v4231_v48  ;;  %s4245_s17 = scalar_select %p448_p10, %s4032_s25, 1  ;;  %vm1078_vm3 = vcmask 1041409   ;;  %vm1080_vm4 = vcmask 1042434   ;;  %vm1082_vm5 = vcmask 1043459  }
  0x30   : > { %788 = vperm.xlu1 %3826, %v3575_v7   ;;  %784 = vperm.xlu0 %3825, %v3574_v8   ;;  %vm1085_vm6 = vcmask 19456   ;;  %s5338_s0 = sld [smem:[#allocation23_spill]]  ;;  %s3934_s18 = smov 1   ;;  %vm1888_vm7 = vcmask 916480   ;;  %vm1911_vm8 = vcmask 924672   ;;  %vm1934_vm9 = vcmask 1039360  }
  0x31   : > { %s3645_s30 = sshll.u32 %s4245_s17, 7  ;;  %s3643_s15 = sshll.u32 %s4245_s17, 3  ;;  %vm1975_vm10 = vcmask 7168   ;;  %vm1998_vm11 = vcmask 121856   ;;  %vm2021_vm12 = vcmask 130048   ;;  %vm2044_vm13 = vcmask 138240  }
  0x32   : > { %s4251_s20 = scalar_lea.vmem %s5319_s2, %s3645_s30  ;;  %s3933_s30 = smov 113   ;;  %vm1865_vm14 = vcmask 908288   ;;  %vm2102_vm15 = vcmask 900096  }
  0x33   : > { %v471_v49 = vld [vmem:[%s4251_s20] sm:$0x7f]  ;;  %v472_v53 = vld [vmem:[%s4251_s20 + $0x8] sm:$0x7f]  ;;  %v4257_v54 = vld [vmem:[%s4251_s20 + $0x10] sm:$0x7f] }
  0x34   : > { %951 = vperm.xlu1 %3826, %v3601_v9   ;;  %947 = vperm.xlu0 %3825, %v3600_v10   ;;  %v4260_v58 = vld [vmem:[%s4251_s20 + $0x40] sm:$0x7f]  ;;  %v474_v63 = vld [vmem:[%s4251_s20 + $0x18] sm:$0x7f]  ;;  %v4267_v0 = vld [vmem:[%s4251_s20 + $0x50] sm:$0x7f] }
  0x35   : > { %v4273_v5 = vld [vmem:[%s4251_s20 + $0x48] sm:$0x7f]  ;;  %v4276_v6 = vld [vmem:[%s4251_s20 + $0x1] sm:$0x7f]  ;;  %s3935_s2 = smov 15   ;;  %s3936_s29 = smov 16  }
  0x36   : > { %s4668_s3 = scalar_lea.vmem %s5338_s0, %s3643_s15  ;;  %s3644_s15 = sshll.u32 %s4245_s17, 6 }
  0x37   : > { %s5345_s1 = sld [smem:[#allocation24_spill]]  ;;  %s5185_s17 = sand.u32 1, %s3915_s22  }
  0x38   : > { %959 = vperm.xlu1 %3826, %v3603_v11   ;;  %955 = vperm.xlu0 %3825, %v3602_v12   ;;  %v4283_v11 = vld [vmem:[%s4251_s20 + $0x58] sm:$0x7f]  ;;  %v4286_v12 = vld [vmem:[%s4251_s20 + $0x11] sm:$0x7f] }
  0x3c   : > { %504 = vperm.xlu1 %3826, %v3521_v13   ;;  %500 = vperm.xlu0 %3825, %v3520_v14  }
  0x40   : > { %558 = vperm.xlu1 %3826, %v3533_v15   ;;  %554 = vperm.xlu0 %3825, %v3532_v16  }
  0x44   : > { %562 = vperm.xlu1 %3826, %v3534_v17   ;;  %508 = vperm.xlu0 %3825, %v3522_v18   ;;  %v4293_v17 = vld [vmem:[%s4251_s20 + $0x9] sm:$0x7f]  ;;  %v4298_v18 = vrot.slane %v4196_v43, 4 }
  0x46   : > { %5320 = vst [vmem:[#allocation18_spill] sm:$0xff] %v4298_v18 }
  0x48   : > { %566 = vperm.xlu1 %3826, %v3535_v19   ;;  %512 = vperm.xlu0 %3825, %v3523_v20  }
  0x4c   : > { %677 = vperm.xlu1 %3826, %v3553_v21   ;;  %673 = vperm.xlu0 %3825, %v3552_v22   ;;  %v4302_v22 = vld [vmem:[%s4251_s20 + $0x19] sm:$0x7f] }
  0x50   : > { %685 = vperm.xlu1 %3826, %v3555_v23   ;;  %681 = vperm.xlu0 %3825, %v3554_v24   ;;  %v3525_v23 = vld [vmem:[%s4251_s20 + $0x28] sm:$0x7f]  ;;  %v3524_v24 = vld [vmem:[%s4251_s20 + $0x20] sm:$0x7f] }
  0x54   : > { %731 = vperm.xlu1 %3826, %v3565_v25   ;;  %727 = vperm.xlu0 %3825, %v3564_v26   ;;  %v4310_v25 = vrot.slane %v4205_v44, 4 }
  0x56   : > { %5321 = vst [vmem:[#allocation19_spill] sm:$0xff] %v4310_v25 }
  0x58   : > { %739 = vperm.xlu1 %3826, %v3567_v27   ;;  %735 = vperm.xlu0 %3825, %v3566_v28  }
  0x5c   : > { %849 = vperm.xlu1 %3826, %v3581_v29   ;;  %845 = vperm.xlu0 %3825, %v3580_v30  }
  0x60   : > { %898 = vperm.xlu1 %3826, %v3592_v31   ;;  %853 = vperm.xlu0 %3825, %v3582_v32  }
  0x64   : > { %910 = vperm.xlu1 %3826, %v3595_v33   ;;  %857 = vperm.xlu0 %3825, %v3583_v34   ;;  %v3526_v33 = vld [vmem:[%s4251_s20 + $0x30] sm:$0x7f]  ;;  %v4318_v34 = vrot.slane %v4179_v40, 4 }
  0x66   : > { %5322 = vst [vmem:[#allocation20_spill] sm:$0xff] %v4318_v34 }
  0x68   : > { %1011 = vperm.xlu1 %3826, %v3604_v35   ;;  %902 = vperm.xlu0 %3825, %v3593_v36  }
  0x6c   : > { %1023 = vperm.xlu1 %3826, %v3607_v37   ;;  %906 = vperm.xlu0 %3825, %v3594_v38  }
  0x70   : > { %1015 = vperm.xlu0 %3825, %v3605_v39   ;;  %1118 = vrot.lane.b32.xlu1 %v4179_v40, %s3926_s16 }
  0x74   : > { %1019 = vperm.xlu0 %3825, %v3606_v41   ;;  %1122 = vrot.lane.b32.xlu1 %v4189_v42, %s3926_s16 }
  0x78   : > { %1116 = vrot.lane.b32.xlu0 %v4196_v43, %s3926_s16  ;;  %1213 = vrot.lane.b32.xlu1 %v4179_v40, %s3927_s28 }
  0x7c   : > { %1120 = vrot.lane.b32.xlu0 %v4205_v44, %s3926_s16  ;;  %1217 = vrot.lane.b32.xlu1 %v4189_v42, %s3927_s28 }
  0x80   : > { %1211 = vrot.lane.b32.xlu0 %v4196_v43, %s3927_s28  ;;  %1385 = vrot.lane.b32.xlu1 %v4212_v45, %s3926_s16  ;;  %v3584_v43 = vld [vmem:[%s4251_s20 + $0x21] sm:$0x7f] }
  0x84   : > { %1215 = vrot.lane.b32.xlu0 %v4205_v44, %s3927_s28  ;;  %1389 = vrot.lane.b32.xlu1 %v4219_v46, %s3926_s16 }
  0x88   : > { %1383 = vrot.lane.b32.xlu0 %v4224_v47, %s3926_s16  ;;  %1480 = vrot.lane.b32.xlu1 %v4212_v45, %s3927_s28  ;;  %v3558_v45 = vld [vmem:[%s4251_s20 + $0x70] sm:$0x7f] }
  0x8c   : > { %1387 = vrot.lane.b32.xlu0 %v4231_v48, %s3926_s16  ;;  %1484 = vrot.lane.b32.xlu1 %v4219_v46, %s3927_s28 }
  0x90   : > { %1478 = vrot.lane.b32.xlu0 %v4224_v47, %s3927_s28 }
  0x94   : > { %1482 = vrot.lane.b32.xlu0 %v4231_v48, %s3927_s28  ;;  %v3557_v48 = vld [vmem:[%s4251_s20 + $0x68] sm:$0x7f] }
  0xa3   : > { %v612_v50 = vpop.permute.xlu1 %611  ;;  %v604_v51 = vpop.permute.xlu0 %603 }
  0xa4   : > { %v618_v52 = vmul.f32 %v604_v51, %v471_v49  ;;  %v620_v59 = vmul.f32 %v612_v50, %v4257_v54  ;;  %v4329_v50 = vrot.slane %v4189_v42, 4 }
  0xa6   : > { %626 = vrot.lane.b32.xlu0 %v618_v52, %s3928_s26  ;;  %5323 = vst [vmem:[#allocation21_spill] sm:$0xff] %v4329_v50 }
  0xa7   : > { %v616_v55 = vpop.permute.xlu1 %615  ;;  %v608_v56 = vpop.permute.xlu0 %607 }
  0xa8   : > { %v619_v57 = vmul.f32 %v608_v56, %v472_v53  ;;  %v621_v3 = vmul.f32 %v616_v55, %v474_v63 }
  0xaa   : > { %628 = vrot.lane.b32.xlu1 %v619_v57, %s3928_s26 }
  0xab   : > { %v781_v60 = vpop.permute.xlu1 %780  ;;  %v777_v61 = vpop.permute.xlu0 %776 }
  0xac   : > { %v791_v62 = vmul.f32 %v4260_v58, %v777_v61  ;;  %v792_v9 = vmul.f32 %v4273_v5, %v781_v60 }
  0xae   : > { %630 = vrot.lane.b32.xlu1 %v620_v59, %s3928_s26  ;;  %799 = vrot.lane.b32.xlu0 %v791_v62, %s3928_s26 }
  0xaf   : > { %v789_v1 = vpop.permute.xlu1 %788  ;;  %v785_v2 = vpop.permute.xlu0 %784 }
  0xb0   : > { %v793_v4 = vmul.f32 %v4267_v0, %v785_v2  ;;  %v794_v15 = vmul.f32 %v4283_v11, %v789_v1 }
  0xb2   : > { %632 = vrot.lane.b32.xlu1 %v621_v3, %s3928_s26  ;;  %803 = vrot.lane.b32.xlu0 %v793_v4, %s3928_s26 }
  0xb3   : > { %v952_v7 = vpop.permute.xlu1 %951  ;;  %v948_v8 = vpop.permute.xlu0 %947 }
  0xb4   : > { %v962_v10 = vmul.f32 %v948_v8, %v4276_v6  ;;  %v963_v21 = vmul.f32 %v952_v7, %v4293_v17 }
  0xb6   : > { %801 = vrot.lane.b32.xlu1 %v792_v9, %s3928_s26  ;;  %970 = vrot.lane.b32.xlu0 %v962_v10, %s3928_s26 }
  0xb7   : > { %v960_v13 = vpop.permute.xlu1 %959  ;;  %v956_v14 = vpop.permute.xlu0 %955 }
  0xb8   : > { %v964_v16 = vmul.f32 %v956_v14, %v4286_v12  ;;  %v965_v26 = vmul.f32 %v960_v13, %v4302_v22 }
  0xba   : > { %805 = vrot.lane.b32.xlu1 %v794_v15, %s3928_s26  ;;  %974 = vrot.lane.b32.xlu0 %v964_v16, %s3928_s26 }
  0xbb   : > { %v505_v19 = vpop.permute.xlu1 %504  ;;  %v501_v20 = vpop.permute.xlu0 %500 }
  0xbc   : > { %v516_v29 = vmul.f32 %v505_v19, %v472_v53  ;;  %v515_v30 = vmul.f32 %v501_v20, %v471_v49  ;;  %v3527_v49 = vld [vmem:[%s4251_s20 + $0x38] sm:$0x7f] }
  0xbe   : > { %972 = vrot.lane.b32.xlu1 %v963_v21, %s3928_s26  ;;  %1650 = vrot.lane.b32.xlu0 %v4298_v18, %s3926_s16 }
  0xbf   : > { %v559_v27 = vpop.permute.xlu1 %558  ;;  %v555_v28 = vpop.permute.xlu0 %554 }
  0xc0   : > { %v570_v31 = vmul.f32 %v3525_v23, %v559_v27  ;;  %v569_v32 = vmul.f32 %v3524_v24, %v555_v28 }
  0xc2   : > { %976 = vrot.lane.b32.xlu1 %v965_v26, %s3928_s26  ;;  %1654 = vrot.lane.b32.xlu0 %v4310_v25, %s3926_s16  ;;  %v573_v35 = vadd.f32 %v569_v32, %v515_v30  ;;  %v4320_v36 = vadd.f32 %v570_v31, %v516_v29 }
  0xc3   : > { %v563_v37 = vpop.permute.xlu1 %562  ;;  %v509_v38 = vpop.permute.xlu0 %508 }
  0xc4   : > { %v571_v39 = vmul.f32 %v3526_v33, %v563_v37  ;;  %v517_v41 = vmul.f32 %v509_v38, %v4257_v54 }
  0xc6   : > { %1652 = vrot.lane.b32.xlu1 %v4318_v34, %s3926_s16  ;;  %1745 = vrot.lane.b32.xlu0 %v4298_v18, %s3927_s28  ;;  %v4331_v51 = vadd.f32 %v571_v39, %v517_v41 }
  0xc7   : > { %v567_v52 = vpop.permute.xlu1 %566  ;;  %v513_v53 = vpop.permute.xlu0 %512 }
  0xc8   : > { %v572_v55 = vmul.f32 %v3527_v49, %v567_v52  ;;  %v518_v56 = vmul.f32 %v513_v53, %v474_v63  ;;  %v3556_v52 = vld [vmem:[%s4251_s20 + $0x60] sm:$0x7f] }
  0xca   : > { %1656 = vrot.lane.b32.xlu1 %v4329_v50, %s3926_s16  ;;  %1749 = vrot.lane.b32.xlu0 %v4310_v25, %s3927_s28  ;;  %v4337_v54 = vadd.f32 %v572_v55, %v518_v56  ;;  %s5296_s16 = smov 126  }
  0xcb   : > { %v678_v57 = vpop.permute.xlu1 %677  ;;  %v674_v59 = vpop.permute.xlu0 %673 }
  0xcc   : > { %v688_v55 = vmul.f32 %v4260_v58, %v674_v59  ;;  %v689_v42 = vmul.f32 %v4273_v5, %v678_v57 }
  0xce   : > { %1747 = vrot.lane.b32.xlu1 %v4318_v34, %s3927_s28 }
  0xcf   : > { %v4341_v60 = vpop.permute.xlu1 %685  ;;  %v682_v61 = vpop.permute.xlu0 %681 }
  0xd0   : > { %v690_v46 = vmul.f32 %v4267_v0, %v682_v61  ;;  %v691_v0 = vmul.f32 %v4283_v11, %v4341_v60 }
  0xd2   : > { %1751 = vrot.lane.b32.xlu1 %v4329_v50, %s3927_s28  ;;  %s3930_s28 = smov 124  }
  0xd3   : > { %v732_v62 = vpop.permute.xlu1 %731  ;;  %v728_v63 = vpop.permute.xlu0 %727 }
  0xd4   : > { %v742_v25 = vmul.f32 %v3556_v52, %v728_v63  ;;  %v743_v40 = vmul.f32 %v3557_v48, %v732_v62  ;;  %v3559_v48 = vld [vmem:[%s4251_s20 + $0x78] sm:$0x7f] }
  0xd7   : > { %v4345_v1 = vpop.permute.xlu1 %739  ;;  %v736_v2 = vpop.permute.xlu0 %735 }
  0xd8   : > { %v744_v5 = vmul.f32 %v3558_v45, %v736_v2 }
  0xdb   : > { %v4347_v3 = vpop.permute.xlu1 %849  ;;  %v846_v4 = vpop.permute.xlu0 %845 }
  0xdf   : > { %v899_v7 = vpop.permute.xlu1 %898  ;;  %v854_v8 = vpop.permute.xlu0 %853 }
  0xe0   : > { %v913_v57 = vmul.f32 %v3584_v43, %v899_v7 }
  0xe3   : > { %v4349_v9 = vpop.permute.xlu1 %910  ;;  %v4351_v10 = vpop.permute.xlu0 %857 }
  0xe7   : > { %v4353_v13 = vpop.permute.xlu1 %1011  ;;  %v4355_v14 = vpop.permute.xlu0 %902 }
  0xeb   : > { %v4357_v15 = vpop.permute.xlu1 %1023  ;;  %v907_v16 = vpop.permute.xlu0 %906 }
  0xef   : > { %v4359_v19 = vpop.permute.xlu0 %1015  ;;  %v4361_v20 = vpop.permute.xlu1 %1118 }
  0xf3   : > { %v4363_v21 = vpop.permute.xlu0 %1019  ;;  %v4365_v23 = vpop.permute.xlu1 %1122 }
  0xf7   : > { %v4367_v24 = vpop.permute.xlu0 %1116  ;;  %v4369_v26 = vpop.permute.xlu1 %1213 }
  0xfb   : > { %v4371_v27 = vpop.permute.xlu0 %1120  ;;  %v4373_v28 = vpop.permute.xlu1 %1217 }
  0xff   : > { %v4375_v29 = vpop.permute.xlu0 %1211  ;;  %v4379_v31 = vpop.permute.xlu1 %1385 }
 0x103   : > { %v4377_v30 = vpop.permute.xlu0 %1215  ;;  %v4383_v33 = vpop.permute.xlu1 %1389 }
 0x107   : > { %v4381_v32 = vpop.permute.xlu0 %1383  ;;  %v4389_v39 = vpop.permute.xlu1 %1480 }
 0x10b   : > { %v4385_v37 = vpop.permute.xlu0 %1387  ;;  %v4393_v49 = vpop.permute.xlu1 %1484 }
 0x10c   : > { %5324 = vst [vmem:[#allocation22_spill] sm:$0xff] %v4393_v49 }
 0x10f   : > { %v4387_v38 = vpop.permute.xlu0 %1478 }
 0x113   : > { %v4391_v41 = vpop.permute.xlu0 %1482 }
 0x118   : > { %v627_v53 = vpop.permute.xlu0 %626 }
 0x119   : > { %v638_v56 = vadd.f32 %v627_v53, %v573_v35  ;;  %v860_v35 = vmul.f32 %v846_v4, %v4276_v6  ;;  %v863_v53 = vmul.f32 %v4351_v10, %v4302_v22 }
 0x11b   : > { %v692_v18 = vadd.f32 %v688_v55, %v638_v56 }
 0x11c   : > { %v629_v47 = vpop.permute.xlu1 %628 }
 0x11d   : > { %v639_v44 = vadd.f32 %v629_v47, %v4320_v36  ;;  %v746_v50 = vadd.f32 %v742_v25, %v692_v18  ;;  %v3586_v25 = vld [vmem:[%s4251_s20 + $0x31] sm:$0x7f] }
 0x11f   : > { %v693_v34 = vadd.f32 %v689_v42, %v639_v44 }
 0x120   : > { %v631_v49 = vpop.permute.xlu1 %630  ;;  %v800_v58 = vpop.permute.xlu0 %799 }
 0x121   : > { %v640_v59 = vadd.f32 %v631_v49, %v4331_v51  ;;  %v811_v63 = vadd.f32 %v800_v58, %v746_v50  ;;  %v747_v52 = vadd.f32 %v743_v40, %v693_v34  ;;  %v745_v51 = vmul.f32 %v3559_v48, %v4345_v1  ;;  %v3585_v34 = vld [vmem:[%s4251_s20 + $0x29] sm:$0x7f] }
 0x122   : > { %v862_v40 = vmul.f32 %v854_v8, %v4286_v12  ;;  %v915_v50 = vmul.f32 %v3586_v25, %v907_v16  ;;  %v914_v7 = vmul.f32 %v3585_v34, %v4355_v14  ;;  %v3587_v8 = vld [vmem:[%s4251_s20 + $0x39] sm:$0x7f]  ;;  %s3937_s20 = smov 17  }
 0x123   : > { %v694_v47 = vadd.f32 %v690_v46, %v640_v59  ;;  %v864_v18 = vadd.f32 %v860_v35, %v811_v63  ;;  %v861_v46 = vmul.f32 %v4347_v3, %v4293_v17  ;;  %v916_v35 = vmul.f32 %v3587_v8, %v4349_v9 }
 0x124   : > { %v633_v42 = vpop.permute.xlu1 %632  ;;  %v804_v44 = vpop.permute.xlu0 %803 }
 0x125   : > { %v641_v36 = vadd.f32 %v633_v42, %v4337_v54  ;;  %v748_v61 = vadd.f32 %v744_v5, %v694_v47  ;;  %v917_v6 = vadd.f32 %v913_v57, %v864_v18 }
 0x127   : > { %v695_v43 = vadd.f32 %v691_v0, %v641_v36  ;;  %v813_v45 = vadd.f32 %v804_v44, %v748_v61 }
 0x128   : > { %v802_v62 = vpop.permute.xlu1 %801  ;;  %v971_v2 = vpop.permute.xlu0 %970 }
 0x129   : > { %v866_v11 = vadd.f32 %v862_v40, %v813_v45  ;;  %v812_v60 = vadd.f32 %v802_v62, %v747_v52  ;;  %v982_v4 = vadd.f32 %v971_v2, %v917_v6  ;;  %v749_v54 = vadd.f32 %v745_v51, %v695_v43  ;;  %v5326_v62 = vld [vmem:[#allocation12_spill] sm:$0xff] }
 0x12b   : > { %v865_v49 = vadd.f32 %v861_v46, %v812_v60  ;;  %v1026_v1 = vadd.f32 %v4353_v13, %v982_v4  ;;  %v919_v12 = vadd.f32 %v915_v50, %v866_v11  ;;  %v5327_v60 = vld [vmem:[#allocation14_spill] sm:$0xff] }
 0x12c   : > { %v806_v55 = vpop.permute.xlu1 %805  ;;  %v975_v17 = vpop.permute.xlu0 %974 }
 0x12d   : > { %v4420_v3 = vmax.f32 %v1026_v1, 0.0  ;;  %v814_v16 = vadd.f32 %v806_v55, %v749_v54  ;;  %v984_v56 = vadd.f32 %v975_v17, %v919_v12  ;;  %v918_v58 = vadd.f32 %v914_v7, %v865_v49  ;;  %v5328_v7 = vld [vmem:[#allocation15_spill] sm:$0xff]  ;;  %v5329_v12 = vld [vmem:[#allocation20_spill] sm:$0xff] }
 0x12f   : > { %v867_v59 = vadd.f32 %v863_v53, %v814_v16  ;;  %v1028_v14 = vadd.f32 %v4363_v21, %v984_v56  ;;  %v1128_v13 = vmul.f32 %v4367_v24, %v4420_v3  ;;  %v1223_v48 = vmul.f32 %v4375_v29, %v4420_v3  ;;  %v5330_v53 = vld [vmem:[#allocation10_spill] sm:$0xff]  ;;  %v5331_v16 = vld [vmem:[#allocation21_spill] sm:$0xff] }
 0x130   : > { %v973_v63 = vpop.permute.xlu1 %972  ;;  %v1039_v2 = vmul.f32 %v5326_v62, %v4420_v3 }
 0x131   : > { %v4426_v52 = vmax.f32 %v1028_v14, 0.0  ;;  %v983_v5 = vadd.f32 %v973_v63, %v918_v58  ;;  %1136 = vrot.lane.b32.xlu0 %v1128_v13, %s5296_s16  ;;  %v920_v22 = vadd.f32 %v916_v35, %v867_v59  ;;  %v5332_v35 = vld [vmem:[#allocation13_spill] sm:$0xff]  ;;  %v5333_v63 = vld [vmem:[#allocation11_spill] sm:$0xff] }
 0x132   : > { %v1044_v11 = vsel %vm1043_vm0, %v1039_v2, 0.0 }
 0x133   : > { %v1027_v10 = vadd.f32 %v4359_v19, %v983_v5  ;;  %v1130_v57 = vmul.f32 %v4371_v27, %v4426_v52  ;;  %v1225_v27 = vmul.f32 %v4377_v30, %v4426_v52  ;;  %v1397_v29 = vmul.f32 %v4385_v37, %v4426_v52  ;;  %v1651_v30 = vpop.permute.xlu0 %1650 }
 0x134   : > { %v977_v9 = vpop.permute.xlu1 %976  ;;  %v1492_v37 = vmul.f32 %v4391_v41, %v4426_v52  ;;  %v5325_v41 = vld [vmem:[#allocation22_spill] sm:$0xff]  ;;  %v1041_v59 = vmul.f32 %v5332_v35, %v4426_v52 }
 0x135   : > { %v4432_v47 = vmax.f32 %v1027_v10, 0.0  ;;  %v985_v21 = vadd.f32 %v977_v9, %v920_v22  ;;  %1140 = vrot.lane.b32.xlu0 %v1130_v57, %s5296_s16  ;;  %v5334_v10 = vld [vmem:[#allocation16_spill] sm:$0xff] }
 0x136   : > { %v1050_v13 = vsel %vm1043_vm0, %v1041_v59, 0.0  ;;  %v1314_v57 = vmul.f32 %v5334_v10, %v4420_v3 }
 0x137   : > { %v1029_v24 = vadd.f32 %v4357_v15, %v985_v21  ;;  %v1129_v18 = vmul.f32 %v4361_v20, %v4432_v47  ;;  %v1224_v15 = vmul.f32 %v4369_v26, %v4432_v47  ;;  %v1395_v20 = vmul.f32 %v4381_v32, %v4420_v3  ;;  %v1655_v44 = vpop.permute.xlu0 %1654 }
 0x138   : > { %v1396_v26 = vmul.f32 %v4379_v31, %v4432_v47  ;;  %v1490_v32 = vmul.f32 %v4387_v38, %v4420_v3  ;;  %v1653_v0 = vpop.permute.xlu1 %1652  ;;  %v1662_v31 = vmul.f32 %v1651_v30, %v4420_v3  ;;  %v1491_v38 = vmul.f32 %v4389_v39, %v4432_v47 }
 0x139   : > { %v4440_v42 = vmax.f32 %v1029_v24, 0.0  ;;  %1138 = vrot.lane.b32.xlu1 %v1129_v18, %s5296_s16  ;;  %1231 = vrot.lane.b32.xlu0 %v1223_v48, %s3930_s28  ;;  %v1663_v6 = vmul.f32 %v1653_v0, %v4432_v47  ;;  %v1315_v4 = vmul.f32 %v5327_v60, %v4432_v47  ;;  %v1582_v8 = vmul.f32 %v5329_v12, %v4432_v47  ;;  %v5336_v18 = vld [vmem:[#allocation18_spill] sm:$0xff] }
 0x13a   : > { %v1040_v55 = vmul.f32 %v5330_v53, %v4432_v47  ;;  %v1319_v9 = vsel %vm1318_vm1, %v1314_v57, 0.0  ;;  %v1581_v48 = vmul.f32 %v5336_v18, %v4420_v3 }
 0x13b   : > { %v1131_v19 = vmul.f32 %v4365_v23, %v4440_v42  ;;  %v1226_v23 = vmul.f32 %v4373_v28, %v4440_v42  ;;  %v1398_v28 = vmul.f32 %v4383_v33, %v4440_v42  ;;  %v1746_v25 = vpop.permute.xlu0 %1745  ;;  %v1664_v33 = vmul.f32 %v1655_v44, %v4426_v52 }
 0x13c   : > { %v1493_v36 = vmul.f32 %v5325_v41, %v4440_v42  ;;  %v1657_v61 = vpop.permute.xlu1 %1656  ;;  %v1757_v51 = vmul.f32 %v1746_v25, %v4420_v3  ;;  %v1322_v54 = vsel %vm1318_vm1, %v1315_v4, 0.0  ;;  %v1317_v49 = vmul.f32 %v5328_v7, %v4440_v42 }
 0x13d   : > { %1142 = vrot.lane.b32.xlu1 %v1131_v19, %s5296_s16  ;;  %1235 = vrot.lane.b32.xlu0 %v1225_v27, %s3930_s28  ;;  %v1665_v43 = vmul.f32 %v1657_v61, %v4440_v42  ;;  %v1589_v17 = vsel %vm1585_vm2, %v1582_v8, 0.0  ;;  %v1584_v56 = vmul.f32 %v5331_v16, %v4440_v42  ;;  %v1047_v58 = vsel %vm1043_vm0, %v1040_v55, 0.0  ;;  %v5337_v19 = vld [vmem:[#allocation19_spill] sm:$0xff] }
 0x13e   : > { %v1328_v1 = vsel %vm1318_vm1, %v1317_v49, 0.0  ;;  %v1042_v5 = vmul.f32 %v5333_v63, %v4440_v42  ;;  %v1583_v27 = vmul.f32 %v5337_v19, %v4426_v52 }
 0x13f   : > { %v1750_v39 = vpop.permute.xlu0 %1749  ;;  %v1595_v14 = vsel %vm1585_vm2, %v1584_v56, 0.0 }
 0x140   : > { %v1748_v40 = vpop.permute.xlu1 %1747  ;;  %v1759_v45 = vmul.f32 %v1750_v39, %v4426_v52  ;;  %v1053_v22 = vsel %vm1043_vm0, %v1042_v5, 0.0 }
 0x141   : > { %1233 = vrot.lane.b32.xlu1 %v1224_v15, %s3930_s28  ;;  %1403 = vrot.lane.b32.xlu0 %v1395_v20, %s5296_s16  ;;  %v1758_v46 = vmul.f32 %v1748_v40, %v4432_v47  ;;  %v5335_v47 = vld [vmem:[#allocation17_spill] sm:$0xff]  ;;  %v1592_v15 = vsel %vm1585_vm2, %v1583_v27, 0.0 }
 0x142   : > { %v1316_v21 = vmul.f32 %v5335_v47, %v4426_v52 }
 0x144   : > { %v1752_v34 = vpop.permute.xlu1 %1751  ;;  %v1325_v24 = vsel %vm1318_vm1, %v1316_v21, 0.0 }
 0x145   : > { %1237 = vrot.lane.b32.xlu1 %v1226_v23, %s3930_s28  ;;  %1407 = vrot.lane.b32.xlu0 %v1397_v29, %s5296_s16  ;;  %v1760_v50 = vmul.f32 %v1752_v34, %v4440_v42  ;;  %v1586_v42 = vsel %vm1585_vm2, %v1581_v48, 0.0 }
 0x149   : > { %1405 = vrot.lane.b32.xlu1 %v1396_v26, %s5296_s16  ;;  %1498 = vrot.lane.b32.xlu0 %v1490_v32, %s3930_s28 }
 0x14d   : > { %1409 = vrot.lane.b32.xlu1 %v1398_v28, %s5296_s16  ;;  %1502 = vrot.lane.b32.xlu0 %v1492_v37, %s3930_s28 }
 0x151   : > { %1500 = vrot.lane.b32.xlu1 %v1491_v38, %s3930_s28  ;;  %1670 = vrot.lane.b32.xlu0 %v1662_v31, %s5296_s16 }
 0x155   : > { %1504 = vrot.lane.b32.xlu1 %v1493_v36, %s3930_s28  ;;  %1674 = vrot.lane.b32.xlu0 %v1664_v33, %s5296_s16 }
 0x159   : > { %1672 = vrot.lane.b32.xlu1 %v1663_v6, %s5296_s16  ;;  %1765 = vrot.lane.b32.xlu0 %v1757_v51, %s3930_s28 }
 0x15d   : > { %1676 = vrot.lane.b32.xlu1 %v1665_v43, %s5296_s16  ;;  %1769 = vrot.lane.b32.xlu0 %v1759_v45, %s3930_s28  ;;  %s3939_s16 = smov 110  }
 0x161   : > { %1767 = vrot.lane.b32.xlu1 %v1758_v46, %s3930_s28 }
 0x165   : > { %1771 = vrot.lane.b32.xlu1 %v1760_v50, %s3930_s28  ;;  %s3932_s28 = smov 112  }
 0x17c   : > { %1045 = vadd.xlane.f32.xlu0 %v1044_v11 }
 0x180   : > { %1323 = vadd.xlane.f32.xlu0 %v1322_v54 }
 0x184   : > { %1329 = vadd.xlane.f32.xlu0 %v1328_v1 }
 0x188   : > { %1590 = vadd.xlane.f32.xlu0 %v1589_v17 }
 0x189   : > { %1048 = vadd.xlane.f32.xlu1 %v1047_v58 }
 0x18c   : > { %1596 = vadd.xlane.f32.xlu0 %v1595_v14 }
 0x18d   : > { %1051 = vadd.xlane.f32.xlu1 %v1050_v13  ;;  %v1060_v13 = vlaneseq }
 0x18f   : > { %v1061_v63 = vand.u32 127, %v1060_v13  ;;  %v4556_v5 = vshrl.u32 %v1060_v13, 7 }
 0x191   : > { %1054 = vadd.xlane.f32.xlu1 %v1053_v22  ;;  %v4559_v10 = vsub.s32 %v1061_v63, %v4556_v5 }
 0x195   : > { %1320 = vadd.xlane.f32.xlu1 %v1319_v9 }
 0x199   : > { %1326 = vadd.xlane.f32.xlu1 %v1325_v24 }
 0x19d   : > { %1587 = vadd.xlane.f32.xlu1 %v1586_v42 }
 0x1a1   : > { %1593 = vadd.xlane.f32.xlu1 %v1592_v15 }
 0x1a3   : > { %v1137_v20 = vpop.permute.xlu0 %1136 }
 0x1a4   : > { %v1148_v23 = vsel %vm1043_vm0, %v1137_v20, 0.0 }
 0x1a5   : > { %1149 = vadd.xlane.f32.xlu0 %v1148_v23 }
 0x1a7   : > { %v1141_v29 = vpop.permute.xlu0 %1140 }
 0x1a8   : > { %v1154_v44 = vsel %vm1043_vm0, %v1141_v29, 0.0 }
 0x1ab   : > { %v1139_v30 = vpop.permute.xlu1 %1138  ;;  %v1232_v26 = vpop.permute.xlu0 %1231 }
 0x1ac   : > { %v1243_v32 = vsel %vm1043_vm0, %v1232_v26, 0.0  ;;  %v1151_v3 = vsel %vm1043_vm0, %v1139_v30, 0.0 }
 0x1ad   : > { %1244 = vadd.xlane.f32.xlu1 %v1243_v32  ;;  %1152 = vadd.xlane.f32.xlu0 %v1151_v3 }
 0x1af   : > { %v1143_v28 = vpop.permute.xlu1 %1142  ;;  %v1236_v37 = vpop.permute.xlu0 %1235 }
 0x1b0   : > { %v1249_v52 = vsel %vm1043_vm0, %v1236_v37, 0.0  ;;  %v1157_v25 = vsel %vm1043_vm0, %v1143_v28, 0.0 }
 0x1b1   : > { %1250 = vadd.xlane.f32.xlu1 %v1249_v52  ;;  %1155 = vadd.xlane.f32.xlu0 %v1154_v44  ;;  %v1335_v52 = vadd.s32 2, %v1061_v63 }
 0x1b3   : > { %v1234_v0 = vpop.permute.xlu1 %1233  ;;  %v1404_v31 = vpop.permute.xlu0 %1403 }
 0x1b4   : > { %v1415_v38 = vsel %vm1318_vm1, %v1404_v31, 0.0  ;;  %v1246_v61 = vsel %vm1043_vm0, %v1234_v0, 0.0  ;;  %v4572_v31 = vsub.s32 %v1335_v52, %v4556_v5 }
 0x1b5   : > { %1416 = vadd.xlane.f32.xlu1 %v1415_v38  ;;  %1158 = vadd.xlane.f32.xlu0 %v1157_v25 }
 0x1b7   : > { %v1238_v33 = vpop.permute.xlu1 %1237  ;;  %v1408_v41 = vpop.permute.xlu0 %1407 }
 0x1b8   : > { %v1421_v36 = vsel %vm1318_vm1, %v1408_v41, 0.0  ;;  %v1252_v40 = vsel %vm1043_vm0, %v1238_v33, 0.0  ;;  %vm2072_vm0 = vcmask 1031168  }
 0x1b9   : > { %1422 = vadd.xlane.f32.xlu1 %v1421_v36  ;;  %1247 = vadd.xlane.f32.xlu0 %v1246_v61 }
 0x1bb   : > { %v1406_v6 = vpop.permute.xlu1 %1405  ;;  %v1499_v51 = vpop.permute.xlu0 %1498 }
 0x1bc   : > { %v1510_v39 = vsel %vm1318_vm1, %v1499_v51, 0.0  ;;  %v1418_v34 = vsel %vm1318_vm1, %v1406_v6, 0.0 }
 0x1bd   : > { %1511 = vadd.xlane.f32.xlu1 %v1510_v39  ;;  %1253 = vadd.xlane.f32.xlu0 %v1252_v40 }
 0x1bf   : > { %v1410_v43 = vpop.permute.xlu1 %1409  ;;  %v1503_v45 = vpop.permute.xlu0 %1502 }
 0x1c0   : > { %v1516_v46 = vsel %vm1318_vm1, %v1503_v45, 0.0  ;;  %v1424_v11 = vsel %vm1318_vm1, %v1410_v43, 0.0 }
 0x1c1   : > { %1517 = vadd.xlane.f32.xlu1 %v1516_v46  ;;  %1419 = vadd.xlane.f32.xlu0 %v1418_v34 }
 0x1c3   : > { %v1501_v50 = vpop.permute.xlu1 %1500  ;;  %v1671_v62 = vpop.permute.xlu0 %1670 }
 0x1c4   : > { %v1682_v2 = vsel %vm1585_vm2, %v1671_v62, 0.0  ;;  %v1513_v7 = vsel %vm1318_vm1, %v1501_v50, 0.0 }
 0x1c5   : > { %1683 = vadd.xlane.f32.xlu1 %v1682_v2  ;;  %1425 = vadd.xlane.f32.xlu0 %v1424_v11 }
 0x1c7   : > { %v1505_v60 = vpop.permute.xlu1 %1504  ;;  %v1675_v4 = vpop.permute.xlu0 %1674 }
 0x1c8   : > { %v1688_v54 = vsel %vm1585_vm2, %v1675_v4, 0.0  ;;  %v1519_v8 = vsel %vm1318_vm1, %v1505_v60, 0.0  ;;  %vm2114_vm1 = vcmask 785408  }
 0x1c9   : > { %1689 = vadd.xlane.f32.xlu1 %v1688_v54  ;;  %1514 = vadd.xlane.f32.xlu0 %v1513_v7 }
 0x1cb   : > { %v1673_v49 = vpop.permute.xlu1 %1672  ;;  %v1766_v1 = vpop.permute.xlu0 %1765 }
 0x1cc   : > { %v1777_v12 = vsel %vm1585_vm2, %v1766_v1, 0.0  ;;  %v1685_v16 = vsel %vm1585_vm2, %v1673_v49, 0.0  ;;  %v1602_v1 = vadd.s32 4, %v1061_v63 }
 0x1cd   : > { %1778 = vadd.xlane.f32.xlu1 %v1777_v12  ;;  %1520 = vadd.xlane.f32.xlu0 %v1519_v8 }
 0x1cf   : > { %v1677_v53 = vpop.permute.xlu1 %1676  ;;  %v1770_v55 = vpop.permute.xlu0 %1769 }
 0x1d0   : > { %v1783_v17 = vsel %vm1585_vm2, %v1770_v55, 0.0  ;;  %v1691_v58 = vsel %vm1585_vm2, %v1677_v53, 0.0 }
 0x1d1   : > { %1784 = vadd.xlane.f32.xlu1 %v1783_v17  ;;  %1686 = vadd.xlane.f32.xlu0 %v1685_v16 }
 0x1d3   : > { %v1768_v56 = vpop.permute.xlu1 %1767 }
 0x1d4   : > { %v1780_v35 = vsel %vm1585_vm2, %v1768_v56, 0.0 }
 0x1d5   : > { %1692 = vadd.xlane.f32.xlu0 %v1691_v58  ;;  %v1605_v58 = vsub.s32 %v1602_v1, %v4556_v5 }
 0x1d7   : > { %v1772_v59 = vpop.permute.xlu1 %1771 }
 0x1d8   : > { %v1786_v14 = vsel %vm1585_vm2, %v1772_v59, 0.0  ;;  %vm2126_vm2 = vcmask 777216  }
 0x1d9   : > { %1781 = vadd.xlane.f32.xlu0 %v1780_v35 }
 0x1dd   : > { %1787 = vadd.xlane.f32.xlu0 %v1786_v14 }
 0x209   : > { %v1046_v57 = vpop.xlane.xlu0 %1045 }
 0x20a   : > { %v1065_v24 = vrot.slane %v1046_v57, %v4559_v10 }
 0x20d   : > { %v1324_v19 = vpop.xlane.xlu0 %1323 }
 0x20e   : > { %v1343_v6 = vrot.slane %v1324_v19, %v4572_v31 }
 0x211   : > { %v1330_v29 = vpop.xlane.xlu0 %1329 }
 0x212   : > { %v1351_v62 = vrot.slane %v1330_v29, %v4572_v31 }
 0x215   : > { %v1591_v26 = vpop.xlane.xlu0 %1590 }
 0x216   : > { %v1049_v22 = vpop.xlane.xlu1 %1048 }
 0x217   : > { %v1069_v47 = vrot.slane %v1049_v22, %v4559_v10 }
 0x219   : > { %v1079_v48 = vsel %vm1078_vm3, %v1069_v47, %v1065_v24  ;;  %v4569_v3 = vpop.xlane.xlu0 %1596  ;;  %v1610_v47 = vrot.slane %v1591_v26, %v1605_v58 }
 0x21a   : > { %v1052_v9 = vpop.xlane.xlu1 %1051 }
 0x21b   : > { %v1073_v21 = vrot.slane %v1052_v9, %v4559_v10 }
 0x21d   : > { %v1081_v27 = vsel %vm1080_vm4, %v1073_v21, %v1079_v48 }
 0x21e   : > { %v1055_v18 = vpop.xlane.xlu1 %1054 }
 0x21f   : > { %v1077_v42 = vrot.slane %v1055_v18, %v4559_v10 }
 0x221   : > { %v1083_v15 = vsel %vm1082_vm5, %v1077_v42, %v1081_v27  ;;  %v1618_v27 = vrot.slane %v4569_v3, %v1605_v58 }
 0x222   : > { %v1086_v20 = vsel %vm1085_vm6, %v1083_v15, 0.0  ;;  %v1321_v23 = vpop.xlane.xlu1 %1320 }
 0x223   : > { %1087 = vadd.xlane.f32.xlu1 %v1086_v20  ;;  %v1339_v33 = vrot.slane %v1321_v23, %v4572_v31 }
 0x225   : > { %v1352_v43 = vsel %vm1078_vm3, %v1343_v6, %v1339_v33 }
 0x226   : > { %v1327_v30 = vpop.xlane.xlu1 %1326 }
 0x227   : > { %v1347_v36 = vrot.slane %v1327_v30, %v4572_v31 }
 0x229   : > { %v1353_v50 = vsel %vm1080_vm4, %v1347_v36, %v1352_v43 }
 0x22a   : > { %v1588_v32 = vpop.xlane.xlu1 %1587  ;;  %v1354_v49 = vsel %vm1082_vm5, %v1351_v62, %v1353_v50 }
 0x22b   : > { %v1356_v17 = vsel %vm1085_vm6, %v1354_v49, 0.0  ;;  %v1606_v13 = vrot.slane %v1588_v32, %v1605_v58 }
 0x22d   : > { %v1619_v18 = vsel %vm1078_vm3, %v1610_v47, %v1606_v13 }
 0x22e   : > { %v1594_v28 = vpop.xlane.xlu1 %1593 }
 0x22f   : > { %v1614_v9 = vrot.slane %v1594_v28, %v1605_v58 }
 0x231   : > { %v1620_v19 = vsel %vm1080_vm4, %v1614_v9, %v1619_v18 }
 0x232   : > { %v1150_v37 = vpop.xlane.xlu0 %1149  ;;  %v1621_v32 = vsel %vm1082_vm5, %v1618_v27, %v1620_v19  ;;  %v4632_v27 = vsub.s32 0, %v4556_v5 }
 0x233   : > { %v1167_v51 = vrot.slane %v1150_v37, %v4559_v10  ;;  %v1623_v3 = vsel %vm1085_vm6, %v1621_v32, 0.0 }
 0x23a   : > { %v1245_v44 = vpop.xlane.xlu1 %1244  ;;  %v1153_v0 = vpop.xlane.xlu0 %1152 }
 0x23b   : > { %v1171_v41 = vrot.slane %v1153_v0, %v4559_v10  ;;  %v1262_v54 = vrot.slane %v1245_v44, %v4559_v10 }
 0x23d   : > { %v1180_v45 = vsel %vm1078_vm3, %v1171_v41, %v1167_v51 }
 0x23e   : > { %v1251_v38 = vpop.xlane.xlu1 %1250  ;;  %v1156_v25 = vpop.xlane.xlu0 %1155 }
 0x23f   : > { %v1175_v61 = vrot.slane %v1156_v25, %v4559_v10  ;;  %v1270_v8 = vrot.slane %v1251_v38, %v4559_v10 }
 0x241   : > { %v1181_v34 = vsel %vm1080_vm4, %v1175_v61, %v1180_v45 }
 0x242   : > { %v1417_v39 = vpop.xlane.xlu1 %1416  ;;  %v1159_v40 = vpop.xlane.xlu0 %1158 }
 0x243   : > { %v1179_v46 = vrot.slane %v1159_v40, %v4559_v10  ;;  %v1434_v63 = vrot.slane %v1417_v39, %v4572_v31 }
 0x245   : > { %v1182_v2 = vsel %vm1082_vm5, %v1179_v46, %v1181_v34 }
 0x246   : > { %v1423_v11 = vpop.xlane.xlu1 %1422  ;;  %v1248_v60 = vpop.xlane.xlu0 %1247  ;;  %v1184_v4 = vsel %vm1085_vm6, %v1182_v2, 0.0 }
 0x247   : > { %v1266_v7 = vrot.slane %v1248_v60, %v4559_v10  ;;  %1185 = vadd.xlane.f32.xlu0 %v1184_v4  ;;  %v1442_v21 = vrot.slane %v1423_v11, %v4572_v31 }
 0x249   : > { %v1275_v12 = vsel %vm1078_vm3, %v1266_v7, %v1262_v54 }
 0x24a   : > { %v1512_v53 = vpop.xlane.xlu1 %1511  ;;  %v1254_v55 = vpop.xlane.xlu0 %1253  ;;  %v1276_v56 = vsel %vm1080_vm4, %v1270_v8, %v1275_v12  ;;  %v1038_v12 = vld [vmem:[%s5277_s6] sm:$0xf] }
 0x24b   : > { %v1274_v16 = vrot.slane %v1254_v55, %v4559_v10  ;;  %1357 = vadd.xlane.f32.xlu0 %v1356_v17  ;;  %v1529_v30 = vrot.slane %v1512_v53, %v4572_v31 }
 0x24d   : > { %v1277_v35 = vsel %vm1082_vm5, %v1274_v16, %v1276_v56 }
 0x24e   : > { %v1420_v59 = vpop.xlane.xlu0 %1419  ;;  %v1279_v14 = vsel %vm1085_vm6, %v1277_v35, 0.0  ;;  %v1518_v22 = vpop.xlane.xlu1 %1517 }
 0x24f   : > { %v1438_v57 = vrot.slane %v1420_v59, %v4572_v31  ;;  %1280 = vadd.xlane.f32.xlu1 %v1279_v14  ;;  %v1537_v37 = vrot.slane %v1518_v22, %v4572_v31 }
 0x251   : > { %v1447_v10 = vsel %vm1078_vm3, %v1438_v57, %v1434_v63 }
 0x252   : > { %v1426_v24 = vpop.xlane.xlu0 %1425  ;;  %v1448_v42 = vsel %vm1080_vm4, %v1442_v21, %v1447_v10  ;;  %v1684_v15 = vpop.xlane.xlu1 %1683 }
 0x253   : > { %v1446_v48 = vrot.slane %v1426_v24, %v4572_v31  ;;  %v1701_v36 = vrot.slane %v1684_v15, %v1605_v58  ;;  %v3616_v15 = vld [vmem:[%s5281_s10 + $0x2] sm:$0x3] }
 0x255   : > { %v1449_v20 = vsel %vm1082_vm5, %v1446_v48, %v1448_v42 }
 0x256   : > { %v1515_v23 = vpop.xlane.xlu0 %1514  ;;  %v1451_v29 = vsel %vm1085_vm6, %v1449_v20, 0.0  ;;  %v1690_v44 = vpop.xlane.xlu1 %1689 }
 0x257   : > { %v1533_v26 = vrot.slane %v1515_v23, %v4572_v31  ;;  %1452 = vadd.xlane.f32.xlu1 %v1451_v29  ;;  %v1709_v39 = vrot.slane %v1690_v44, %v1605_v58  ;;  %v1879_v23 = vrot.slane %v3616_v15, %v4632_v27  ;;  %v3617_v29 = vld [vmem:[%s5281_s10 + $0x4] sm:$0x3] }
 0x259   : > { %v1542_v28 = vsel %vm1078_vm3, %v1533_v26, %v1529_v30  ;;  %v3931_v26 = vmov 0.0  }
 0x25a   : > { %v1521_v52 = vpop.xlane.xlu0 %1520  ;;  %v1543_v38 = vsel %vm1080_vm4, %v1537_v37, %v1542_v28  ;;  %v1779_v6 = vpop.xlane.xlu1 %1778  ;;  %463 = vst [vmem:[#allocation2] sm:$0xff] %v3931_v26  ;;  %2321 = vmatprep.mubr.f32.mxu1 %v3931_v26  ;;  %2595 = vmatprep.mubr.f32.mxu0 %v3931_v26  ;;  %v1902_v28 = vrot.slane %v3617_v29, %v4632_v27  ;;  %v4647_v37 = vsub.s32 1, %v4556_v5 }
 0x25b   : > { %v1541_v0 = vrot.slane %v1521_v52, %v4572_v31  ;;  %1624 = vadd.xlane.f32.xlu1 %v1623_v3  ;;  %v1796_v50 = vrot.slane %v1779_v6, %v1605_v58  ;;  %v3618_v52 = vld [vmem:[%s5281_s10 + $0x6] sm:$0x3] }
 0x25c   : > { %v1883_v44 = vrot.slane %v3616_v15, %v4647_v37 }
 0x25d   : > { %v1544_v25 = vsel %vm1082_vm5, %v1541_v0, %v1543_v38  ;;  %v1925_v0 = vrot.slane %v3618_v52, %v4632_v27  ;;  %v3620_v38 = vld [vmem:[%s5281_s10 + $0xa] sm:$0x3] }
 0x25e   : > { %v1687_v33 = vpop.xlane.xlu0 %1686  ;;  %v1546_v41 = vsel %vm1085_vm6, %v1544_v25, 0.0  ;;  %v1785_v62 = vpop.xlane.xlu1 %1784  ;;  %v1906_v25 = vrot.slane %v3617_v29, %v4647_v37 }
 0x25f   : > { %v1705_v61 = vrot.slane %v1687_v33, %v1605_v58  ;;  %1547 = vadd.xlane.f32.xlu0 %v1546_v41  ;;  %v1804_v60 = vrot.slane %v1785_v62, %v1605_v58  ;;  %v1966_v33 = vrot.slane %v3620_v38, %v4632_v27  ;;  %v3621_v41 = vld [vmem:[%s5281_s10 + $0xc] sm:$0x3] }
 0x260   : > { %v1989_v6 = vrot.slane %v3621_v41, %v4632_v27 }
 0x261   : > { %v1714_v51 = vsel %vm1078_vm3, %v1705_v61, %v1701_v36  ;;  %v465_v36 = vld [vmem:[%s4668_s3] sm:$0xff]  ;;  %v1929_v61 = vrot.slane %v3618_v52, %v4647_v37 }
 0x262   : > { %v1693_v40 = vpop.xlane.xlu0 %1692  ;;  %v1715_v45 = vsel %vm1080_vm4, %v1709_v39, %v1714_v51  ;;  %v467_v51 = vcombine.high %v465_v36, %v465_v36  ;;  %469 = vst [vmem:[#allocation2 + $0x8] sm:$0xf] %v465_v36  ;;  %v3622_v39 = vld [vmem:[%s5281_s10 + $0xe] sm:$0x3] }
 0x263   : > { %v1713_v43 = vrot.slane %v1693_v40, %v1605_v58  ;;  %v1970_v40 = vrot.slane %v3620_v38, %v4647_v37 }
 0x264   : > { %470 = vst [vmem:[#allocation2 + $0x10] sm:$0xf] %v467_v51 }
 0x265   : > { %v1716_v31 = vsel %vm1082_vm5, %v1713_v43, %v1715_v45  ;;  %v2012_v43 = vrot.slane %v3622_v39, %v4632_v27  ;;  %v3623_v45 = vld [vmem:[%s5281_s10 + $0x10] sm:$0x3] }
 0x266   : > { %v1782_v46 = vpop.xlane.xlu0 %1781  ;;  %v1718_v34 = vsel %vm1085_vm6, %v1716_v31, 0.0  ;;  %v1993_v31 = vrot.slane %v3621_v41, %v4647_v37 }
 0x267   : > { %v1800_v2 = vrot.slane %v1782_v46, %v1605_v58  ;;  %1719 = vadd.xlane.f32.xlu0 %v1718_v34  ;;  %v2035_v46 = vrot.slane %v3623_v45, %v4632_v27  ;;  %v1851_v34 = vld [vmem:[%s5281_s10] sm:$0x3] }
 0x268   : > { %v1856_v62 = vrot.slane %v1851_v34, %v4632_v27 }
 0x269   : > { %v1809_v11 = vsel %vm1078_vm3, %v1800_v2, %v1796_v50  ;;  %v2016_v50 = vrot.slane %v3622_v39, %v4647_v37  ;;  %v2039_v2 = vrot.slane %v3623_v45, %v4647_v37  ;;  %v3615_v45 = vld [vmem:[%s5278_s7 + $0x10] ss:$8 sm:$0x3] }
 0x26a   : > { %v1788_v4 = vpop.xlane.xlu0 %1787  ;;  %v1810_v7 = vsel %vm1080_vm4, %v1804_v60, %v1809_v11  ;;  %v1860_v11 = vrot.slane %v1851_v34, %v4647_v37  ;;  %v3608_v60 = vld [vmem:[%s5278_s7 + $0x1] ss:$8 sm:$0x3] }
 0x26b   : > { %v1808_v54 = vrot.slane %v1788_v4, %v1605_v58  ;;  %v1091_v4 = vld [vmem:[%s5278_s7] ss:$8 sm:$0x3] }
 0x26d   : > { %v1811_v49 = vsel %vm1082_vm5, %v1808_v54, %v1810_v7  ;;  %v3609_v7 = vld [vmem:[%s5278_s7 + $0x2] ss:$8 sm:$0x3] }
 0x26e   : > { %v1813_v1 = vsel %vm1085_vm6, %v1811_v49, 0.0  ;;  %v1200_v49 = vrot.slane %v3608_v60, %v4632_v27  ;;  %vm2138_vm6 = vcmask 769024  }
 0x26f   : > { %1814 = vadd.xlane.f32.xlu1 %v1813_v1  ;;  %v1204_v1 = vrot.slane %v3608_v60, %v4647_v37 }
 0x2b0   : > { %v1088_v8 = vpop.xlane.xlu1 %1087 }
 0x2b1   : > { %v1089_v53 = vadd.f32 %v1088_v8, %v1038_v12  ;;  %v1295_v8 = vrot.slane %v3609_v7, %v4632_v27 }
 0x2b3   : > { %v1090_v55 = vmax.f32 %v1089_v53, 0.0  ;;  %v1105_v53 = vrot.slane %v1091_v4, %v4647_v37 }
 0x2b5   : > { %1094 = vperm.xlu0 %3825, %v1090_v55  }
 0x2d4   : > { %v1186_v17 = vpop.xlane.xlu0 %1185 }
 0x2d5   : > { %v1187_v16 = vadd.f32 %v1186_v17, %v1038_v12  ;;  %v1299_v17 = vrot.slane %v3609_v7, %v4647_v37 }
 0x2d7   : > { %v1188_v56 = vmax.f32 %v1187_v16, 0.0 }
 0x2d8   : > { %v1358_v35 = vpop.xlane.xlu0 %1357 }
 0x2d9   : > { %v1359_v58 = vadd.f32 %v1358_v35, %v1038_v12  ;;  %1193 = vperm.xlu1 %3826, %v1188_v56  }
 0x2db   : > { %v1360_v59 = vmax.f32 %v1359_v58, 0.0  ;;  %v3610_v58 = vld [vmem:[%s5278_s7 + $0x3] ss:$8 sm:$0x3] }
 0x2dc   : > { %v1281_v14 = vpop.xlane.xlu1 %1280 }
 0x2dd   : > { %v1282_v13 = vadd.f32 %v1281_v14, %v1038_v12  ;;  %1365 = vperm.xlu0 %3825, %v1360_v59   ;;  %v3611_v59 = vld [vmem:[%s5278_s7 + $0x4] ss:$8 sm:$0x3] }
 0x2df   : > { %v1283_v63 = vmax.f32 %v1282_v13, 0.0 }
 0x2e1   : > { %1288 = vperm.xlu1 %3826, %v1283_v63  }
 0x2e4   : > { %v1453_v22 = vpop.xlane.xlu1 %1452 }
 0x2e5   : > { %v1454_v57 = vadd.f32 %v1453_v22, %v1038_v12 }
 0x2e7   : > { %v1455_v9 = vmax.f32 %v1454_v57, 0.0 }
 0x2e8   : > { %v1625_v47 = vpop.xlane.xlu1 %1624 }
 0x2e9   : > { %v1626_v10 = vadd.f32 %v1625_v47, %v1038_v12  ;;  %1460 = vperm.xlu1 %3826, %v1455_v9   ;;  %v3612_v9 = vld [vmem:[%s5278_s7 + $0x5] ss:$8 sm:$0x3] }
 0x2ea   : > { %v1562_v15 = vrot.slane %v3612_v9, %v4632_v27 }
 0x2eb   : > { %v1627_v21 = vmax.f32 %v1626_v10, 0.0  ;;  %v1372_v10 = vrot.slane %v3610_v58, %v4632_v27 }
 0x2ec   : > { %v1548_v24 = vpop.xlane.xlu0 %1547 }
 0x2ed   : > { %v1549_v18 = vadd.f32 %v1548_v24, %v1038_v12  ;;  %1632 = vperm.xlu1 %3826, %v1627_v21   ;;  %v1467_v21 = vrot.slane %v3611_v59, %v4632_v27 }
 0x2ef   : > { %v1550_v48 = vmax.f32 %v1549_v18, 0.0  ;;  %v1376_v18 = vrot.slane %v3610_v58, %v4647_v37 }
 0x2f1   : > { %1555 = vperm.xlu0 %3825, %v1550_v48   ;;  %v1471_v48 = vrot.slane %v3611_v59, %v4647_v37 }
 0x2f4   : > { %v1720_v42 = vpop.xlane.xlu0 %1719 }
 0x2f5   : > { %v1721_v19 = vadd.f32 %v1720_v42, %v1038_v12 }
 0x2f7   : > { %v1722_v20 = vmax.f32 %v1721_v19, 0.0 }
 0x2f9   : > { %1727 = vperm.xlu0 %3825, %v1722_v20  }
 0x2fc   : > { %v1815_v30 = vpop.xlane.xlu1 %1814 }
 0x2fd   : > { %v1816_v32 = vadd.f32 %v1815_v30, %v1038_v12  ;;  %1884 = vrot.lane.b32.xlu0 %v1879_v23, %s3932_s28  ;;  %v1101_v12 = vrot.slane %v1091_v4, %v4632_v27  ;;  %v1566_v23 = vrot.slane %v3612_v9, %v4647_v37 }
 0x2ff   : > { %v1817_v3 = vmax.f32 %v1816_v32, 0.0 }
 0x301   : > { %1822 = vperm.xlu1 %3826, %v1817_v3   ;;  %1907 = vrot.lane.b32.xlu0 %v1902_v28, %s3933_s30  ;;  %v3613_v3 = vld [vmem:[%s5278_s7 + $0x6] ss:$8 sm:$0x3] }
 0x302   : > { %v1639_v36 = vrot.slane %v3613_v3, %v4632_v27  ;;  %v1643_v39 = vrot.slane %v3613_v3, %v4647_v37 }
 0x305   : > { %1886 = vrot.lane.b32.xlu1 %v1883_v44, %s3932_s28  ;;  %1930 = vrot.lane.b32.xlu0 %v1925_v0, %s3928_s26  ;;  %v3614_v44 = vld [vmem:[%s5278_s7 + $0x7] ss:$8 sm:$0x3] }
 0x309   : > { %1909 = vrot.lane.b32.xlu1 %v1906_v25, %s3933_s30  ;;  %1971 = vrot.lane.b32.xlu0 %v1966_v33, %s3934_s18  ;;  %s3940_s30 = smov 96  }
 0x30d   : > { %1932 = vrot.lane.b32.xlu1 %v1929_v61, %s3928_s26  ;;  %1994 = vrot.lane.b32.xlu0 %v1989_v6, %s3935_s2  ;;  %v1734_v61 = vrot.slane %v3614_v44, %v4632_v27 }
 0x311   : > { %1973 = vrot.lane.b32.xlu1 %v1970_v40, %s3934_s18  ;;  %2017 = vrot.lane.b32.xlu0 %v2012_v43, %s3936_s29  ;;  %s3938_s18 = smov 111   ;;  %v1738_v43 = vrot.slane %v3614_v44, %v4647_v37 }
 0x315   : > { %1996 = vrot.lane.b32.xlu1 %v1993_v31, %s3935_s2  ;;  %2040 = vrot.lane.b32.xlu0 %v2035_v46, %s3937_s20  ;;  %s5339_s2 = smov 126  }
 0x319   : > { %2019 = vrot.lane.b32.xlu1 %v2016_v50, %s3936_s29  ;;  %1861 = vrot.lane.b32.xlu0 %v1856_v62, %s3938_s18 }
 0x31d   : > { %2042 = vrot.lane.b32.xlu1 %v2039_v2, %s3937_s20  ;;  %v1829_v2 = vrot.slane %v3615_v45, %v4632_v27 }
 0x321   : > { %1863 = vrot.lane.b32.xlu1 %v1860_v11, %s3938_s18 }
 0x334   : > { %v1095_v55 = vpop.permute.xlu0 %1094 }
 0x335   : > { %v1108_v14 = vmul.f32 %v1101_v12, %v1095_v55  ;;  %v1109_v63 = vmul.f32 %v1105_v53, %v1095_v55 }
 0x358   : > { %v1194_v54 = vpop.permute.xlu1 %1193 }
 0x359   : > { %v1207_v56 = vmul.f32 %v1200_v49, %v1194_v54  ;;  %v1208_v35 = vmul.f32 %v1204_v1, %v1194_v54  ;;  %v1833_v54 = vrot.slane %v3615_v45, %v4647_v37 }
 0x35b   : > { %v1209_v47 = vadd.f32 %v1207_v56, %v1108_v14  ;;  %v1210_v24 = vadd.f32 %v1208_v35, %v1109_v63 }
 0x35c   : > { %v1366_v22 = vpop.permute.xlu0 %1365 }
 0x35d   : > { %v1379_v30 = vmul.f32 %v1372_v10, %v1366_v22  ;;  %v1380_v28 = vmul.f32 %v1376_v18, %v1366_v22 }
 0x360   : > { %v1289_v16 = vpop.permute.xlu1 %1288 }
 0x361   : > { %v1302_v13 = vmul.f32 %v1295_v8, %v1289_v16  ;;  %v1303_v57 = vmul.f32 %v1299_v17, %v1289_v16 }
 0x363   : > { %v1304_v19 = vadd.f32 %v1302_v13, %v1209_v47  ;;  %v1305_v20 = vadd.f32 %v1303_v57, %v1210_v24 }
 0x365   : > { %v1381_v0 = vadd.f32 %v1379_v30, %v1304_v19  ;;  %v1382_v25 = vadd.f32 %v1380_v28, %v1305_v20 }
 0x368   : > { %v1461_v42 = vpop.permute.xlu1 %1460 }
 0x369   : > { %v1474_v32 = vmul.f32 %v1467_v21, %v1461_v42  ;;  %v1475_v52 = vmul.f32 %v1471_v48, %v1461_v42 }
 0x36b   : > { %v1476_v41 = vadd.f32 %v1474_v32, %v1381_v0  ;;  %v1477_v51 = vadd.f32 %v1475_v52, %v1382_v25 }
 0x36c   : > { %v1633_v40 = vpop.permute.xlu1 %1632 }
 0x36d   : > { %v1646_v34 = vmul.f32 %v1639_v36, %v1633_v40  ;;  %v1647_v11 = vmul.f32 %v1643_v39, %v1633_v40 }
 0x370   : > { %v1556_v29 = vpop.permute.xlu0 %1555 }
 0x371   : > { %v1569_v38 = vmul.f32 %v1562_v15, %v1556_v29  ;;  %v1570_v33 = vmul.f32 %v1566_v23, %v1556_v29  ;;  %v3619_v29 = vld [vmem:[%s5281_s10 + $0x8] sm:$0x3] }
 0x372   : > { %v1948_v28 = vrot.slane %v3619_v29, %v4632_v27  ;;  %v1952_v0 = vrot.slane %v3619_v29, %v4647_v37 }
 0x373   : > { %v1571_v31 = vadd.f32 %v1569_v38, %v1476_v41  ;;  %v1572_v46 = vadd.f32 %v1570_v33, %v1477_v51 }
 0x375   : > { %v1648_v7 = vadd.f32 %v1646_v34, %v1571_v31  ;;  %v1649_v49 = vadd.f32 %v1647_v11, %v1572_v46 }
 0x378   : > { %v1728_v6 = vpop.permute.xlu0 %1727 }
 0x379   : > { %v1741_v50 = vmul.f32 %v1734_v61, %v1728_v6  ;;  %v1742_v60 = vmul.f32 %v1738_v43, %v1728_v6 }
 0x37b   : > { %v1743_v1 = vadd.f32 %v1741_v50, %v1648_v7  ;;  %v1744_v53 = vadd.f32 %v1742_v60, %v1649_v49 }
 0x37c   : > { %v1885_v62 = vpop.permute.xlu0 %1884 }
 0x37d   : > { %v1893_v4 = vmul.f32 0.0, %v1885_v62 }
 0x37f   : > { %2055 = vrot.lane.b32.xlu0 %v1893_v4, %s3928_s26 }
 0x380   : > { %v1823_v12 = vpop.permute.xlu1 %1822  ;;  %v1908_v8 = vpop.permute.xlu0 %1907 }
 0x381   : > { %v1836_v55 = vmul.f32 %v1829_v2, %v1823_v12  ;;  %v1837_v17 = vmul.f32 %v1833_v54, %v1823_v12  ;;  %v1916_v16 = vmul.f32 0.0, %v1908_v8 }
 0x383   : > { %v1838_v56 = vadd.f32 %v1836_v55, %v1743_v1  ;;  %v1839_v35 = vadd.f32 %v1837_v17, %v1744_v53  ;;  %2066 = vrot.lane.b32.xlu1 %v1916_v16, %s5339_s2 }
 0x384   : > { %v1887_v58 = vpop.permute.xlu1 %1886  ;;  %v1931_v59 = vpop.permute.xlu0 %1930 }
 0x385   : > { %v1842_v14 = vrot.slane %v1838_v56, 4  ;;  %v1843_v13 = vrot.slane %v1839_v35, 4  ;;  %v1939_v63 = vmul.f32 0.0, %v1931_v59  ;;  %v1889_v42 = vsel %vm1888_vm7, %v1885_v62, %v1887_v58 }
 0x387   : > { %1846 = vst [vmem:[#allocation2 + $0x8] sm:$0xf0] %v1842_v14  ;;  %1847 = vst [vmem:[#allocation2 + $0x10] sm:$0xf0] %v1843_v13  ;;  %2078 = vrot.lane.b32.xlu0 %v1939_v63, %s3932_s28 }
 0x388   : > { %v1910_v22 = vpop.permute.xlu1 %1909  ;;  %v1972_v52 = vpop.permute.xlu0 %1971 }
 0x389   : > { %v1912_v19 = vsel %vm1911_vm8, %v1908_v8, %v1910_v22 }
 0x38c   : > { %v1933_v57 = vpop.permute.xlu1 %1932  ;;  %v1995_v38 = vpop.permute.xlu0 %1994 }
 0x38d   : > { %v1935_v23 = vsel %vm1934_vm9, %v1931_v59, %v1933_v57 }
 0x38e   : > { %v4743_v10 = vld [vmem:[#allocation2 + $0x10] sm:$0xff]  ;;  %v4747_v48 = vld [vmem:[#allocation2 + $0x8] sm:$0xff] }
 0x38f   : > { %v1895_v24 = vmul.f32 %v1887_v58, %v4743_v10  ;;  %v1894_v15 = vmul.f32 %v1889_v42, %v4747_v48  ;;  %v1917_v20 = vmul.f32 %v1912_v19, %v4747_v48  ;;  %v1918_v30 = vmul.f32 %v1910_v22, %v4743_v10 }
 0x390   : > { %v1974_v9 = vpop.permute.xlu1 %1973  ;;  %v1940_v32 = vmul.f32 %v1935_v23, %v4747_v48  ;;  %v1941_v3 = vmul.f32 %v1933_v57, %v4743_v10  ;;  %v1955_v44 = vmul.f32 %v1948_v28, %v4747_v48  ;;  %v1980_v25 = vmul.f32 %v1972_v52, %v4747_v48  ;;  %v2018_v39 = vpop.permute.xlu0 %2017 }
 0x391   : > { %v1982_v47 = vmul.f32 0.0, %v1974_v9  ;;  %v1956_v33 = vmul.f32 %v1952_v0, %v4743_v10  ;;  %v1976_v41 = vsel %vm1975_vm10, %v1972_v52, %v1974_v9  ;;  %v2003_v40 = vmul.f32 %v1995_v38, %v4747_v48 }
 0x392   : > { %v1981_v61 = vmul.f32 %v1976_v41, %v4743_v10  ;;  %v2026_v43 = vmul.f32 %v2018_v39, %v4747_v48 }
 0x393   : > { %2100 = vrot.lane.b32.xlu1 %v1982_v47, %s3939_s16 }
 0x394   : > { %v1997_v21 = vpop.permute.xlu1 %1996  ;;  %v2041_v34 = vpop.permute.xlu0 %2040 }
 0x395   : > { %v2005_v18 = vmul.f32 0.0, %v1997_v21  ;;  %v1999_v36 = vsel %vm1998_vm11, %v1995_v38, %v1997_v21  ;;  %v2049_v2 = vmul.f32 %v2041_v34, %v4747_v48 }
 0x396   : > { %v2004_v6 = vmul.f32 %v1999_v36, %v4743_v10 }
 0x397   : > { %2112 = vrot.lane.b32.xlu0 %v2005_v18, %s3940_s30  ;;  %2059 = vrot.lane.b32.xlu1 %v1895_v24, %s3928_s26 }
 0x398   : > { %v2020_v51 = vpop.permute.xlu1 %2019  ;;  %v1862_v60 = vpop.permute.xlu0 %1861 }
 0x399   : > { %v2022_v45 = vsel %vm2021_vm12, %v2018_v39, %v2020_v51  ;;  %v2028_v31 = vmul.f32 0.0, %v2020_v51  ;;  %v1870_v7 = vmul.f32 0.0, %v1862_v60 }
 0x39a   : > { %v2027_v50 = vmul.f32 %v2022_v45, %v4743_v10 }
 0x39b   : > { %2057 = vrot.lane.b32.xlu0 %v1894_v15, %s3928_s26  ;;  %2068 = vrot.lane.b32.xlu1 %v1917_v20, %s5339_s2  ;;  %s3941_s26 = smov 95  }
 0x39c   : > { %v2043_v46 = vpop.permute.xlu1 %2042 }
 0x39d   : > { %v2045_v62 = vsel %vm2044_vm13, %v2041_v34, %v2043_v46  ;;  %v2051_v4 = vmul.f32 0.0, %v2043_v46 }
 0x39e   : > { %v2050_v11 = vmul.f32 %v2045_v62, %v4743_v10 }
 0x39f   : > { %2070 = vrot.lane.b32.xlu0 %v1918_v30, %s5339_s2  ;;  %2080 = vrot.lane.b32.xlu1 %v1940_v32, %s3932_s28 }
 0x3a0   : > { %v1864_v54 = vpop.permute.xlu1 %1863 }
 0x3a1   : > { %v1866_v49 = vsel %vm1865_vm14, %v1862_v60, %v1864_v54  ;;  %v1872_v1 = vmul.f32 %v1864_v54, %v4743_v10 }
 0x3a2   : > { %v1871_v12 = vmul.f32 %v1866_v49, %v4747_v48 }
 0x3a3   : > { %2082 = vrot.lane.b32.xlu0 %v1941_v3, %s3932_s28  ;;  %2088 = vrot.lane.b32.xlu1 %v1955_v44, %s3938_s18  ;;  %s3942_s28 = smov 94  }
 0x3a7   : > { %2090 = vrot.lane.b32.xlu0 %v1956_v33, %s3938_s18  ;;  %2096 = vrot.lane.b32.xlu1 %v1980_v25, %s3939_s16  ;;  %s3646_s18 = sshll.u32 %s4032_s25, 7 }
 0x3ab   : > { %2098 = vrot.lane.b32.xlu0 %v1981_v61, %s3939_s16  ;;  %2110 = vrot.lane.b32.xlu1 %v2004_v6, %s3940_s30 }
 0x3af   : > { %2108 = vrot.lane.b32.xlu0 %v2003_v40, %s3940_s30  ;;  %2120 = vrot.lane.b32.xlu1 %v2026_v43, %s3941_s26 }
 0x3b3   : > { %2122 = vrot.lane.b32.xlu0 %v2027_v50, %s3941_s26  ;;  %2124 = vrot.lane.b32.xlu1 %v2028_v31, %s3941_s26  ;;  %s5198_s26 = scalar_lea.hbm %s5282_s11, %s3646_s18 }
 0x3b7   : > { %2132 = vrot.lane.b32.xlu0 %v2049_v2, %s3942_s28  ;;  %2134 = vrot.lane.b32.xlu1 %v2050_v11, %s3942_s28 }
 0x3bb   : > { %2136 = vrot.lane.b32.xlu0 %v2051_v4, %s3942_s28  ;;  %2145 = vrot.lane.b32.xlu1 %v1870_v7, %s3937_s20  ;;  %s5120_s28 = scalar_lea.vmem %s5345_s1, %s3644_s15  ;;  %s3944_s15 = smov [#allocation3]  }
 0x3bc   : > { %s3833_s29 = sshll.u32 %s3944_s15, 4  ;;  %s3834_s29 = int_to_ptr.vmem [resolvable:$false] %s3833_s29 }
 0x3bd   : > { %s3835_s1 = scalar_lea.vmem %s3834_s29, 256 }
 0x3bf   : > { %2147 = vrot.lane.b32.xlu1 %v1871_v12, %s3937_s20  ;;  %2149 = vrot.lane.b32.xlu0 %v1872_v1, %s3937_s20 }
 0x3f1   : > { %v2056_v8 = vpop.permute.xlu0 %2055 }
 0x3f5   : > { %v2067_v53 = vpop.permute.xlu1 %2066 }
 0x3f9   : > { %v2079_v55 = vpop.permute.xlu0 %2078 }
 0x405   : > { %v2101_v17 = vpop.permute.xlu1 %2100 }
 0x409   : > { %v2113_v16 = vpop.permute.xlu0 %2112  ;;  %v2060_v56 = vpop.permute.xlu1 %2059 }
 0x40a   : > { %2155 = vrot.lane.b32.xlu0 %v2060_v56, %s3937_s20 }
 0x40d   : > { %v2058_v35 = vpop.permute.xlu0 %2057  ;;  %v2069_v58 = vpop.permute.xlu1 %2068 }
 0x40e   : > { %v2061_v47 = vsel %vm1934_vm9, %v2056_v8, %v2058_v35  ;;  %v2062_v24 = vsel %vm1934_vm9, %v2058_v35, %v2060_v56  ;;  %v2073_v32 = vsel %vm2072_vm0, %v2067_v53, %v2069_v58 }
 0x411   : > { %v2071_v59 = vpop.permute.xlu0 %2070  ;;  %v2081_v14 = vpop.permute.xlu1 %2080 }
 0x412   : > { %2161 = vrot.lane.b32.xlu0 %v2071_v59, %s3937_s20  ;;  %v2084_v18 = vsel %vm1888_vm7, %v2079_v55, %v2081_v14  ;;  %v2074_v42 = vsel %vm2072_vm0, %v2069_v58, %v2071_v59 }
 0x415   : > { %v2083_v13 = vpop.permute.xlu0 %2082  ;;  %v2089_v63 = vpop.permute.xlu1 %2088 }
 0x416   : > { %2169 = vrot.lane.b32.xlu1 %v2089_v63, %s3937_s20  ;;  %2167 = vrot.lane.b32.xlu0 %v2083_v13, %s3937_s20  ;;  %v2085_v20 = vsel %vm1888_vm7, %v2081_v14, %v2083_v13  ;;  %vm2235_vm7 = vcmask 588800  }
 0x419   : > { %v2091_v22 = vpop.permute.xlu0 %2090  ;;  %v2097_v57 = vpop.permute.xlu1 %2096 }
 0x41a   : > { %2173 = vrot.lane.b32.xlu0 %v2091_v22, %s3937_s20  ;;  %v2092_v52 = vsel %vm1865_vm14, %v2089_v63, %v2091_v22 }
 0x41d   : > { %v2099_v9 = vpop.permute.xlu0 %2098  ;;  %v2111_v21 = vpop.permute.xlu1 %2110 }
 0x41e   : > { %2175 = vrot.lane.b32.xlu0 %v2097_v57, %s3937_s20  ;;  %v2104_v19 = vsel %vm2102_vm15, %v2099_v9, %v2101_v17  ;;  %v2116_v23 = vsel %vm2114_vm1, %v2111_v21, %v2113_v16  ;;  %v2103_v0 = vsel %vm2102_vm15, %v2097_v57, %v2099_v9 }
 0x421   : > { %v2109_v10 = vpop.permute.xlu0 %2108  ;;  %v2121_v48 = vpop.permute.xlu1 %2120 }
 0x422   : > { %2181 = vrot.lane.b32.xlu1 %v2109_v10, %s3937_s20  ;;  %2151 = vrot.lane.b32.xlu0 %v2061_v47, %s3937_s20  ;;  %v2115_v25 = vsel %vm2114_vm1, %v2109_v10, %v2111_v21 }
 0x425   : > { %v2123_v15 = vpop.permute.xlu0 %2122  ;;  %v2125_v29 = vpop.permute.xlu1 %2124 }
 0x426   : > { %2153 = vrot.lane.b32.xlu1 %v2062_v24, %s3937_s20  ;;  %2163 = vrot.lane.b32.xlu0 %v2084_v18, %s3937_s20  ;;  %v2128_v28 = vsel %vm2126_vm2, %v2123_v15, %v2125_v29  ;;  %v2127_v33 = vsel %vm2126_vm2, %v2121_v48, %v2123_v15 }
 0x429   : > { %v2133_v30 = vpop.permute.xlu0 %2132  ;;  %v2135_v44 = vpop.permute.xlu1 %2134 }
 0x42a   : > { %2159 = vrot.lane.b32.xlu1 %v2074_v42, %s3937_s20  ;;  %2179 = vrot.lane.b32.xlu0 %v2104_v19, %s3937_s20  ;;  %v2139_v41 = vsel %vm2138_vm6, %v2133_v30, %v2135_v44  ;;  %v2141_v42 = vld [vmem:[%s5279_s8] sm:$0x3] }
 0x42d   : > { %v2137_v3 = vpop.permute.xlu0 %2136  ;;  %v2146_v51 = vpop.permute.xlu1 %2145 }
 0x42e   : > { %2165 = vrot.lane.b32.xlu1 %v2085_v20, %s3937_s20  ;;  %2185 = vrot.lane.b32.xlu0 %v2116_v23, %s3937_s20  ;;  %v2140_v38 = vsel %vm2138_vm6, %v2135_v44, %v2137_v3 }
 0x431   : > { %v2150_v36 = vpop.permute.xlu0 %2149  ;;  %v2148_v40 = vpop.permute.xlu1 %2147 }
 0x432   : > { %2157 = vrot.lane.b32.xlu1 %v2073_v32, %s3937_s20  ;;  %2191 = vrot.lane.b32.xlu0 %v2128_v28, %s3937_s20  ;;  %v2200_v46 = vsel %vm2044_vm13, %v2148_v40, %v2150_v36  ;;  %v2199_v62 = vsel %vm2044_vm13, %v2146_v51, %v2148_v40  ;;  %v2237_v32 = vsel %vm2235_vm7, %v2141_v42, 0 }
 0x433   : > { %v2239_v2 = vand.u32 4294901760, %v2200_v46  ;;  %v2241_v60 = vand.u32 4294901760, %v2199_v62 }
 0x435   : > { %v4835_v12 = vsub.f32 %v2200_v46, %v2239_v2  ;;  %v4845_v56 = vsub.f32 %v2199_v62, %v2241_v60 }
 0x436   : > { %2171 = vrot.lane.b32.xlu1 %v2092_v52, %s3937_s20  ;;  %2187 = vrot.lane.b32.xlu0 %v2121_v48, %s3937_s20 }
 0x43a   : > { %2177 = vrot.lane.b32.xlu1 %v2103_v0, %s3937_s20  ;;  %2197 = vrot.lane.b32.xlu0 %v2140_v38, %s3937_s20  ;;  %v4880_v0 = vand.u32 4294901760, %v2237_v32  ;;  %v2341_v38 = vand.u32 4294901760, %v4845_v56 }
 0x43e   : > { %2183 = vrot.lane.b32.xlu1 %v2115_v25, %s3937_s20  ;;  %v2335_v25 = vand.u32 4294901760, %v4835_v12 }
 0x442   : > { %2189 = vrot.lane.b32.xlu1 %v2127_v33, %s3937_s20 }
 0x446   : > { %2195 = vrot.lane.b32.xlu1 %v2139_v41, %s3937_s20 }
 0x44a   : > { %2193 = vrot.lane.b32.xlu1 %v2133_v30, %s3937_s20  ;;  %s3512_s20 = sshll.u32 %s5185_s17, 3 }
 0x44b   : > { %s440_s19 = scalar_lea.vmem [#allocation3], %s3512_s20  ;;  %s5191_s16 = scalar_lea.vmem [#allocation5], %s3512_s20 }
 0x44c   : > { %s3379_s2 = sshll.u32 %s440_s19, 4  ;;  %s3393_s30 = sshll.u32 %s5191_s16, 4  ;;  %s5200_s2 = int_to_ptr.vmem [resolvable:$true] %s3379_s2  ;;  %s5207_s30 = int_to_ptr.vmem [resolvable:$true] %s3393_s30 }
 0x44d   : > { %s3360_s20 = scalar_lea.sflag [#allocation4], %s5185_s17  ;;  %s3829_s0 = scalar_lea.vmem %s5200_s2, 128 }
 0x44e   : > { %p3830_p11 = scmp.ne.s32.totalorder %s5200_s2, %s3829_s0  ;;  %p3836_p0 = scmp.lt.s32.totalorder %s5200_s2, %s3834_s29 }
 0x44f   : > { %p3837_p1 = scmp.lt.s32.totalorder %s3835_s1, %s3829_s0 }
 0x450   : > { %p3831_p12 = pnand %p3830_p11, %p4049_p5 }
 0x451   : > { %p3838_p2 = por %p3837_p1, %p3836_p0 }
 0x452   : > { %p3832_p13 = pneg %p3831_p12 }
 0x454   : > { %p3839_p3 = pnand %p3838_p2, %p3832_p13 }
 0x47c   : > { %v2156_v61 = vpop.permute.xlu0 %2155 }
 0x484   : > { %v2162_v6 = vpop.permute.xlu0 %2161 }
 0x488   : > { %v2168_v39 = vpop.permute.xlu0 %2167  ;;  %v2170_v45 = vpop.permute.xlu1 %2169 }
 0x48c   : > { %v2174_v43 = vpop.permute.xlu0 %2173 }
 0x490   : > { %v4827_v31 = vpop.permute.xlu0 %2175 }
 0x494   : > { %v4830_v34 = vpop.permute.xlu1 %2181  ;;  %v2152_v50 = vpop.permute.xlu0 %2151 }
 0x498   : > { %v2154_v11 = vpop.permute.xlu1 %2153  ;;  %v2164_v1 = vpop.permute.xlu0 %2163 }
 0x499   : > { %v2201_v4 = vsel %vm2044_vm13, %v2152_v50, %v2154_v11  ;;  %v2202_v54 = vsel %vm2044_vm13, %v2154_v11, %v2156_v61 }
 0x49a   : > { %v2243_v7 = vand.u32 4294901760, %v2202_v54  ;;  %v2245_v49 = vand.u32 4294901760, %v2201_v4 }
 0x49c   : > { %v4837_v8 = vsub.f32 %v2202_v54, %v2243_v7  ;;  %v4839_v53 = vsub.f32 %v2201_v4, %v2245_v49  ;;  %v2160_v55 = vpop.permute.xlu1 %2159  ;;  %v4841_v17 = vpack.c.bf16 %v2243_v7, %v2239_v2  ;;  %v4843_v16 = vpack.c.bf16 %v2245_v49, %v2241_v60  ;;  %v2180_v13 = vpop.permute.xlu0 %2179 }
 0x49d   : > { %v2204_v35 = vsel %vm2044_vm13, %v2160_v55, %v2162_v6 }
 0x49e   : > { %3649 = vmatprep.subr.bf16.mxu1 %v4841_v17  ;;  %v3680_v58 = vpack.c.bf16 %v4837_v8, %v4835_v12  ;;  %v3682_v59 = vpack.c.bf16 %v4839_v53, %v4845_v56  ;;  %v2247_v14 = vand.u32 4294901760, %v2204_v35  ;;  %v2347_v54 = vand.u32 4294901760, %v4837_v8 }
 0x49f   : > { %3651 = vmatpush1.bf16.msra.mxu1 %v4843_v16  ;;  %v2353_v7 = vand.u32 4294901760, %v4839_v53 }
 0x4a0   : > { %v2166_v63 = vpop.permute.xlu1 %2165  ;;  %3681 = vmatprep.subr.bf16.mxu0 %v3680_v58  ;;  %v4856_v47 = vsub.f32 %v2204_v35, %v2247_v14  ;;  %v2186_v19 = vpop.permute.xlu0 %2185 }
 0x4a1   : > { %v2206_v22 = vsel %vm2044_vm13, %v2166_v63, %v2168_v39  ;;  %3683 = vmatpush1.bf16.msra.mxu0 %v3682_v59  ;;  %v2205_v57 = vsel %vm2044_vm13, %v2164_v1, %v2166_v63 }
 0x4a2   : > { %v2251_v9 = vand.u32 4294901760, %v2206_v22  ;;  %v2253_v18 = vand.u32 4294901760, %v2205_v57 }
 0x4a4   : > { %v4858_v10 = vsub.f32 %v2206_v22, %v2251_v9  ;;  %v2158_v21 = vpop.permute.xlu1 %2157  ;;  %v4860_v24 = vpack.c.bf16 %v2251_v9, %v2247_v14  ;;  %v4873_v28 = vsub.f32 %v2205_v57, %v2253_v18  ;;  %v2192_v33 = vpop.permute.xlu0 %2191 }
 0x4a5   : > { %v2203_v48 = vsel %vm2044_vm13, %v2158_v21, %v2160_v55 }
 0x4a6   : > { %v2249_v15 = vand.u32 4294901760, %v2203_v48  ;;  %3653 = vmatprep.subr.bf16.mxu1 %v4860_v24  ;;  %v3684_v20 = vpack.c.bf16 %v4858_v10, %v4856_v47  ;;  %v2371_v35 = vand.u32 4294901760, %v4858_v10 }
 0x4a8   : > { %v4869_v23 = vsub.f32 %v2203_v48, %v2249_v15  ;;  %v2172_v29 = vpop.permute.xlu1 %2171  ;;  %3685 = vmatprep.subr.bf16.mxu0 %v3684_v20  ;;  %v4871_v30 = vpack.c.bf16 %v2253_v18, %v2249_v15  ;;  %v2188_v49 = vpop.permute.xlu0 %2187  ;;  %v2354_v18 = vsub.f32 %v4839_v53, %v2353_v7  ;;  %v2359_v15 = vand.u32 4294901760, %v4856_v47 }
 0x4a9   : > { %v2207_v52 = vsel %vm2044_vm13, %v2170_v45, %v2172_v29  ;;  %v2208_v3 = vsel %vm2044_vm13, %v2172_v29, %v2174_v43  ;;  %v4888_v43 = vsub.f32 %v2237_v32, %v4880_v0  ;;  %v4893_v45 = vsub.f32 %v4845_v56, %v2341_v38 }
 0x4aa   : > { %3655 = vmatpush1.bf16.msra.mxu1 %v4871_v30  ;;  %v3686_v44 = vpack.c.bf16 %v4873_v28, %v4869_v23  ;;  %v2255_v36 = vand.u32 4294901760, %v2208_v3  ;;  %v2257_v61 = vand.u32 4294901760, %v2207_v52  ;;  %v5298_v20 = vand.u32 4294901760, %v4869_v23 }
 0x4ab   : > { %v2324_v14 = vand.u32 4294901760, %v4888_v43  ;;  %v2372_v32 = vsub.f32 %v4858_v10, %v2371_v35  ;;  %v5341_v56 = vand.u32 4294901760, %v4873_v28 }
 0x4ac   : > { %v2178_v41 = vpop.permute.xlu1 %2177  ;;  %3687 = vmatpush1.bf16.msra.mxu0 %v3686_v44  ;;  %v4904_v2 = vsub.f32 %v2208_v3, %v2255_v36  ;;  %v4906_v11 = vsub.f32 %v2207_v52, %v2257_v61  ;;  %v2198_v3 = vpop.permute.xlu0 %2197 }
 0x4ad   : > { %v2209_v6 = vsel %vm2044_vm13, %v4827_v31, %v2178_v41  ;;  %v2210_v51 = vsel %vm2044_vm13, %v2178_v41, %v2180_v13  ;;  %v4902_v31 = vsub.f32 %v4835_v12, %v2335_v25  ;;  %v2343_v13 = vand.u32 4294901760, %v4893_v45 }
 0x4ae   : > { %v2259_v39 = vand.u32 4294901760, %v2210_v51  ;;  %v2261_v40 = vand.u32 4294901760, %v2209_v6  ;;  %v2325_v29 = vsub.f32 %v4888_v43, %v2324_v14  ;;  %v5300_v45 = vand.u32 4294901760, %v4873_v28 }
 0x4af   : > { %v3716_v12 = vpack.c.bf16 %v2371_v35, %v2359_v15 }
 0x4b0   : > { %v4895_v46 = vsub.f32 %v2210_v51, %v2259_v39  ;;  %v2184_v50 = vpop.permute.xlu1 %2183  ;;  %v4897_v62 = vpack.c.bf16 %v2259_v39, %v2255_v36  ;;  %v4908_v60 = vsub.f32 %v2209_v6, %v2261_v40  ;;  %v4910_v4 = vpack.c.bf16 %v2261_v40, %v2257_v61 }
 0x4b1   : > { %v2211_v1 = vsel %vm2044_vm13, %v4830_v34, %v2184_v50  ;;  %v2212_v55 = vsel %vm2044_vm13, %v2184_v50, %v2186_v19  ;;  %v2337_v34 = vand.u32 4294901760, %v4902_v31  ;;  %v2348_v19 = vsub.f32 %v4837_v8, %v2347_v54 }
 0x4b2   : > { %3657 = vmatprep.subr.bf16.mxu1 %v4897_v62  ;;  %v3688_v58 = vpack.c.bf16 %v4895_v46, %v4904_v2  ;;  %v3690_v59 = vpack.c.bf16 %v4908_v60, %v4906_v11  ;;  %v2263_v22 = vand.u32 4294901760, %v2212_v55  ;;  %v2265_v57 = vand.u32 4294901760, %v2211_v1 }
 0x4b3   : > { %3659 = vmatpush1.bf16.msra.mxu1 %v4910_v4  ;;  %v5299_v52 = vand.u32 4294901760, %v4895_v46  ;;  %v2355_v40 = vand.u32 4294901760, %v2354_v18  ;;  %v2349_v31 = vand.u32 4294901760, %v2348_v19  ;;  %v2378_v19 = vsub.f32 %v4873_v28, %v5300_v45 }
 0x4b4   : > { %v2190_v63 = vpop.permute.xlu1 %2189  ;;  %3689 = vmatprep.subr.bf16.mxu0 %v3688_v58  ;;  %v4950_v61 = vsub.f32 %v2212_v55, %v2263_v22  ;;  %v4952_v6 = vsub.f32 %v2211_v1, %v2265_v57  ;;  %v2360_v58 = vsub.f32 %v4856_v47, %v2359_v15  ;;  %v5340_v8 = vand.u32 4294901760, %v4869_v23  ;;  %v2912_v15 = vld [vmem:[%s5280_s9] ss:$2 sm:$0x3] }
 0x4b5   : > { %v2213_v9 = vsel %vm2044_vm13, %v2188_v49, %v2190_v63  ;;  %v2214_v21 = vsel %vm2044_vm13, %v2190_v63, %v2192_v33  ;;  %3691 = vmatpush1.bf16.msra.mxu0 %v3690_v59  ;;  %v2383_v49 = vand.u32 4294901760, %v4904_v2  ;;  %v2366_v59 = vsub.f32 %v4869_v23, %v5298_v20 }
 0x4b6   : > { %v2267_v48 = vand.u32 4294901760, %v2214_v21  ;;  %v2269_v42 = vand.u32 4294901760, %v2213_v9  ;;  %v2401_v63 = vand.u32 4294901760, %v4908_v60  ;;  %v2407_v20 = vand.u32 4294901760, %v4950_v61 }
 0x4b7   : > { %v5342_v53 = vand.u32 4294901760, %v4895_v46  ;;  %v5343_v10 = vand.u32 4294901760, %v4952_v6 }
 0x4b8   : > { %v4944_v44 = vsub.f32 %v2214_v21, %v2267_v48  ;;  %v4946_v33 = vsub.f32 %v2213_v9, %v2269_v42  ;;  %v2196_v41 = vpop.permute.xlu1 %2195  ;;  %v4948_v36 = vpack.c.bf16 %v2267_v48, %v2263_v22  ;;  %v4955_v39 = vpack.c.bf16 %v2269_v42, %v2265_v57 }
 0x4b9   : > { %v2216_v51 = vsel %vm2044_vm13, %v2196_v41, %v2198_v3  ;;  %v2326_v9 = vand.u32 4294901760, %v2325_v29  ;;  %v2373_v48 = vand.u32 4294901760, %v2372_v32  ;;  %v2396_v42 = vsub.f32 %v4895_v46, %v5299_v52 }
 0x4ba   : > { %v4958_v50 = vand.u32 4294901760, %v2216_v51  ;;  %3661 = vmatprep.subr.bf16.mxu1 %v4948_v36  ;;  %v3692_v1 = vpack.c.bf16 %v4944_v44, %v4950_v61  ;;  %v3694_v55 = vpack.c.bf16 %v4946_v33, %v4952_v6  ;;  %v2419_v21 = vand.u32 4294901760, %v4944_v44 }
 0x4bb   : > { %3663 = vmatpush1.bf16.msra.mxu1 %v4955_v39  ;;  %v2389_v3 = vand.u32 4294901760, %v4906_v11  ;;  %v3666_v29 = vpack.c.bf16 %v2355_v40, %v2343_v13  ;;  %v2361_v32 = vand.u32 4294901760, %v2360_v58  ;;  %v2402_v52 = vsub.f32 %v4908_v60, %v2401_v63 }
 0x4bc   : > { %v4975_v22 = vsub.f32 %v2216_v51, %v4958_v50  ;;  %v2194_v57 = vpop.permute.xlu1 %2193  ;;  %2272 = vmatprep.subr.mxu1 %v4958_v50  ;;  %3693 = vmatprep.subr.bf16.mxu0 %v3692_v1  ;;  %v2384_v1 = vsub.f32 %v4904_v2, %v2383_v49  ;;  %v5301_v45 = vand.u32 4294901760, %v4946_v33  ;;  %v2420_v40 = vsub.f32 %v4944_v44, %v2419_v21  ;;  %v3624_v44 = vld [vmem:[%s5280_s9 + $0x1] ss:$2 sm:$0x3] }
 0x4bd   : > { %v2215_v18 = vsel %vm2044_vm13, %v2194_v57, %v2196_v41  ;;  %3695 = vmatpush1.bf16.msra.mxu0 %v3694_v55  ;;  %v3664_v41 = vpack.c.bf16 %v2349_v31, %v2337_v34  ;;  %v2367_v57 = vand.u32 4294901760, %v2366_v59  ;;  %v3668_v13 = vpack.c.bf16 %v2373_v48, %v2361_v32 }
 0x4be   : > { %v4987_v51 = vand.u32 4294901760, %v2215_v18  ;;  %2545 = vmatprep.subr.mxu0 %v4975_v22  ;;  %v2397_v34 = vand.u32 4294901760, %v2396_v42  ;;  %v2379_v31 = vand.u32 4294901760, %v2378_v19  ;;  %v2390_v58 = vsub.f32 %v4906_v11, %v2389_v3 }
 0x4bf   : > { %v5302_v59 = vand.u32 4294901760, %v4952_v6  ;;  %v2403_v48 = vand.u32 4294901760, %v2402_v52  ;;  %v2426_v42 = vsub.f32 %v4946_v33, %v5301_v45  ;;  %v2431_v32 = vand.u32 4294901760, %v4975_v22 }
 0x4c0   : > { %v4999_v55 = vsub.f32 %v2215_v18, %v4987_v51  ;;  %2274 = vmatpush1.msra.mxu1 %v4987_v51  ;;  %v2408_v18 = vsub.f32 %v4950_v61, %v2407_v20  ;;  %v3670_v19 = vpack.c.bf16 %v2379_v31, %v2367_v57  ;;  %v3722_v47 = vpack.c.bf16 %v2401_v63, %v2389_v3 }
 0x4c1   : > { %3665 = vmatprep.subr.bf16.mxu1 %v3664_v41  ;;  %2327 = vmatmul.mubr.f32.vlgmr.msra.gmra.mrb[0].mxu1 %v2326_v9  ;;  %v2385_v9 = vand.u32 4294901760, %v2384_v1  ;;  %v2421_v41 = vand.u32 4294901760, %v2420_v40  ;;  %v2391_v1 = vand.u32 4294901760, %v2390_v58  ;;  %v2414_v52 = vsub.f32 %v4952_v6, %v5302_v59 }
 0x4c2   : > { %3667 = vmatpush1.bf16.msra.mxu1 %v3666_v29  ;;  %2548 = vmatpush1.msra.mxu0 %v4999_v55  ;;  %v2409_v57 = vand.u32 4294901760, %v2408_v18  ;;  %v2437_v31 = vand.u32 4294901760, %v4999_v55  ;;  %v2432_v40 = vsub.f32 %v4975_v22, %v2431_v32  ;;  %v3714_v22 = vpack.c.bf16 %v2353_v7, %v2341_v38 }
 0x4c3   : > { %3669 = vmatprep.subr.bf16.mxu1 %v3668_v13  ;;  %3697 = vmatprep.subr.bf16.mxu0 %v4841_v17  ;;  %v3672_v29 = vpack.c.bf16 %v2397_v34, %v2385_v9  ;;  %v2427_v13 = vand.u32 4294901760, %v2426_v42  ;;  %v3674_v45 = vpack.c.bf16 %v2403_v48, %v2391_v1  ;;  %v2415_v9 = vand.u32 4294901760, %v2414_v52 }
 0x4c4   : > { %2598 = vmatmul.mubr.f32.vlgmr.msra.gmra.mrb[0].mxu0 %v4888_v43  ;;  %2487 = vmatprep.mubr.f32.mxu1 %v3931_v26  ;;  %v3676_v34 = vpack.c.bf16 %v2421_v41, %v2409_v57  ;;  %v2438_v58 = vsub.f32 %v4999_v55, %v2437_v31  ;;  %v2433_v18 = vand.u32 4294901760, %v2432_v40  ;;  %v3720_v38 = vpack.c.bf16 %v5342_v53, %v2383_v49  ;;  %v5076_v43 = vld [vmem:[#allocation2] sm:$0xff] }
 0x4c5   : > { %3699 = vmatpush1.bf16.msra.mxu0 %v4843_v16  ;;  %2686 = vmatprep.mubr.f32.mxu0 %v3931_v26  ;;  %v3678_v59 = vpack.c.bf16 %v2427_v13, %v2415_v9  ;;  %v5344_v23 = vand.u32 4294901760, %v4946_v33  ;;  %v3943_v46 = vmov 1966171168   ;;  %v5096_v1 = vadd.s32 8, %v4556_v5 }
 0x4c6   : > { %3701 = vmatprep.subr.bf16.mxu0 %v4860_v24  ;;  %3671 = vmatpush1.bf16.msra.mxu1 %v3670_v19  ;;  %v2439_v48 = vand.u32 4294901760, %v2438_v58 }
 0x4c7   : > { %3673 = vmatprep.subr.bf16.mxu1 %v3672_v29  ;;  %v3726_v28 = vpack.c.bf16 %v5344_v23, %v5343_v10 }
 0x4c9   : > { %3703 = vmatpush1.bf16.msra.mxu0 %v4871_v30 }
 0x4ca   : > { %3705 = vmatprep.subr.bf16.mxu0 %v4897_v62  ;;  %3675 = vmatpush1.bf16.msra.mxu1 %v3674_v45  ;;  %v3712_v45 = vpack.c.bf16 %v2347_v54, %v2335_v25  ;;  %v3718_v25 = vpack.c.bf16 %v5341_v56, %v5340_v8 }
 0x4cb   : > { %3677 = vmatprep.subr.bf16.mxu1 %v3676_v34 }
 0x4cd   : > { %3707 = vmatpush1.bf16.msra.mxu0 %v4910_v4 }
 0x4ce   : > { %3709 = vmatprep.subr.bf16.mxu0 %v4948_v36  ;;  %3679 = vmatpush1.bf16.msra.mxu1 %v3678_v59 }
 0x4cf   : > { %2434 = vmatprep.subr.mxu1 %v2433_v18 }
 0x4d1   : > { %3711 = vmatpush1.bf16.msra.mxu0 %v4955_v39 }
 0x4d2   : > { %2637 = vmatprep.subr.mxu0 %v4958_v50  ;;  %2440 = vmatpush1.msra.mxu1 %v2439_v48 }
 0x4d3   : > { %2489 = vmatmul.mubr.f32.vlgmr.msra.gmra.mrb[0].mxu1 %v4880_v0 }
 0x4d4   : > { %3209 = vmatprep.mubr.f32.mxu1 %v3931_v26 }
 0x4d5   : > { %2639 = vmatpush1.msra.mxu0 %v4987_v51 }
 0x4d6   : > { %3713 = vmatprep.subr.bf16.mxu0 %v3712_v45  ;;  %2690 = vmatmul.mubr.f32.vlgmr.msra.gmra.mrb[0].mxu0 %v2324_v14 }
 0x4d7   : > { %3715 = vmatpush1.bf16.msra.mxu0 %v3714_v22  ;;  %2814 = vmatprep.mubr.f32.mxu0 %v3931_v26  ;;  %v3724_v26 = vpack.c.bf16 %v2419_v21, %v2407_v20 }
 0x4d8   : > { %3717 = vmatprep.subr.bf16.mxu0 %v3716_v12 }
 0x4db   : > { %3719 = vmatpush1.bf16.msra.mxu0 %v3718_v25 }
 0x4dc   : > { %3721 = vmatprep.subr.bf16.mxu0 %v3720_v38 }
 0x4df   : > { %3723 = vmatpush1.bf16.msra.mxu0 %v3722_v47 }
 0x4e0   : > { %3725 = vmatprep.subr.bf16.mxu0 %v3724_v26 }
 0x4e3   : > { %3727 = vmatpush1.bf16.msra.mxu0 %v3726_v28 }
 0x4e4   : > { %2763 = vmatprep.subr.mxu0 %v2431_v32 }
 0x4e7   : > { %2767 = vmatpush1.msra.mxu0 %v2437_v31 }
 0x4e8   : > { %3729 = vmatprep.subr.bf16.mxu0 %v4841_v17  ;;  %2816 = vmatmul.mubr.f32.vlgmr.msra.gmra.mrb[0].mxu0 %v4880_v0 }
 0x4e9   : > { %3731 = vmatpush1.bf16.msra.mxu0 %v4843_v16  ;;  %2904 = vmatprep.mubr.f32.mxu0 %v5076_v43 }
 0x4ea   : > { %3733 = vmatprep.subr.bf16.mxu0 %v4860_v24  ;;  %v2919_v24 = vunpack.c.l.s4 %v3943_v46 }
 0x4ed   : > { %3735 = vmatpush1.bf16.msra.mxu0 %v4871_v30  ;;  %v2920_v30 = vunpack.c.0.s8 %v2919_v24 }
 0x4ee   : > { %3737 = vmatprep.subr.bf16.mxu0 %v4897_v62 }
 0x4ef   : > { %v2923_v7 = vsub.s32 %v2920_v30, %v4556_v5 }
 0x4f1   : > { %3739 = vmatpush1.bf16.msra.mxu0 %v4910_v4 }
 0x4f2   : > { %3741 = vmatprep.subr.bf16.mxu0 %v4948_v36 }
 0x4f5   : > { %3743 = vmatpush1.bf16.msra.mxu0 %v4955_v39 }
 0x4f6   : > { %2855 = vmatprep.subr.mxu0 %v4958_v50 }
 0x4f9   : > { %2857 = vmatpush1.msra.mxu0 %v4987_v51 }
 0x4fa   : > { %2906 = vmatmul.mubr.f32.vlgmr.msra.gmra.mrb[0].mxu0 %v4880_v0 }
 0x5a6   : > { %v2490_v17 = vpop.f32.mrb[0].mxu1 }
 0x5a7   : > { %v2492_v16 = vpop.f32.mrb[1].mxu1 }
 0x5cd   : > { %v2907_v2 = vpop.f32.mrb[0].mxu0 }
 0x5ce   : > { %v3748_v11 = vadd.f32 %v2907_v2, %v2490_v17  ;;  %v2909_v62 = vpop.f32.mrb[1].mxu0 }
 0x5cf   : > { %v3749_v60 = vadd.f32 %v2909_v62, %v2492_v16 }
 0x5d0   : > { %v2913_v4 = vmul.f32 0.0625, %v3748_v11 }
 0x5d1   : > { %v2914_v54 = vmul.f32 0.0625, %v3749_v60 }
 0x5d3   : > { %v2917_v35 = vcombine.low %v2913_v4, %v2914_v54 }
 0x5d5   : > { %v2924_v14 = vrot.slane %v2917_v35, %v2923_v7 }
 0x5d7   : > { %v2931_v0 = vrot.slane %v2924_v14, %v2923_v7  ;;  %v2936_v20 = vcombine.high %v2924_v14, %v2924_v14 }
 0x5d9   : > { %v2933_v33 = vadd.f32 %v2931_v0, %v2912_v15  ;;  %v2943_v36 = vrot.slane %v2936_v20, %v2923_v7  ;;  %v3113_v7 = vld [vmem:[%s5120_s28] sm:$0xff] }
 0x5db   : > { %v2945_v61 = vadd.f32 %v3624_v44, %v2943_v36  ;;  %v2946_v6 = vadd.f32 1.0, %v2933_v33 }
 0x5dd   : > { %v2947_v39 = vmul.f32 8.0, %v2946_v6  ;;  %v2949_v50 = vadd.f32 1.0, %v2945_v61  ;;  %v3114_v61 = vld [vmem:[%s5120_s28 + $0x8] sm:$0xff] }
 0x5df   : > { %v3625_v49 = vadd.f32 -0.5, %v2947_v39  ;;  %v2950_v63 = vmul.f32 8.0, %v2949_v50 }
 0x5e1   : > { %v3626_v21 = vadd.f32 -0.5, %v2950_v63  ;;  %v2952_v3 = vfloor.f32 %v3625_v49 }
 0x5e3   : > { %v3758_v51 = vtrunc.f32 %v2952_v3  ;;  %v3034_v55 = vfloor.f32 %v3626_v21  ;;  %v2953_v59 = vsub.f32 %v3625_v49, %v2952_v3 }
 0x5e5   : > { %v3759_v42 = vcvt.f32.s32 %v3758_v51  ;;  %v3760_v19 = vtrunc.f32 %v3034_v55  ;;  %v2959_v29 = vsub.f32 1.0, %v2953_v59  ;;  %v5098_v52 = vsub.f32 %v3626_v21, %v3034_v55  ;;  %v3115_v51 = vld [vmem:[%s5120_s28 + $0x10] sm:$0xff] }
 0x5e7   : > { %v3761_v41 = vcvt.f32.s32 %v3760_v19  ;;  %v2955_v32 = vadd.s32 1, %v3759_v42  ;;  %vm2956_vm8 = vcmp.ge.s32.totalorder %v3759_v42, 0  ;;  %vm2957_vm9 = vcmp.le.s32.totalorder %v3759_v42, 15  ;;  %v3118_v19 = vld [vmem:[%s5120_s28 + $0x28] sm:$0xff] }
 0x5e8   : > { %vm2958_vm10 = vmand %vm2956_vm8, %vm2957_vm9  ;;  %vm2965_vm11 = vcmp.gt.s32.totalorder %v3759_v42, 0  ;;  %v3041_v54 = vsub.f32 1.0, %v5098_v52 }
 0x5e9   : > { %v2960_v57 = vsel %vm2958_vm10, %v2959_v29, 0.0  ;;  %vm2961_vm13 = vcmp.ge.s32.totalorder %v2955_v32, 0  ;;  %vm2962_vm14 = vcmp.le.s32.totalorder %v2955_v32, 15  ;;  %v2966_v13 = vsel %vm2965_vm11, %v3759_v42, 0  ;;  %v3117_v42 = vld [vmem:[%s5120_s28 + $0x20] sm:$0xff]  ;;  %v3119_v29 = vld [vmem:[%s5120_s28 + $0x30] sm:$0xff] }
 0x5ea   : > { %vm2963_vm15 = vmand %vm2961_vm13, %vm2962_vm14  ;;  %vm2967_vm0 = vcmp.lt.s32.totalorder %v2966_v13, 15  ;;  %vm2969_vm1 = vcmp.gt.s32.totalorder %v2955_v32, 0  ;;  %v2992_v31 = vrot.slane %v2960_v57, %v4632_v27  ;;  %v2996_v34 = vrot.slane %v2960_v57, %v4647_v37 }
 0x5eb   : > { %v2964_v40 = vsel %vm2963_vm15, %v2953_v59, 0.0  ;;  %v2968_v9 = vsel %vm2967_vm0, %v2966_v13, 15  ;;  %v2970_v58 = vsel %vm2969_vm1, %v2955_v32, 0  ;;  %v3037_v18 = vadd.s32 1, %v3761_v41  ;;  %v3116_v59 = vld [vmem:[%s5120_s28 + $0x18] sm:$0xff] }
 0x5ec   : > { %vm2971_vm2 = vcmp.lt.s32.totalorder %v2970_v58, 15  ;;  %v2979_v48 = vrot.slane %v2968_v9, %v4632_v27  ;;  %v2983_v45 = vrot.slane %v2968_v9, %v4647_v37  ;;  %v3019_v22 = vrot.slane %v2964_v40, %v4632_v27 }
 0x5ed   : > { %v2972_v12 = vsel %vm2971_vm2, %v2970_v58, 15  ;;  %v3023_v8 = vrot.slane %v2964_v40, %v4647_v37  ;;  %vm3038_vm6 = vcmp.ge.s32.totalorder %v3761_v41, 0  ;;  %vm3039_vm7 = vcmp.le.s32.totalorder %v3761_v41, 15 }
 0x5ee   : > { %vm2985_vm8 = vcmp.eq.s32.totalorder %v4556_v5, %v2983_v45  ;;  %vm2987_vm9 = vcmp.eq.s32.totalorder %v5096_v1, %v2983_v45  ;;  %v3006_v56 = vrot.slane %v2972_v12, %v4632_v27  ;;  %v3010_v25 = vrot.slane %v2972_v12, %v4647_v37  ;;  %vm5124_vm2 = vmand %vm3038_vm6, %vm3039_vm7 }
 0x5ef   : > { %v3000_v53 = vsel %vm2985_vm8, %v2996_v34, 0.0  ;;  %v3002_v38 = vsel %vm2987_vm9, %v2996_v34, 0.0  ;;  %vm2984_vm10 = vcmp.eq.s32.totalorder %v4556_v5, %v2979_v48  ;;  %vm2986_vm11 = vcmp.eq.s32.totalorder %v5096_v1, %v2979_v48 }
 0x5f0   : > { %vm3012_vm13 = vcmp.eq.s32.totalorder %v4556_v5, %v3010_v25  ;;  %vm3014_vm14 = vcmp.eq.s32.totalorder %v5096_v1, %v3010_v25  ;;  %v2999_v47 = vsel %vm2984_vm10, %v2992_v31, 0.0  ;;  %v3001_v26 = vsel %vm2986_vm11, %v2992_v31, 0.0 }
 0x5f1   : > { %v3027_v10 = vsel %vm3012_vm13, %v3023_v8, 0.0  ;;  %v3029_v23 = vsel %vm3014_vm14, %v3023_v8, 0.0  ;;  %vm3011_vm15 = vcmp.eq.s32.totalorder %v4556_v5, %v3006_v56  ;;  %vm3013_vm0 = vcmp.eq.s32.totalorder %v5096_v1, %v3006_v56 }
 0x5f2   : > { %v3031_v28 = vadd.f32 %v3027_v10, %v3000_v53  ;;  %v3033_v17 = vadd.f32 %v3029_v23, %v3002_v38  ;;  %v3026_v16 = vsel %vm3011_vm15, %v3019_v22, 0.0  ;;  %v3028_v46 = vsel %vm3013_vm0, %v3019_v22, 0.0 }
 0x5f3   : > { %v3030_v24 = vadd.f32 %v3026_v16, %v2999_v47  ;;  %v3032_v2 = vadd.f32 %v3028_v46, %v3001_v26  ;;  %vm3043_vm1 = vcmp.ge.s32.totalorder %v3037_v18, 0  ;;  %vm3044_vm8 = vcmp.le.s32.totalorder %v3037_v18, 15 }
 0x5f4   : > { %v3744_v30 = vpack.c.bf16 %v3033_v17, %v3031_v28  ;;  %vm3047_vm9 = vcmp.gt.s32.totalorder %v3761_v41, 0  ;;  %vm3051_vm10 = vcmp.gt.s32.totalorder %v3037_v18, 0  ;;  %vm3045_vm11 = vmand %vm3043_vm1, %vm3044_vm8  ;;  %v3042_v15 = vsel %vm5124_vm2, %v3041_v54, 0.0 }
 0x5f5   : > { %v3746_v62 = vpack.c.bf16 %v3032_v2, %v3030_v24  ;;  %v3048_v60 = vsel %vm3047_vm9, %v3761_v41, 0  ;;  %v3052_v4 = vsel %vm3051_vm10, %v3037_v18, 0  ;;  %v3046_v0 = vsel %vm3045_vm11, %v5098_v52, 0.0  ;;  %v3120_v41 = vld [vmem:[%s5120_s28 + $0x38] sm:$0xff]  ;;  %s5205_s28 = scalar_lea.hbm %s5283_s12, %s3646_s18 }
 0x5f6   : > { %3745 = vmatprep.subr.bf16.mxu1 %v3744_v30  ;;  %vm3049_vm13 = vcmp.lt.s32.totalorder %v3048_v60, 15  ;;  %vm3053_vm14 = vcmp.lt.s32.totalorder %v3052_v4, 15  ;;  %v3071_v6 = vrot.slane %v3042_v15, %v4632_v27  ;;  %v3098_v39 = vrot.slane %v3046_v0, %v4632_v27 }
 0x5f7   : > { %3747 = vmatpush1.bf16.msra.mxu1 %v3746_v62  ;;  %v3050_v35 = vsel %vm3049_vm13, %v3048_v60, 15  ;;  %v3054_v14 = vsel %vm3053_vm14, %v3052_v4, 15  ;;  %v3075_v50 = vrot.slane %v3042_v15, %v4647_v37  ;;  %v3102_v49 = vrot.slane %v3046_v0, %v4647_v37 }
 0x5f8   : > { %v3058_v20 = vrot.slane %v3050_v35, %v4632_v27  ;;  %v3085_v44 = vrot.slane %v3054_v14, %v4632_v27  ;;  %v3062_v33 = vrot.slane %v3050_v35, %v4647_v37  ;;  %v3089_v36 = vrot.slane %v3054_v14, %v4647_v37 }
 0x5f9   : > { %vm3348_vm10 = vcmask 1046534  }
 0x5fa   : > { %3627 = vmatmul.mubr.msk.f32.vlgmr.msra.gmra.mrb[2].mxu1 %vm2021_vm12, %v3113_v7  ;;  %vm3065_vm6 = vcmp.eq.s32.totalorder %v5096_v1, %v3058_v20  ;;  %vm3092_vm7 = vcmp.eq.s32.totalorder %v5096_v1, %v3085_v44  ;;  %vm3066_vm15 = vcmp.eq.s32.totalorder %v5096_v1, %v3062_v33  ;;  %vm3093_vm0 = vcmp.eq.s32.totalorder %v5096_v1, %v3089_v36 }
 0x5fb   : > { %3215 = vmatprep.mubr.f32.mxu1 %v5076_v43  ;;  %v3080_v63 = vsel %vm3065_vm6, %v3071_v6, 0.0  ;;  %v3107_v21 = vsel %vm3092_vm7, %v3098_v39, 0.0  ;;  %v3081_v3 = vsel %vm3066_vm15, %v3075_v50, 0.0  ;;  %v3108_v37 = vsel %vm3093_vm0, %v3102_v49, 0.0 }
 0x5fc   : > { %v5149_v27 = vadd.f32 %v3107_v21, %v3080_v63  ;;  %v5153_v55 = vadd.f32 %v3108_v37, %v3081_v3  ;;  %vm3090_vm1 = vcmp.eq.s32.totalorder %v4556_v5, %v3085_v44  ;;  %vm3091_vm2 = vcmp.eq.s32.totalorder %v4556_v5, %v3089_v36 }
 0x5fd   : > { %vm3063_vm8 = vcmp.eq.s32.totalorder %v4556_v5, %v3058_v20  ;;  %v3105_v32 = vsel %vm3090_vm1, %v3098_v39, 0.0  ;;  %vm3064_vm9 = vcmp.eq.s32.totalorder %v4556_v5, %v3062_v33  ;;  %v3106_v1 = vsel %vm3091_vm2, %v3102_v49, 0.0 }
 0x5fe   : > { %3628 = vmatmul.mubr.msk.f32.gmra.mrb[4].mxu1 %vm2021_vm12, %v3114_v61  ;;  %v3078_v52 = vsel %vm3063_vm8, %v3071_v6, 0.0  ;;  %v3079_v13 = vsel %vm3064_vm9, %v3075_v50, 0.0 }
 0x5ff   : > { %3221 = vmatprep.mubr.f32.mxu1 %v5076_v43  ;;  %v3109_v57 = vadd.f32 %v3105_v32, %v3078_v52  ;;  %v3110_v34 = vadd.f32 %v3106_v1, %v3079_v13 }
 0x602   : > { %3629 = vmatmul.mubr.msk.f32.gmra.mrb[6].mxu1 %vm2021_vm12, %v3115_v51 }
 0x603   : > { %3227 = vmatprep.mubr.f32.mxu1 %v5076_v43 }
 0x606   : > { %3630 = vmatmul.mubr.msk.f32.gmra.mrb[8].mxu1 %vm2021_vm12, %v3116_v59 }
 0x607   : > { %3233 = vmatprep.mubr.f32.mxu1 %v5076_v43 }
 0x60a   : > { %3631 = vmatmul.mubr.msk.f32.gmra.mrb[10].mxu1 %vm2021_vm12, %v3117_v42 }
 0x60b   : > { %3239 = vmatprep.mubr.f32.mxu1 %v5076_v43 }
 0x60e   : > { %3632 = vmatmul.mubr.msk.f32.gmra.mrb[12].mxu1 %vm2021_vm12, %v3118_v19 }
 0x60f   : > { %3245 = vmatprep.mubr.f32.mxu1 %v5076_v43 }
 0x612   : > { %3633 = vmatmul.mubr.msk.f32.gmra.mrb[14].mxu1 %vm2021_vm12, %v3119_v29 }
 0x613   : > { %3251 = vmatprep.mubr.f32.mxu1 %v5076_v43 }
 0x616   : > { %3634 = vmatmul.mubr.msk.f32.gmra.mrb[16].mxu1 %vm2021_vm12, %v3120_v41  ;;  %vm3344_vm12 = vcmask 1045509  }
 0x6cd   : > { %v3211_v31 = vpop.f32.mrb[2].mxu1 }
 0x6ce   : > { %v3258_v40 = vmul.f32 %v3211_v31, %v3109_v57  ;;  %v3213_v43 = vpop.f32.mrb[3].mxu1 }
 0x6cf   : > { %v3259_v9 = vmul.f32 %v3213_v43, %v3110_v34 }
 0x6d1   : > { %v3217_v58 = vpop.f32.mrb[4].mxu1 }
 0x6d2   : > { %v3260_v18 = vmul.f32 %v3217_v58, %v5149_v27  ;;  %v3219_v48 = vpop.f32.mrb[5].mxu1 }
 0x6d3   : > { %v3261_v45 = vmul.f32 %v3219_v48, %v5153_v55 }
 0x6d4   : > { %v3274_v22 = vadd.f32 %v3260_v18, %v3258_v40 }
 0x6d5   : > { %v3281_v12 = vadd.f32 %v3261_v45, %v3259_v9  ;;  %v3223_v8 = vpop.f32.mrb[6].mxu1 }
 0x6d6   : > { %v3275_v56 = vrot.slane %v3274_v22, 4  ;;  %v3262_v5 = vmul.f32 %v3223_v8, %v3109_v57  ;;  %v3225_v25 = vpop.f32.mrb[7].mxu1 }
 0x6d7   : > { %v3282_v53 = vrot.slane %v3281_v12, 4  ;;  %v3263_v38 = vmul.f32 %v3225_v25, %v3110_v34 }
 0x6d8   : > { %v3276_v47 = vadd.f32 %v3275_v56, %v3274_v22 }
 0x6d9   : > { %v3283_v26 = vadd.f32 %v3282_v53, %v3281_v12  ;;  %v3229_v10 = vpop.f32.mrb[8].mxu1 }
 0x6da   : > { %v3277_v23 = vrot.slane %v3276_v47, 2  ;;  %v3264_v28 = vmul.f32 %v3229_v10, %v5149_v27  ;;  %v3231_v17 = vpop.f32.mrb[9].mxu1 }
 0x6db   : > { %v3284_v16 = vrot.slane %v3283_v26, 2  ;;  %v3265_v46 = vmul.f32 %v3231_v17, %v5153_v55 }
 0x6dc   : > { %v3278_v24 = vadd.f32 %v3277_v23, %v3276_v47  ;;  %v3288_v2 = vadd.f32 %v3264_v28, %v3262_v5 }
 0x6dd   : > { %v3285_v30 = vadd.f32 %v3284_v16, %v3283_v26  ;;  %v3295_v11 = vadd.f32 %v3265_v46, %v3263_v38  ;;  %v3235_v62 = vpop.f32.mrb[10].mxu1 }
 0x6de   : > { %v3279_v60 = vrot.slane %v3278_v24, 1  ;;  %v3289_v4 = vrot.slane %v3288_v2, 4  ;;  %v3266_v54 = vmul.f32 %v3235_v62, %v3109_v57  ;;  %v3237_v7 = vpop.f32.mrb[11].mxu1 }
 0x6df   : > { %v3286_v35 = vrot.slane %v3285_v30, 1  ;;  %v3296_v14 = vrot.slane %v3295_v11, 4  ;;  %v3267_v15 = vmul.f32 %v3237_v7, %v3110_v34 }
 0x6e0   : > { %v3280_v0 = vadd.f32 %v3279_v60, %v3278_v24  ;;  %v3290_v20 = vadd.f32 %v3289_v4, %v3288_v2 }
 0x6e1   : > { %v3287_v44 = vadd.f32 %v3286_v35, %v3285_v30  ;;  %v3297_v33 = vadd.f32 %v3296_v14, %v3295_v11  ;;  %v3241_v36 = vpop.f32.mrb[12].mxu1 }
 0x6e2   : > { %v3291_v61 = vrot.slane %v3290_v20, 2  ;;  %v3268_v6 = vmul.f32 %v3241_v36, %v5149_v27  ;;  %v3243_v39 = vpop.f32.mrb[13].mxu1 }
 0x6e3   : > { %v3338_v50 = vcombine.low %v3280_v0, %v3287_v44  ;;  %v3298_v49 = vrot.slane %v3297_v33, 2  ;;  %v3269_v63 = vmul.f32 %v3243_v39, %v5153_v55 }
 0x6e4   : > { %v3292_v21 = vadd.f32 %v3291_v61, %v3290_v20  ;;  %v3302_v3 = vadd.f32 %v3268_v6, %v3266_v54 }
 0x6e5   : > { %v3299_v37 = vadd.f32 %v3298_v49, %v3297_v33  ;;  %v3309_v51 = vadd.f32 %v3269_v63, %v3267_v15  ;;  %v3247_v59 = vpop.f32.mrb[14].mxu1  ;;  %v3356_v15 = vld [vmem:[%s4668_s3] sm:$0xff] }
 0x6e6   : > { %v3293_v42 = vrot.slane %v3292_v21, 1  ;;  %v3303_v19 = vrot.slane %v3302_v3, 4  ;;  %v3270_v29 = vmul.f32 %v3247_v59, %v3109_v57  ;;  %v3249_v41 = vpop.f32.mrb[15].mxu1 }
 0x6e7   : > { %v3300_v32 = vrot.slane %v3299_v37, 1  ;;  %v3310_v1 = vrot.slane %v3309_v51, 4  ;;  %v3271_v52 = vmul.f32 %v3249_v41, %v3110_v34 }
 0x6e8   : > { %v3294_v13 = vadd.f32 %v3293_v42, %v3292_v21  ;;  %v3304_v31 = vadd.f32 %v3303_v19, %v3302_v3 }
 0x6e9   : > { %v3301_v40 = vadd.f32 %v3300_v32, %v3299_v37  ;;  %v3311_v43 = vadd.f32 %v3310_v1, %v3309_v51  ;;  %v3253_v9 = vpop.f32.mrb[16].mxu1 }
 0x6ea   : > { %v3305_v58 = vrot.slane %v3304_v31, 2  ;;  %v3272_v18 = vmul.f32 %v3253_v9, %v5149_v27  ;;  %v3255_v48 = vpop.f32.mrb[17].mxu1 }
 0x6eb   : > { %v3339_v45 = vcombine.low %v3294_v13, %v3301_v40  ;;  %v3312_v22 = vrot.slane %v3311_v43, 2  ;;  %v3273_v12 = vmul.f32 %v3255_v48, %v5153_v55 }
 0x6ec   : > { %v3306_v8 = vadd.f32 %v3305_v58, %v3304_v31  ;;  %v3316_v56 = vadd.f32 %v3272_v18, %v3270_v29 }
 0x6ed   : > { %v3342_v57 = vrot.slane %v3339_v45, 7  ;;  %v3313_v5 = vadd.f32 %v3312_v22, %v3311_v43  ;;  %v3323_v25 = vadd.f32 %v3273_v12, %v3271_v52 }
 0x6ee   : > { %v3307_v34 = vrot.slane %v3306_v8, 1  ;;  %v3317_v53 = vrot.slane %v3316_v56, 4 }
 0x6ef   : > { %v3343_v38 = vsel %vm1078_vm3, %v3342_v57, %v3338_v50  ;;  %v3314_v47 = vrot.slane %v3313_v5, 1  ;;  %v3324_v26 = vrot.slane %v3323_v25, 4  ;;  %vm3352_vm3 = vcmask 1047559  }
 0x6f0   : > { %v3308_v10 = vadd.f32 %v3307_v34, %v3306_v8  ;;  %v3318_v27 = vadd.f32 %v3317_v53, %v3316_v56  ;;  %v3345_v23 = vsel %vm3344_vm12, %v3342_v57, %v3343_v38 }
 0x6f1   : > { %v3315_v28 = vadd.f32 %v3314_v47, %v3313_v5  ;;  %v3325_v17 = vadd.f32 %v3324_v26, %v3323_v25 }
 0x6f2   : > { %v3319_v16 = vrot.slane %v3318_v27, 2 }
 0x6f3   : > { %v3340_v55 = vcombine.low %v3308_v10, %v3315_v28  ;;  %v3326_v46 = vrot.slane %v3325_v17, 2 }
 0x6f4   : > { %v3320_v24 = vadd.f32 %v3319_v16, %v3318_v27 }
 0x6f5   : > { %v3346_v2 = vrot.slane %v3340_v55, 6  ;;  %v3327_v30 = vadd.f32 %v3326_v46, %v3325_v17 }
 0x6f6   : > { %v3321_v11 = vrot.slane %v3320_v24, 1 }
 0x6f7   : > { %v3328_v62 = vrot.slane %v3327_v30, 1  ;;  %v3347_v60 = vsel %vm1080_vm4, %v3346_v2, %v3345_v23 }
 0x6f8   : > { %v3322_v4 = vadd.f32 %v3321_v11, %v3320_v24  ;;  %v3349_v54 = vsel %vm3348_vm10, %v3346_v2, %v3347_v60 }
 0x6f9   : > { %v3329_v7 = vadd.f32 %v3328_v62, %v3327_v30 }
 0x6fb   : > { %v3341_v35 = vcombine.low %v3322_v4, %v3329_v7 }
 0x6fd   : > { %v3350_v14 = vrot.slane %v3341_v35, 5 }
 0x6ff   : > { %v3351_v0 = vsel %vm1082_vm5, %v3350_v14, %v3349_v54 }
 0x700   : > { %v3353_v20 = vsel %vm3352_vm3, %v3350_v14, %v3351_v0 }
 0x701   : > { %3355 = vst [vmem:[%s440_s19] sm:$0xff] %v3353_v20  ;;  %v3357_v44 = vsub.f32 %v3356_v15, %v3353_v20 }
 0x702   : > { %3842 = shalt.err (!%p3839_p3)
}
 0x703   : > { %s3843_s18 = scalar_lea.hbm %s5198_s26, 128  ;;  %s3847_s25 = scalar_lea.hbm %s5282_s11, 256 }
 0x704   : > { %p3844_p4 = scmp.ne.s32.totalorder %s5198_s26, %s3843_s18  ;;  %p3848_p9 = scmp.lt.u32.totalorder %s5198_s26, %s5282_s11 }
 0x705   : > { %p3849_p10 = scmp.lt.u32.totalorder %s3847_s25, %s3843_s18  ;;  %p3851_p12 = scmp.lt.u32.totalorder %s3843_s18, %s5198_s26 }
 0x706   : > { %p3845_p7 = pnand %p3844_p4, %p4049_p5 }
 0x707   : > { %p3850_p11 = por %p3849_p10, %p3848_p9 }
 0x708   : > { %p3846_p8 = pneg %p3845_p7 }
 0x709   : > { %p3852_p13 = por %p3851_p12, %p3850_p11 }
 0x70b   : > { %p3853_p0 = pnand %p3852_p13, %p3846_p8 }
 0x70d   : > { %3856 = shalt.err (!%p3853_p0)
}
 0x70e   : > { %3762 = dma.vmem_to_hbm [thread:$0]  (%p4049_p5), %s5200_s2, 128, %s5198_s26, %s3360_s20   ;;  %3358 = vst [vmem:[%s5191_s16] sm:$0xff] %v3357_v44 }
 0x70f   : > { %s3365_s0 = scalar_lea.sflag [#allocation6], %s5185_s17  ;;  %s3857_s1 = scalar_lea.vmem %s5207_s30, 128 }
 0x710   : > { %p3858_p1 = scmp.ne.s32.totalorder %s5207_s30, %s3857_s1  ;;  %s3945_s18 = smov [#allocation5]  }
 0x711   : > { %s3861_s19 = sshll.u32 %s3945_s18, 4  ;;  %s3862_s19 = int_to_ptr.vmem [resolvable:$false] %s3861_s19 }
 0x712   : > { %p3859_p2 = pnand %p3858_p1, %p4049_p5  ;;  %s3863_s3 = scalar_lea.vmem %s3862_s19, 256 }
 0x713   : > { %p3864_p4 = scmp.lt.s32.totalorder %s5207_s30, %s3862_s19  ;;  %p3865_p7 = scmp.lt.s32.totalorder %s3863_s3, %s3857_s1 }
 0x714   : > { %p3860_p3 = pneg %p3859_p2 }
 0x715   : > { %p3866_p8 = por %p3865_p7, %p3864_p4 }
 0x717   : > { %p3867_p9 = pnand %p3866_p8, %p3860_p3 }
 0x719   : > { %3870 = shalt.err (!%p3867_p9)
}
 0x71a   : > { %s3871_s17 = scalar_lea.hbm %s5205_s28, 128  ;;  %s3875_s26 = scalar_lea.hbm %s5283_s12, 256 }
 0x71b   : > { %p3872_p10 = scmp.ne.s32.totalorder %s5205_s28, %s3871_s17  ;;  %p3876_p13 = scmp.lt.u32.totalorder %s5205_s28, %s5283_s12 }
 0x71c   : > { %p3877_p0 = scmp.lt.u32.totalorder %s3875_s26, %s3871_s17  ;;  %p3879_p2 = scmp.lt.u32.totalorder %s3871_s17, %s5205_s28 }
 0x71d   : > { %p3873_p11 = pnand %p3872_p10, %p4049_p5 }
 0x71e   : > { %p3878_p1 = por %p3877_p0, %p3876_p13 }
 0x71f   : > { %p3874_p12 = pneg %p3873_p11 }
 0x720   : > { %p3880_p3 = por %p3879_p2, %p3878_p1 }
 0x722   : > { %p3881_p4 = pnand %p3880_p3, %p3874_p12 }
 0x724   : > { %3884 = shalt.err (!%p3881_p4)
}
 0x725   : > { %3763 = dma.vmem_to_hbm [thread:$0]  (%p4049_p5), %s5207_s30, 128, %s5205_s28, %s3365_s0  }
 0x726 PF: > { %p3773_p7 = scmp.ge.s32.totalorder %s3923_s24, 2  ;;  %s3405_s15 = sand.u32 1, %s3911_s21  }
 0x727   : > { %s3406_s29 = scalar_lea.sflag [#allocation4], %s3405_s15 }
 0x728   : > { %p3767_p8 = pnand %p3773_p7, %p4053_p6 }
 0x72a   : > { %3902 = dma.done.wait (!%p3767_p8), %s3406_s29, 128  }
 0x72b   : > { %3904 = vsyncadd (!%p3767_p8), %s3406_s29, 4294967168  ;;  %s3415_s1 = scalar_lea.sflag [#allocation6], %s3405_s15 }
 0x72c   : > { %3906 = dma.done.wait (!%p3767_p8), %s3415_s1, 128  }
 0x72d   : > { %3908 = vsyncadd (!%p3767_p8), %s3415_s1, 4294967168  ;;  %s5348_s13 = sld [smem:[#allocation9_spill]]  ;;  %p26_p5 = scmp.ge.s32.totalorder %s4036_s27, 4  }
 0x72e   : > { %s5349_s21 = smov %s3915_s22  ;;  %s5350_s22 = smov %s3919_s23 }
 0x72f   : > { %s5352_s24 = smov %s4036_s27  ;;  %28 = sbr.rel (!%p26_p5) target bundleno = 10 (0xa), region = 150 }
 0x733   : > { %s5351_s23 = smov %s5348_s13 }
 0x736   :  { %3420 = vsyncpa [#allocation4], 1 }
 0x737   :  { %3422 = vsyncpa [#allocation4 + $0x1], 1 }
 0x738   :  { %3423 = vsyncpa [#allocation6], 1 }
 0x739   :  { %3425 = vsyncpa [#allocation6 + $0x1], 1 }

</bundles_post_ra>
